<compile_context>
chip_gen: v6e
topology: v6e:2x2x1
jax: 0.10.0
libtpu: 0.0.40
codegen_flags: <defaults>
</compile_context>

<pallas_src>
import functools

import jax
import jax.numpy as jnp
from jax.experimental import pallas as pl
from jax.experimental.pallas import tpu as pltpu

_VMEM_LIMIT = 32 * 1024 * 1024


# ----------------------------------------------------------------------------
# Kernel 1: ConvTranspose2d(k=4, s=2, p=1) via sub-pixel decomposition.
# Each of the 4 output phases (ry, rx) is a 2x2 conv on the padded input.
# ----------------------------------------------------------------------------
def _upconv_subpixel_kernel(x_ref, w_ref, b_ref, o_ref, *, tap_offsets, l_out):
    # x_ref: (1, Cin, Hp*Wp) bf16   padded input, row-major flattened spatial
    # w_ref: (4, 4, Cout, Cin) bf16 [phase, tap, out_ch, in_ch]
    # b_ref: (Cout, 1) f32
    # o_ref: (1, 4, Cout, l_out) f32  "wide" per-phase outputs (cols cropped later)
    x = x_ref[0]                                        # (Cin, Lx)
    for p in range(4):
        acc = None
        for t, off in enumerate(tap_offsets[p]):
            d = jnp.dot(w_ref[p, t], x[:, off:off + l_out],
                        preferred_element_type=jnp.float32)
            acc = d if acc is None else acc + d
        o_ref[0, p] = acc + b_ref[...]


# ----------------------------------------------------------------------------
# Kernel 2: 3x3 pad-1 conv on concat([up, skip], channel) + bias + ReLU,
# with the concat fused (two inputs, split weights) — nothing concatenated in HBM.
# ----------------------------------------------------------------------------
def _conv3x3_cat_relu_kernel(a_ref, s_ref, wa_ref, ws_ref, b_ref, o_ref, *,
                             tap_offsets, l_out):
    a = a_ref[0]                                        # (Ca, Lp) bf16
    s = s_ref[0]                                        # (Cs, Lp) bf16
    cout = o_ref.shape[1]
    acc = jnp.zeros((cout, l_out), jnp.float32)
    for t, off in enumerate(tap_offsets):
        acc = acc + jnp.dot(wa_ref[t], a[:, off:off + l_out],
                            preferred_element_type=jnp.float32)
        acc = acc + jnp.dot(ws_ref[t], s[:, off:off + l_out],
                            preferred_element_type=jnp.float32)
    o_ref[0] = jnp.maximum(acc + b_ref[...], 0.0)


# ----------------------------------------------------------------------------
# Kernel 3: 3x3 pad-1 conv + bias + ReLU (single input).
# ----------------------------------------------------------------------------
def _conv3x3_relu_kernel(a_ref, wa_ref, b_ref, o_ref, *, tap_offsets, l_out):
    a = a_ref[0]
    cout = o_ref.shape[1]
    acc = jnp.zeros((cout, l_out), jnp.float32)
    for t, off in enumerate(tap_offsets):
        acc = acc + jnp.dot(wa_ref[t], a[:, off:off + l_out],
                            preferred_element_type=jnp.float32)
    o_ref[0] = jnp.maximum(acc + b_ref[...], 0.0)


# ----------------------------------------------------------------------------
# pallas_call wrappers
# ----------------------------------------------------------------------------
def _up_call(xpf, w_phase, bias, *, H, Wp):
    N, Cin, Lx = xpf.shape
    Cout = w_phase.shape[2]
    l_out = H * Wp
    # phase (ry, rx), tap (a, b) reads padded row v+ry+a, col u+rx+b.
    # Flat slice offset = (ry+a)*Wp + b (column handled by the "wide" trick).
    tap_offsets = tuple(
        tuple((ry + a) * Wp + b for a in range(2) for b in range(2))
        for ry in range(2) for rx in range(2))
    assert (H + 2) * Wp + 1 <= Lx
    kernel = functools.partial(_upconv_subpixel_kernel,
                               tap_offsets=tap_offsets, l_out=l_out)
    flops = 2 * N * 4 * 4 * Cout * Cin * l_out
    bytes_accessed = (xpf.size * 2 + w_phase.size * 2 + bias.size * 4
                      + N * 4 * Cout * l_out * 4)
    return pl.pallas_call(
        kernel,
        out_shape=jax.ShapeDtypeStruct((N, 4, Cout, l_out), jnp.float32),
        grid=(N,),
        in_specs=[
            pl.BlockSpec((1, Cin, Lx), lambda n: (n, 0, 0)),
            pl.BlockSpec((4, 4, Cout, Cin), lambda n: (0, 0, 0, 0)),
            pl.BlockSpec((Cout, 1), lambda n: (0, 0)),
        ],
        out_specs=pl.BlockSpec((1, 4, Cout, l_out), lambda n: (n, 0, 0, 0)),
        compiler_params=pltpu.CompilerParams(
            dimension_semantics=("parallel",),
            vmem_limit_bytes=_VMEM_LIMIT),
        cost_estimate=pl.CostEstimate(flops=flops, transcendentals=0,
                                      bytes_accessed=bytes_accessed),
    )(xpf, w_phase, bias)


def _conv_cat_call(a, s, wa, ws, bias, *, Ho, Wp):
    N, Ca, Lp = a.shape
    Cs = s.shape[1]
    Cout = wa.shape[1]
    l_out = Ho * Wp
    offs = tuple(kh * Wp + kw for kh in range(3) for kw in range(3))
    assert (Ho + 2) * Wp + 2 <= Lp
    kernel = functools.partial(_conv3x3_cat_relu_kernel,
                               tap_offsets=offs, l_out=l_out)
    flops = 2 * N * 9 * Cout * (Ca + Cs) * l_out
    bytes_accessed = (a.size * 2 + s.size * 2 + wa.size * 2 + ws.size * 2
                      + bias.size * 4 + N * Cout * l_out * 4)
    return pl.pallas_call(
        kernel,
        out_shape=jax.ShapeDtypeStruct((N, Cout, l_out), jnp.float32),
        grid=(N,),
        in_specs=[
            pl.BlockSpec((1, Ca, Lp), lambda n: (n, 0, 0)),
            pl.BlockSpec((1, Cs, Lp), lambda n: (n, 0, 0)),
            pl.BlockSpec((9, Cout, Ca), lambda n: (0, 0, 0)),
            pl.BlockSpec((9, Cout, Cs), lambda n: (0, 0, 0)),
            pl.BlockSpec((Cout, 1), lambda n: (0, 0)),
        ],
        out_specs=pl.BlockSpec((1, Cout, l_out), lambda n: (n, 0, 0)),
        compiler_params=pltpu.CompilerParams(
            dimension_semantics=("parallel",),
            vmem_limit_bytes=_VMEM_LIMIT),
        cost_estimate=pl.CostEstimate(flops=flops, transcendentals=0,
                                      bytes_accessed=bytes_accessed),
    )(a, s, wa, ws, bias)


def _conv_call(a, wa, bias, *, Ho, Wp):
    N, Ca, Lp = a.shape
    Cout = wa.shape[1]
    l_out = Ho * Wp
    offs = tuple(kh * Wp + kw for kh in range(3) for kw in range(3))
    assert (Ho + 2) * Wp + 2 <= Lp
    kernel = functools.partial(_conv3x3_relu_kernel, tap_offsets=offs, l_out=l_out)
    flops = 2 * N * 9 * Cout * Ca * l_out
    bytes_accessed = (a.size * 2 + wa.size * 2 + bias.size * 4
                      + N * Cout * l_out * 4)
    return pl.pallas_call(
        kernel,
        out_shape=jax.ShapeDtypeStruct((N, Cout, l_out), jnp.float32),
        grid=(N,),
        in_specs=[
            pl.BlockSpec((1, Ca, Lp), lambda n: (n, 0, 0)),
            pl.BlockSpec((9, Cout, Ca), lambda n: (0, 0, 0)),
            pl.BlockSpec((Cout, 1), lambda n: (0, 0)),
        ],
        out_specs=pl.BlockSpec((1, Cout, l_out), lambda n: (n, 0, 0)),
        compiler_params=pltpu.CompilerParams(
            dimension_semantics=("parallel",),
            vmem_limit_bytes=_VMEM_LIMIT),
        cost_estimate=pl.CostEstimate(flops=flops, transcendentals=0,
                                      bytes_accessed=bytes_accessed),
    )(a, wa, bias)


# ----------------------------------------------------------------------------
# Forward pass (NCHW in, NCHW out — no layout transposes needed).
# ----------------------------------------------------------------------------
@jax.jit
def unet_up_forward(params, inputs0_nchw, skip_nchw):
    f32 = jnp.float32
    bf16 = jnp.bfloat16
    x = inputs0_nchw                                    # (N, Cin, H, W)
    skip = skip_nchw                                    # (N, Cs, 2H, 2W)
    N, Cin, H, W = x.shape
    Cout = params["up_b"].shape[0]
    Cs = skip.shape[1]
    Ho, Wo = 2 * H, 2 * W

    # ---- self.up: ConvTranspose2d(k=4, s=2, p=1), sub-pixel decomposition ----
    Hp, Wp = H + 3, W + 2                               # pad top1/bot2, left1/right1
    xpf = jnp.pad(x, ((0, 0), (0, 0), (1, 2), (1, 1))).reshape(
        N, Cin, Hp * Wp).astype(bf16)

    up_w = params["up_w"].astype(bf16)                  # (Cin, Cout, 4, 4)
    # phase (ry,rx), tap (a,b) uses kernel element (kh,kw) = (3-ry-2a, 3-rx-2b)
    w_phase = jnp.stack([
        jnp.stack([
            jnp.transpose(up_w[:, :, 3 - ry - 2 * a, 3 - rx - 2 * b], (1, 0))
            for a in range(2) for b in range(2)], axis=0)
        for ry in range(2) for rx in range(2)], axis=0)  # (4, 4, Cout, Cin)
    up_b = params["up_b"].reshape(Cout, 1).astype(f32)

    up_wide = _up_call(xpf, w_phase, up_b, H=H, Wp=Wp)   # (N, 4, Cout, H*Wp)
    up_wide = up_wide.reshape(N, 2, 2, Cout, H, Wp)
    # crop valid columns per phase (rx=0 -> [0,W), rx=1 -> [1,W+1)), then
    # pixel-shuffle interleave to (N, Cout, 2H, 2W).
    ph = jnp.stack([up_wide[:, :, 0, :, :, 0:W],
                    up_wide[:, :, 1, :, :, 1:W + 1]], axis=2)   # (N,2,2,Cout,H,W)
    up = jnp.transpose(ph, (0, 3, 4, 1, 5, 2)).reshape(N, Cout, Ho, Wo)

    # ---- self.conv conv1: 3x3 pad1 on concat(up, skip) + ReLU (concat fused) ----
    Hp1, Wp1 = Ho + 3, Wo + 2
    up_pf = jnp.pad(up, ((0, 0), (0, 0), (1, 2), (1, 1))).reshape(
        N, Cout, Hp1 * Wp1).astype(bf16)
    sk_pf = jnp.pad(skip, ((0, 0), (0, 0), (1, 2), (1, 1))).reshape(
        N, Cs, Hp1 * Wp1).astype(bf16)

    c1_w = params["c1_w"].astype(bf16)                  # (Cout, Cout+Cs, 3, 3)
    w1_up = jnp.stack([c1_w[:, :Cout, kh, kw]
                       for kh in range(3) for kw in range(3)], axis=0)
    w1_sk = jnp.stack([c1_w[:, Cout:, kh, kw]
                       for kh in range(3) for kw in range(3)], axis=0)
    b1 = params["c1_b"].reshape(Cout, 1).astype(f32)

    y1_wide = _conv_cat_call(up_pf, sk_pf, w1_up, w1_sk, b1, Ho=Ho, Wp=Wp1)
    y1 = y1_wide.reshape(N, Cout, Ho, Wp1)[:, :, :, :Wo]

    # ---- self.conv conv2: 3x3 pad1 conv + ReLU ----
    y1_pf = jnp.pad(y1, ((0, 0), (0, 0), (1, 2), (1, 1))).reshape(
        N, Cout, Hp1 * Wp1).astype(bf16)
    c2_w = params["c2_w"].astype(bf16)
    w2 = jnp.stack([c2_w[:, :, kh, kw]
                    for kh in range(3) for kw in range(3)], axis=0)
    b2 = params["c2_b"].reshape(Cout, 1).astype(f32)

    y2_wide = _conv_call(y1_pf, w2, b2, Ho=Ho, Wp=Wp1)
    out = y2_wide.reshape(N, Cout, Ho, Wp1)[:, :, :, :Wo]   # NCHW
    return out


# ----------------------------------------------------------------------------
# Pure-JAX reference (lax convs, f32 accumulate) mirroring the kernel path's
# bf16 operand rounding points, for a tight correctness check.
# ----------------------------------------------------------------------------
def _reference(params, x0, skip):
    f32 = jnp.float32
    bf = lambda a: a.astype(jnp.bfloat16).astype(f32)
    dn = ("NCHW", "OIHW", "NCHW")
    hp = jax.lax.Precision.HIGHEST
    w_eq = jnp.transpose(bf(params["up_w"]), (1, 0, 2, 3))[:, :, ::-1, ::-1]
    up = jax.lax.conv_general_dilated(bf(x0), w_eq, (1, 1), [(2, 2), (2, 2)],
                                      lhs_dilation=(2, 2), dimension_numbers=dn,
                                      precision=hp)
    up = up + params["up_b"].reshape(1, -1, 1, 1)
    cat = jnp.concatenate([bf(up), bf(skip)], axis=1)
    y = jax.lax.conv_general_dilated(cat, bf(params["c1_w"]), (1, 1),
                                     [(1, 1), (1, 1)], dimension_numbers=dn,
                                     precision=hp)
    y = jax.nn.relu(y + params["c1_b"].reshape(1, -1, 1, 1))
    y = jax.lax.conv_general_dilated(bf(y), bf(params["c2_w"]), (1, 1),
                                     [(1, 1), (1, 1)], dimension_numbers=dn,
                                     precision=hp)
    y = jax.nn.relu(y + params["c2_b"].reshape(1, -1, 1, 1))
    return y


def _kaiming(key, shape, fan_in):
    return jax.random.normal(key, shape, jnp.float32) * jnp.sqrt(2.0 / fan_in)


if __name__ == "__main__":
    in_size, out_size = 8, 4
    N, H, W = 2, 16, 16

    key = jax.random.PRNGKey(0)
    k = jax.random.split(key, 8)
    params = {
        # ConvTranspose2d weight layout: (in_channels, out_channels, KH, KW)
        "up_w": _kaiming(k[0], (in_size, out_size, 4, 4), in_size * 16),
        "up_b": 0.01 * jax.random.normal(k[1], (out_size,), jnp.float32),
        # Conv2d weight layout: (out_channels, in_channels, KH, KW)
        "c1_w": _kaiming(k[2], (out_size, 2 * out_size, 3, 3), 2 * out_size * 9),
        "c1_b": 0.01 * jax.random.normal(k[3], (out_size,), jnp.float32),
        "c2_w": _kaiming(k[4], (out_size, out_size, 3, 3), out_size * 9),
        "c2_b": 0.01 * jax.random.normal(k[5], (out_size,), jnp.float32),
    }

    inputs0 = jax.random.normal(k[6], (N, in_size, H, W), jnp.float32)
    skip = jax.random.normal(k[7], (N, out_size, 2 * H, 2 * W), jnp.float32)

    out = jax.block_until_ready(unet_up_forward(params, inputs0, skip))
    ref = jax.block_until_ready(_reference(params, inputs0, skip))

    assert out.shape == (N, out_size, 2 * H, 2 * W), out.shape
    max_err = float(jnp.max(jnp.abs(out - ref)))
    assert jnp.allclose(out, ref, atol=1e-2, rtol=1e-2), max_err

    print("KERNEL_OK")
</pallas_src>

<mosaic_0001>
module attributes {stable_mosaic.version = 11 : i64} {
  func.func @_upconv_subpixel_kernel(%arg0: i32, %arg1: memref<1x8x342xbf16, #tpu.memory_space<vmem>>, %arg2: memref<4x4x4x8xbf16, #tpu.memory_space<vmem>>, %arg3: memref<4x1xf32, #tpu.memory_space<vmem>>, %arg4: memref<1x4x4x288xf32, #tpu.memory_space<vmem>>) attributes {dimension_semantics = [#tpu.dimension_semantics<parallel>], iteration_bounds = array<i64: 2>, scalar_prefetch = 0 : i64, scratch_operands = 0 : i64, tpu.core_type = #tpu.core_type<tc>, window_params = [{transform_indices = @transform_0, window_bounds = array<i64: 1, 8, 342>}, {pipeline_mode = #tpu.pipeline_mode<synchronous>, transform_indices = @transform_1, window_bounds = array<i64: 4, 4, 4, 8>}, {pipeline_mode = #tpu.pipeline_mode<synchronous>, transform_indices = @transform_2, window_bounds = array<i64: 4, 1>}, {transform_indices = @transform_3, window_bounds = array<i64: 1, 4, 4, 288>}]} {
    %c0 = arith.constant 0 : index
    %c0_0 = arith.constant 0 : index
    %c0_1 = arith.constant 0 : index
    %0 = vector.load %arg1[%c0, %c0_0, %c0_1] : memref<1x8x342xbf16, #tpu.memory_space<vmem>>, vector<1x8x342xbf16>
    %1 = vector.shape_cast %0 : vector<1x8x342xbf16> to vector<8x342xbf16>
    %c0_2 = arith.constant 0 : index
    %c0_3 = arith.constant 0 : index
    %c0_4 = arith.constant 0 : index
    %c0_5 = arith.constant 0 : index
    %2 = vector.load %arg2[%c0_2, %c0_3, %c0_4, %c0_5] : memref<4x4x4x8xbf16, #tpu.memory_space<vmem>>, vector<1x1x4x8xbf16>
    %3 = vector.shape_cast %2 : vector<1x1x4x8xbf16> to vector<4x8xbf16>
    %4 = vector.extract_strided_slice %1 {offsets = [0, 0], sizes = [8, 288], strides = [1, 1]} : vector<8x342xbf16> to vector<8x288xbf16>
    %cst = arith.constant dense<0.000000e+00> : vector<4x288xf32>
    %5 = tpu.matmul %3, %4, %cst {dimension_numbers = #tpu.dot_dimension_numbers<[1], [0], [0], [1], [0, 0, 1, 1], [], []>} : vector<4x8xbf16>, vector<8x288xbf16>, vector<4x288xf32> -> vector<4x288xf32>
    %c0_6 = arith.constant 0 : index
    %c1 = arith.constant 1 : index
    %c0_7 = arith.constant 0 : index
    %c0_8 = arith.constant 0 : index
    %6 = vector.load %arg2[%c0_6, %c1, %c0_7, %c0_8] : memref<4x4x4x8xbf16, #tpu.memory_space<vmem>>, vector<1x1x4x8xbf16>
    %7 = vector.shape_cast %6 : vector<1x1x4x8xbf16> to vector<4x8xbf16>
    %8 = vector.extract_strided_slice %1 {offsets = [0, 1], sizes = [8, 288], strides = [1, 1]} : vector<8x342xbf16> to vector<8x288xbf16>
    %cst_9 = arith.constant dense<0.000000e+00> : vector<4x288xf32>
    %9 = tpu.matmul %7, %8, %cst_9 {dimension_numbers = #tpu.dot_dimension_numbers<[1], [0], [0], [1], [0, 0, 1, 1], [], []>} : vector<4x8xbf16>, vector<8x288xbf16>, vector<4x288xf32> -> vector<4x288xf32>
    %10 = arith.addf %5, %9 : vector<4x288xf32>
    %c0_10 = arith.constant 0 : index
    %c2 = arith.constant 2 : index
    %c0_11 = arith.constant 0 : index
    %c0_12 = arith.constant 0 : index
    %11 = vector.load %arg2[%c0_10, %c2, %c0_11, %c0_12] : memref<4x4x4x8xbf16, #tpu.memory_space<vmem>>, vector<1x1x4x8xbf16>
    %12 = vector.shape_cast %11 : vector<1x1x4x8xbf16> to vector<4x8xbf16>
    %13 = vector.extract_strided_slice %1 {offsets = [0, 18], sizes = [8, 288], strides = [1, 1]} : vector<8x342xbf16> to vector<8x288xbf16>
    %cst_13 = arith.constant dense<0.000000e+00> : vector<4x288xf32>
    %14 = tpu.matmul %12, %13, %cst_13 {dimension_numbers = #tpu.dot_dimension_numbers<[1], [0], [0], [1], [0, 0, 1, 1], [], []>} : vector<4x8xbf16>, vector<8x288xbf16>, vector<4x288xf32> -> vector<4x288xf32>
    %15 = arith.addf %10, %14 : vector<4x288xf32>
    %c0_14 = arith.constant 0 : index
    %c3 = arith.constant 3 : index
    %c0_15 = arith.constant 0 : index
    %c0_16 = arith.constant 0 : index
    %16 = vector.load %arg2[%c0_14, %c3, %c0_15, %c0_16] : memref<4x4x4x8xbf16, #tpu.memory_space<vmem>>, vector<1x1x4x8xbf16>
    %17 = vector.shape_cast %16 : vector<1x1x4x8xbf16> to vector<4x8xbf16>
    %18 = vector.extract_strided_slice %1 {offsets = [0, 19], sizes = [8, 288], strides = [1, 1]} : vector<8x342xbf16> to vector<8x288xbf16>
    %cst_17 = arith.constant dense<0.000000e+00> : vector<4x288xf32>
    %19 = tpu.matmul %17, %18, %cst_17 {dimension_numbers = #tpu.dot_dimension_numbers<[1], [0], [0], [1], [0, 0, 1, 1], [], []>} : vector<4x8xbf16>, vector<8x288xbf16>, vector<4x288xf32> -> vector<4x288xf32>
    %20 = arith.addf %15, %19 : vector<4x288xf32>
    %c0_18 = arith.constant 0 : index
    %c0_19 = arith.constant 0 : index
    %21 = vector.load %arg3[%c0_18, %c0_19] : memref<4x1xf32, #tpu.memory_space<vmem>>, vector<4x1xf32>
    %22 = vector.broadcast %21 : vector<4x1xf32> to vector<4x288xf32>
    %23 = arith.addf %20, %22 : vector<4x288xf32>
    %c0_20 = arith.constant 0 : index
    %c0_21 = arith.constant 0 : index
    %c0_22 = arith.constant 0 : index
    %c0_23 = arith.constant 0 : index
    %24 = vector.load %arg4[%c0_20, %c0_21, %c0_22, %c0_23] : memref<1x4x4x288xf32, #tpu.memory_space<vmem>>, vector<1x1x4x288xf32>
    %25 = vector.shape_cast %24 : vector<1x1x4x288xf32> to vector<4x288xf32>
    %26 = vector.shape_cast %23 : vector<4x288xf32> to vector<1x1x4x288xf32>
    tpu.vector_store %arg4[%c0_20, %c0_21, %c0_22, %c0_23], %26 {strides = array<i32>} : memref<1x4x4x288xf32, #tpu.memory_space<vmem>>, vector<1x1x4x288xf32>,
    %c1_24 = arith.constant 1 : index
    %c0_25 = arith.constant 0 : index
    %c0_26 = arith.constant 0 : index
    %c0_27 = arith.constant 0 : index
    %27 = vector.load %arg2[%c1_24, %c0_25, %c0_26, %c0_27] : memref<4x4x4x8xbf16, #tpu.memory_space<vmem>>, vector<1x1x4x8xbf16>
    %28 = vector.shape_cast %27 : vector<1x1x4x8xbf16> to vector<4x8xbf16>
    %29 = vector.extract_strided_slice %1 {offsets = [0, 0], sizes = [8, 288], strides = [1, 1]} : vector<8x342xbf16> to vector<8x288xbf16>
    %cst_28 = arith.constant dense<0.000000e+00> : vector<4x288xf32>
    %30 = tpu.matmul %28, %29, %cst_28 {dimension_numbers = #tpu.dot_dimension_numbers<[1], [0], [0], [1], [0, 0, 1, 1], [], []>} : vector<4x8xbf16>, vector<8x288xbf16>, vector<4x288xf32> -> vector<4x288xf32>
    %c1_29 = arith.constant 1 : index
    %c1_30 = arith.constant 1 : index
    %c0_31 = arith.constant 0 : index
    %c0_32 = arith.constant 0 : index
    %31 = vector.load %arg2[%c1_29, %c1_30, %c0_31, %c0_32] : memref<4x4x4x8xbf16, #tpu.memory_space<vmem>>, vector<1x1x4x8xbf16>
    %32 = vector.shape_cast %31 : vector<1x1x4x8xbf16> to vector<4x8xbf16>
    %33 = vector.extract_strided_slice %1 {offsets = [0, 1], sizes = [8, 288], strides = [1, 1]} : vector<8x342xbf16> to vector<8x288xbf16>
    %cst_33 = arith.constant dense<0.000000e+00> : vector<4x288xf32>
    %34 = tpu.matmul %32, %33, %cst_33 {dimension_numbers = #tpu.dot_dimension_numbers<[1], [0], [0], [1], [0, 0, 1, 1], [], []>} : vector<4x8xbf16>, vector<8x288xbf16>, vector<4x288xf32> -> vector<4x288xf32>
    %35 = arith.addf %30, %34 : vector<4x288xf32>
    %c1_34 = arith.constant 1 : index
    %c2_35 = arith.constant 2 : index
    %c0_36 = arith.constant 0 : index
    %c0_37 = arith.constant 0 : index
    %36 = vector.load %arg2[%c1_34, %c2_35, %c0_36, %c0_37] : memref<4x4x4x8xbf16, #tpu.memory_space<vmem>>, vector<1x1x4x8xbf16>
    %37 = vector.shape_cast %36 : vector<1x1x4x8xbf16> to vector<4x8xbf16>
    %38 = vector.extract_strided_slice %1 {offsets = [0, 18], sizes = [8, 288], strides = [1, 1]} : vector<8x342xbf16> to vector<8x288xbf16>
    %cst_38 = arith.constant dense<0.000000e+00> : vector<4x288xf32>
    %39 = tpu.matmul %37, %38, %cst_38 {dimension_numbers = #tpu.dot_dimension_numbers<[1], [0], [0], [1], [0, 0, 1, 1], [], []>} : vector<4x8xbf16>, vector<8x288xbf16>, vector<4x288xf32> -> vector<4x288xf32>
    %40 = arith.addf %35, %39 : vector<4x288xf32>
    %c1_39 = arith.constant 1 : index
    %c3_40 = arith.constant 3 : index
    %c0_41 = arith.constant 0 : index
    %c0_42 = arith.constant 0 : index
    %41 = vector.load %arg2[%c1_39, %c3_40, %c0_41, %c0_42] : memref<4x4x4x8xbf16, #tpu.memory_space<vmem>>, vector<1x1x4x8xbf16>
    %42 = vector.shape_cast %41 : vector<1x1x4x8xbf16> to vector<4x8xbf16>
    %43 = vector.extract_strided_slice %1 {offsets = [0, 19], sizes = [8, 288], strides = [1, 1]} : vector<8x342xbf16> to vector<8x288xbf16>
    %cst_43 = arith.constant dense<0.000000e+00> : vector<4x288xf32>
    %44 = tpu.matmul %42, %43, %cst_43 {dimension_numbers = #tpu.dot_dimension_numbers<[1], [0], [0], [1], [0, 0, 1, 1], [], []>} : vector<4x8xbf16>, vector<8x288xbf16>, vector<4x288xf32> -> vector<4x288xf32>
    %45 = arith.addf %40, %44 : vector<4x288xf32>
    %c0_44 = arith.constant 0 : index
    %c0_45 = arith.constant 0 : index
    %46 = vector.load %arg3[%c0_44, %c0_45] : memref<4x1xf32, #tpu.memory_space<vmem>>, vector<4x1xf32>
    %47 = vector.broadcast %46 : vector<4x1xf32> to vector<4x288xf32>
    %48 = arith.addf %45, %47 : vector<4x288xf32>
    %c0_46 = arith.constant 0 : index
    %c1_47 = arith.constant 1 : index
    %c0_48 = arith.constant 0 : index
    %c0_49 = arith.constant 0 : index
    %49 = vector.load %arg4[%c0_46, %c1_47, %c0_48, %c0_49] : memref<1x4x4x288xf32, #tpu.memory_space<vmem>>, vector<1x1x4x288xf32>
    %50 = vector.shape_cast %49 : vector<1x1x4x288xf32> to vector<4x288xf32>
    %51 = vector.shape_cast %48 : vector<4x288xf32> to vector<1x1x4x288xf32>
    tpu.vector_store %arg4[%c0_46, %c1_47, %c0_48, %c0_49], %51 {strides = array<i32>} : memref<1x4x4x288xf32, #tpu.memory_space<vmem>>, vector<1x1x4x288xf32>,
    %c2_50 = arith.constant 2 : index
    %c0_51 = arith.constant 0 : index
    %c0_52 = arith.constant 0 : index
    %c0_53 = arith.constant 0 : index
    %52 = vector.load %arg2[%c2_50, %c0_51, %c0_52, %c0_53] : memref<4x4x4x8xbf16, #tpu.memory_space<vmem>>, vector<1x1x4x8xbf16>
    %53 = vector.shape_cast %52 : vector<1x1x4x8xbf16> to vector<4x8xbf16>
    %54 = vector.extract_strided_slice %1 {offsets = [0, 18], sizes = [8, 288], strides = [1, 1]} : vector<8x342xbf16> to vector<8x288xbf16>
    %cst_54 = arith.constant dense<0.000000e+00> : vector<4x288xf32>
    %55 = tpu.matmul %53, %54, %cst_54 {dimension_numbers = #tpu.dot_dimension_numbers<[1], [0], [0], [1], [0, 0, 1, 1], [], []>} : vector<4x8xbf16>, vector<8x288xbf16>, vector<4x288xf32> -> vector<4x288xf32>
    %c2_55 = arith.constant 2 : index
    %c1_56 = arith.constant 1 : index
    %c0_57 = arith.constant 0 : index
    %c0_58 = arith.constant 0 : index
    %56 = vector.load %arg2[%c2_55, %c1_56, %c0_57, %c0_58] : memref<4x4x4x8xbf16, #tpu.memory_space<vmem>>, vector<1x1x4x8xbf16>
    %57 = vector.shape_cast %56 : vector<1x1x4x8xbf16> to vector<4x8xbf16>
    %58 = vector.extract_strided_slice %1 {offsets = [0, 19], sizes = [8, 288], strides = [1, 1]} : vector<8x342xbf16> to vector<8x288xbf16>
    %cst_59 = arith.constant dense<0.000000e+00> : vector<4x288xf32>
    %59 = tpu.matmul %57, %58, %cst_59 {dimension_numbers = #tpu.dot_dimension_numbers<[1], [0], [0], [1], [0, 0, 1, 1], [], []>} : vector<4x8xbf16>, vector<8x288xbf16>, vector<4x288xf32> -> vector<4x288xf32>
    %60 = arith.addf %55, %59 : vector<4x288xf32>
    %c2_60 = arith.constant 2 : index
    %c2_61 = arith.constant 2 : index
    %c0_62 = arith.constant 0 : index
    %c0_63 = arith.constant 0 : index
    %61 = vector.load %arg2[%c2_60, %c2_61, %c0_62, %c0_63] : memref<4x4x4x8xbf16, #tpu.memory_space<vmem>>, vector<1x1x4x8xbf16>
    %62 = vector.shape_cast %61 : vector<1x1x4x8xbf16> to vector<4x8xbf16>
    %63 = vector.extract_strided_slice %1 {offsets = [0, 36], sizes = [8, 288], strides = [1, 1]} : vector<8x342xbf16> to vector<8x288xbf16>
    %cst_64 = arith.constant dense<0.000000e+00> : vector<4x288xf32>
    %64 = tpu.matmul %62, %63, %cst_64 {dimension_numbers = #tpu.dot_dimension_numbers<[1], [0], [0], [1], [0, 0, 1, 1], [], []>} : vector<4x8xbf16>, vector<8x288xbf16>, vector<4x288xf32> -> vector<4x288xf32>
    %65 = arith.addf %60, %64 : vector<4x288xf32>
    %c2_65 = arith.constant 2 : index
    %c3_66 = arith.constant 3 : index
    %c0_67 = arith.constant 0 : index
    %c0_68 = arith.constant 0 : index
    %66 = vector.load %arg2[%c2_65, %c3_66, %c0_67, %c0_68] : memref<4x4x4x8xbf16, #tpu.memory_space<vmem>>, vector<1x1x4x8xbf16>
    %67 = vector.shape_cast %66 : vector<1x1x4x8xbf16> to vector<4x8xbf16>
    %68 = vector.extract_strided_slice %1 {offsets = [0, 37], sizes = [8, 288], strides = [1, 1]} : vector<8x342xbf16> to vector<8x288xbf16>
    %cst_69 = arith.constant dense<0.000000e+00> : vector<4x288xf32>
    %69 = tpu.matmul %67, %68, %cst_69 {dimension_numbers = #tpu.dot_dimension_numbers<[1], [0], [0], [1], [0, 0, 1, 1], [], []>} : vector<4x8xbf16>, vector<8x288xbf16>, vector<4x288xf32> -> vector<4x288xf32>
    %70 = arith.addf %65, %69 : vector<4x288xf32>
    %c0_70 = arith.constant 0 : index
    %c0_71 = arith.constant 0 : index
    %71 = vector.load %arg3[%c0_70, %c0_71] : memref<4x1xf32, #tpu.memory_space<vmem>>, vector<4x1xf32>
    %72 = vector.broadcast %71 : vector<4x1xf32> to vector<4x288xf32>
    %73 = arith.addf %70, %72 : vector<4x288xf32>
    %c0_72 = arith.constant 0 : index
    %c2_73 = arith.constant 2 : index
    %c0_74 = arith.constant 0 : index
    %c0_75 = arith.constant 0 : index
    %74 = vector.load %arg4[%c0_72, %c2_73, %c0_74, %c0_75] : memref<1x4x4x288xf32, #tpu.memory_space<vmem>>, vector<1x1x4x288xf32>
    %75 = vector.shape_cast %74 : vector<1x1x4x288xf32> to vector<4x288xf32>
    %76 = vector.shape_cast %73 : vector<4x288xf32> to vector<1x1x4x288xf32>
    tpu.vector_store %arg4[%c0_72, %c2_73, %c0_74, %c0_75], %76 {strides = array<i32>} : memref<1x4x4x288xf32, #tpu.memory_space<vmem>>, vector<1x1x4x288xf32>,
    %c3_76 = arith.constant 3 : index
    %c0_77 = arith.constant 0 : index
    %c0_78 = arith.constant 0 : index
    %c0_79 = arith.constant 0 : index
    %77 = vector.load %arg2[%c3_76, %c0_77, %c0_78, %c0_79] : memref<4x4x4x8xbf16, #tpu.memory_space<vmem>>, vector<1x1x4x8xbf16>
    %78 = vector.shape_cast %77 : vector<1x1x4x8xbf16> to vector<4x8xbf16>
    %79 = vector.extract_strided_slice %1 {offsets = [0, 18], sizes = [8, 288], strides = [1, 1]} : vector<8x342xbf16> to vector<8x288xbf16>
    %cst_80 = arith.constant dense<0.000000e+00> : vector<4x288xf32>
    %80 = tpu.matmul %78, %79, %cst_80 {dimension_numbers = #tpu.dot_dimension_numbers<[1], [0], [0], [1], [0, 0, 1, 1], [], []>} : vector<4x8xbf16>, vector<8x288xbf16>, vector<4x288xf32> -> vector<4x288xf32>
    %c3_81 = arith.constant 3 : index
    %c1_82 = arith.constant 1 : index
    %c0_83 = arith.constant 0 : index
    %c0_84 = arith.constant 0 : index
    %81 = vector.load %arg2[%c3_81, %c1_82, %c0_83, %c0_84] : memref<4x4x4x8xbf16, #tpu.memory_space<vmem>>, vector<1x1x4x8xbf16>
    %82 = vector.shape_cast %81 : vector<1x1x4x8xbf16> to vector<4x8xbf16>
    %83 = vector.extract_strided_slice %1 {offsets = [0, 19], sizes = [8, 288], strides = [1, 1]} : vector<8x342xbf16> to vector<8x288xbf16>
    %cst_85 = arith.constant dense<0.000000e+00> : vector<4x288xf32>
    %84 = tpu.matmul %82, %83, %cst_85 {dimension_numbers = #tpu.dot_dimension_numbers<[1], [0], [0], [1], [0, 0, 1, 1], [], []>} : vector<4x8xbf16>, vector<8x288xbf16>, vector<4x288xf32> -> vector<4x288xf32>
    %85 = arith.addf %80, %84 : vector<4x288xf32>
    %c3_86 = arith.constant 3 : index
    %c2_87 = arith.constant 2 : index
    %c0_88 = arith.constant 0 : index
    %c0_89 = arith.constant 0 : index
    %86 = vector.load %arg2[%c3_86, %c2_87, %c0_88, %c0_89] : memref<4x4x4x8xbf16, #tpu.memory_space<vmem>>, vector<1x1x4x8xbf16>
    %87 = vector.shape_cast %86 : vector<1x1x4x8xbf16> to vector<4x8xbf16>
    %88 = vector.extract_strided_slice %1 {offsets = [0, 36], sizes = [8, 288], strides = [1, 1]} : vector<8x342xbf16> to vector<8x288xbf16>
    %cst_90 = arith.constant dense<0.000000e+00> : vector<4x288xf32>
    %89 = tpu.matmul %87, %88, %cst_90 {dimension_numbers = #tpu.dot_dimension_numbers<[1], [0], [0], [1], [0, 0, 1, 1], [], []>} : vector<4x8xbf16>, vector<8x288xbf16>, vector<4x288xf32> -> vector<4x288xf32>
    %90 = arith.addf %85, %89 : vector<4x288xf32>
    %c3_91 = arith.constant 3 : index
    %c3_92 = arith.constant 3 : index
    %c0_93 = arith.constant 0 : index
    %c0_94 = arith.constant 0 : index
    %91 = vector.load %arg2[%c3_91, %c3_92, %c0_93, %c0_94] : memref<4x4x4x8xbf16, #tpu.memory_space<vmem>>, vector<1x1x4x8xbf16>
    %92 = vector.shape_cast %91 : vector<1x1x4x8xbf16> to vector<4x8xbf16>
    %93 = vector.extract_strided_slice %1 {offsets = [0, 37], sizes = [8, 288], strides = [1, 1]} : vector<8x342xbf16> to vector<8x288xbf16>
    %cst_95 = arith.constant dense<0.000000e+00> : vector<4x288xf32>
    %94 = tpu.matmul %92, %93, %cst_95 {dimension_numbers = #tpu.dot_dimension_numbers<[1], [0], [0], [1], [0, 0, 1, 1], [], []>} : vector<4x8xbf16>, vector<8x288xbf16>, vector<4x288xf32> -> vector<4x288xf32>
    %95 = arith.addf %90, %94 : vector<4x288xf32>
    %c0_96 = arith.constant 0 : index
    %c0_97 = arith.constant 0 : index
    %96 = vector.load %arg3[%c0_96, %c0_97] : memref<4x1xf32, #tpu.memory_space<vmem>>, vector<4x1xf32>
    %97 = vector.broadcast %96 : vector<4x1xf32> to vector<4x288xf32>
    %98 = arith.addf %95, %97 : vector<4x288xf32>
    %c0_98 = arith.constant 0 : index
    %c3_99 = arith.constant 3 : index
    %c0_100 = arith.constant 0 : index
    %c0_101 = arith.constant 0 : index
    %99 = vector.load %arg4[%c0_98, %c3_99, %c0_100, %c0_101] : memref<1x4x4x288xf32, #tpu.memory_space<vmem>>, vector<1x1x4x288xf32>
    %100 = vector.shape_cast %99 : vector<1x1x4x288xf32> to vector<4x288xf32>
    %101 = vector.shape_cast %98 : vector<4x288xf32> to vector<1x1x4x288xf32>
    tpu.vector_store %arg4[%c0_98, %c3_99, %c0_100, %c0_101], %101 {strides = array<i32>} : memref<1x4x4x288xf32, #tpu.memory_space<vmem>>, vector<1x1x4x288xf32>,
    return
  }
  func.func @transform_0(%arg0: i32) -> (i32, i32, i32) {
    %c0_i32 = arith.constant 0 : i32
    %c0_i32_0 = arith.constant 0 : i32
    %c0_i32_1 = arith.constant 0 : i32
    return %arg0, %c0_i32, %c0_i32_0 : i32, i32, i32
  }
  func.func @transform_1(%arg0: i32) -> (i32, i32, i32, i32) {
    %c0_i32 = arith.constant 0 : i32
    %c0_i32_0 = arith.constant 0 : i32
    %c0_i32_1 = arith.constant 0 : i32
    %c0_i32_2 = arith.constant 0 : i32
    %c0_i32_3 = arith.constant 0 : i32
    return %c0_i32, %c0_i32_0, %c0_i32_1, %c0_i32_2 : i32, i32, i32, i32
  }
  func.func @transform_2(%arg0: i32) -> (i32, i32) {
    %c0_i32 = arith.constant 0 : i32
    %c0_i32_0 = arith.constant 0 : i32
    %c0_i32_1 = arith.constant 0 : i32
    return %c0_i32, %c0_i32_0 : i32, i32
  }
  func.func @transform_3(%arg0: i32) -> (i32, i32, i32, i32) {
    %c0_i32 = arith.constant 0 : i32
    %c0_i32_0 = arith.constant 0 : i32
    %c0_i32_1 = arith.constant 0 : i32
    %c0_i32_2 = arith.constant 0 : i32
    return %arg0, %c0_i32, %c0_i32_0, %c0_i32_1 : i32, i32, i32, i32
  }
}

module attributes {stable_mosaic.version = 11 : i64} {
  func.func @_conv3x3_cat_relu_kernel(%arg0: i32, %arg1: memref<1x4x1190xbf16, #tpu.memory_space<vmem>>, %arg2: memref<1x4x1190xbf16, #tpu.memory_space<vmem>>, %arg3: memref<9x4x4xbf16, #tpu.memory_space<vmem>>, %arg4: memref<9x4x4xbf16, #tpu.memory_space<vmem>>, %arg5: memref<4x1xf32, #tpu.memory_space<vmem>>, %arg6: memref<1x4x1088xf32, #tpu.memory_space<vmem>>) attributes {dimension_semantics = [#tpu.dimension_semantics<parallel>], iteration_bounds = array<i64: 2>, scalar_prefetch = 0 : i64, scratch_operands = 0 : i64, tpu.core_type = #tpu.core_type<tc>, window_params = [{transform_indices = @transform_0, window_bounds = array<i64: 1, 4, 1190>}, {transform_indices = @transform_1, window_bounds = array<i64: 1, 4, 1190>}, {pipeline_mode = #tpu.pipeline_mode<synchronous>, transform_indices = @transform_2, window_bounds = array<i64: 9, 4, 4>}, {pipeline_mode = #tpu.pipeline_mode<synchronous>, transform_indices = @transform_3, window_bounds = array<i64: 9, 4, 4>}, {pipeline_mode = #tpu.pipeline_mode<synchronous>, transform_indices = @transform_4, window_bounds = array<i64: 4, 1>}, {transform_indices = @transform_5, window_bounds = array<i64: 1, 4, 1088>}]} {
    %c0 = arith.constant 0 : index
    %c0_0 = arith.constant 0 : index
    %c0_1 = arith.constant 0 : index
    %0 = vector.load %arg1[%c0, %c0_0, %c0_1] : memref<1x4x1190xbf16, #tpu.memory_space<vmem>>, vector<1x4x1190xbf16>
    %1 = vector.shape_cast %0 : vector<1x4x1190xbf16> to vector<4x1190xbf16>
    %c0_2 = arith.constant 0 : index
    %c0_3 = arith.constant 0 : index
    %c0_4 = arith.constant 0 : index
    %2 = vector.load %arg2[%c0_2, %c0_3, %c0_4] : memref<1x4x1190xbf16, #tpu.memory_space<vmem>>, vector<1x4x1190xbf16>
    %3 = vector.shape_cast %2 : vector<1x4x1190xbf16> to vector<4x1190xbf16>
    %cst = arith.constant 0.000000e+00 : f32
    %4 = vector.broadcast %cst : f32 to vector<4x1088xf32>
    %c0_5 = arith.constant 0 : index
    %c0_6 = arith.constant 0 : index
    %c0_7 = arith.constant 0 : index
    %5 = vector.load %arg3[%c0_5, %c0_6, %c0_7] : memref<9x4x4xbf16, #tpu.memory_space<vmem>>, vector<1x4x4xbf16>
    %6 = vector.shape_cast %5 : vector<1x4x4xbf16> to vector<4x4xbf16>
    %7 = vector.extract_strided_slice %1 {offsets = [0, 0], sizes = [4, 1088], strides = [1, 1]} : vector<4x1190xbf16> to vector<4x1088xbf16>
    %cst_8 = arith.constant dense<0.000000e+00> : vector<4x1088xf32>
    %8 = tpu.matmul %6, %7, %cst_8 {dimension_numbers = #tpu.dot_dimension_numbers<[1], [0], [0], [1], [0, 0, 1, 1], [], []>} : vector<4x4xbf16>, vector<4x1088xbf16>, vector<4x1088xf32> -> vector<4x1088xf32>
    %9 = arith.addf %4, %8 : vector<4x1088xf32>
    %c0_9 = arith.constant 0 : index
    %c0_10 = arith.constant 0 : index
    %c0_11 = arith.constant 0 : index
    %10 = vector.load %arg4[%c0_9, %c0_10, %c0_11] : memref<9x4x4xbf16, #tpu.memory_space<vmem>>, vector<1x4x4xbf16>
    %11 = vector.shape_cast %10 : vector<1x4x4xbf16> to vector<4x4xbf16>
    %12 = vector.extract_strided_slice %3 {offsets = [0, 0], sizes = [4, 1088], strides = [1, 1]} : vector<4x1190xbf16> to vector<4x1088xbf16>
    %cst_12 = arith.constant dense<0.000000e+00> : vector<4x1088xf32>
    %13 = tpu.matmul %11, %12, %cst_12 {dimension_numbers = #tpu.dot_dimension_numbers<[1], [0], [0], [1], [0, 0, 1, 1], [], []>} : vector<4x4xbf16>, vector<4x1088xbf16>, vector<4x1088xf32> -> vector<4x1088xf32>
    %14 = arith.addf %9, %13 : vector<4x1088xf32>
    %c1 = arith.constant 1 : index
    %c0_13 = arith.constant 0 : index
    %c0_14 = arith.constant 0 : index
    %15 = vector.load %arg3[%c1, %c0_13, %c0_14] : memref<9x4x4xbf16, #tpu.memory_space<vmem>>, vector<1x4x4xbf16>
    %16 = vector.shape_cast %15 : vector<1x4x4xbf16> to vector<4x4xbf16>
    %17 = vector.extract_strided_slice %1 {offsets = [0, 1], sizes = [4, 1088], strides = [1, 1]} : vector<4x1190xbf16> to vector<4x1088xbf16>
    %cst_15 = arith.constant dense<0.000000e+00> : vector<4x1088xf32>
    %18 = tpu.matmul %16, %17, %cst_15 {dimension_numbers = #tpu.dot_dimension_numbers<[1], [0], [0], [1], [0, 0, 1, 1], [], []>} : vector<4x4xbf16>, vector<4x1088xbf16>, vector<4x1088xf32> -> vector<4x1088xf32>
    %19 = arith.addf %14, %18 : vector<4x1088xf32>
    %c1_16 = arith.constant 1 : index
    %c0_17 = arith.constant 0 : index
    %c0_18 = arith.constant 0 : index
    %20 = vector.load %arg4[%c1_16, %c0_17, %c0_18] : memref<9x4x4xbf16, #tpu.memory_space<vmem>>, vector<1x4x4xbf16>
    %21 = vector.shape_cast %20 : vector<1x4x4xbf16> to vector<4x4xbf16>
    %22 = vector.extract_strided_slice %3 {offsets = [0, 1], sizes = [4, 1088], strides = [1, 1]} : vector<4x1190xbf16> to vector<4x1088xbf16>
    %cst_19 = arith.constant dense<0.000000e+00> : vector<4x1088xf32>
    %23 = tpu.matmul %21, %22, %cst_19 {dimension_numbers = #tpu.dot_dimension_numbers<[1], [0], [0], [1], [0, 0, 1, 1], [], []>} : vector<4x4xbf16>, vector<4x1088xbf16>, vector<4x1088xf32> -> vector<4x1088xf32>
    %24 = arith.addf %19, %23 : vector<4x1088xf32>
    %c2 = arith.constant 2 : index
    %c0_20 = arith.constant 0 : index
    %c0_21 = arith.constant 0 : index
    %25 = vector.load %arg3[%c2, %c0_20, %c0_21] : memref<9x4x4xbf16, #tpu.memory_space<vmem>>, vector<1x4x4xbf16>
    %26 = vector.shape_cast %25 : vector<1x4x4xbf16> to vector<4x4xbf16>
    %27 = vector.extract_strided_slice %1 {offsets = [0, 2], sizes = [4, 1088], strides = [1, 1]} : vector<4x1190xbf16> to vector<4x1088xbf16>
    %cst_22 = arith.constant dense<0.000000e+00> : vector<4x1088xf32>
    %28 = tpu.matmul %26, %27, %cst_22 {dimension_numbers = #tpu.dot_dimension_numbers<[1], [0], [0], [1], [0, 0, 1, 1], [], []>} : vector<4x4xbf16>, vector<4x1088xbf16>, vector<4x1088xf32> -> vector<4x1088xf32>
    %29 = arith.addf %24, %28 : vector<4x1088xf32>
    %c2_23 = arith.constant 2 : index
    %c0_24 = arith.constant 0 : index
    %c0_25 = arith.constant 0 : index
    %30 = vector.load %arg4[%c2_23, %c0_24, %c0_25] : memref<9x4x4xbf16, #tpu.memory_space<vmem>>, vector<1x4x4xbf16>
    %31 = vector.shape_cast %30 : vector<1x4x4xbf16> to vector<4x4xbf16>
    %32 = vector.extract_strided_slice %3 {offsets = [0, 2], sizes = [4, 1088], strides = [1, 1]} : vector<4x1190xbf16> to vector<4x1088xbf16>
    %cst_26 = arith.constant dense<0.000000e+00> : vector<4x1088xf32>
    %33 = tpu.matmul %31, %32, %cst_26 {dimension_numbers = #tpu.dot_dimension_numbers<[1], [0], [0], [1], [0, 0, 1, 1], [], []>} : vector<4x4xbf16>, vector<4x1088xbf16>, vector<4x1088xf32> -> vector<4x1088xf32>
    %34 = arith.addf %29, %33 : vector<4x1088xf32>
    %c3 = arith.constant 3 : index
    %c0_27 = arith.constant 0 : index
    %c0_28 = arith.constant 0 : index
    %35 = vector.load %arg3[%c3, %c0_27, %c0_28] : memref<9x4x4xbf16, #tpu.memory_space<vmem>>, vector<1x4x4xbf16>
    %36 = vector.shape_cast %35 : vector<1x4x4xbf16> to vector<4x4xbf16>
    %37 = vector.extract_strided_slice %1 {offsets = [0, 34], sizes = [4, 1088], strides = [1, 1]} : vector<4x1190xbf16> to vector<4x1088xbf16>
    %cst_29 = arith.constant dense<0.000000e+00> : vector<4x1088xf32>
    %38 = tpu.matmul %36, %37, %cst_29 {dimension_numbers = #tpu.dot_dimension_numbers<[1], [0], [0], [1], [0, 0, 1, 1], [], []>} : vector<4x4xbf16>, vector<4x1088xbf16>, vector<4x1088xf32> -> vector<4x1088xf32>
    %39 = arith.addf %34, %38 : vector<4x1088xf32>
    %c3_30 = arith.constant 3 : index
    %c0_31 = arith.constant 0 : index
    %c0_32 = arith.constant 0 : index
    %40 = vector.load %arg4[%c3_30, %c0_31, %c0_32] : memref<9x4x4xbf16, #tpu.memory_space<vmem>>, vector<1x4x4xbf16>
    %41 = vector.shape_cast %40 : vector<1x4x4xbf16> to vector<4x4xbf16>
    %42 = vector.extract_strided_slice %3 {offsets = [0, 34], sizes = [4, 1088], strides = [1, 1]} : vector<4x1190xbf16> to vector<4x1088xbf16>
    %cst_33 = arith.constant dense<0.000000e+00> : vector<4x1088xf32>
    %43 = tpu.matmul %41, %42, %cst_33 {dimension_numbers = #tpu.dot_dimension_numbers<[1], [0], [0], [1], [0, 0, 1, 1], [], []>} : vector<4x4xbf16>, vector<4x1088xbf16>, vector<4x1088xf32> -> vector<4x1088xf32>
    %44 = arith.addf %39, %43 : vector<4x1088xf32>
    %c4 = arith.constant 4 : index
    %c0_34 = arith.constant 0 : index
    %c0_35 = arith.constant 0 : index
    %45 = vector.load %arg3[%c4, %c0_34, %c0_35] : memref<9x4x4xbf16, #tpu.memory_space<vmem>>, vector<1x4x4xbf16>
    %46 = vector.shape_cast %45 : vector<1x4x4xbf16> to vector<4x4xbf16>
    %47 = vector.extract_strided_slice %1 {offsets = [0, 35], sizes = [4, 1088], strides = [1, 1]} : vector<4x1190xbf16> to vector<4x1088xbf16>
    %cst_36 = arith.constant dense<0.000000e+00> : vector<4x1088xf32>
    %48 = tpu.matmul %46, %47, %cst_36 {dimension_numbers = #tpu.dot_dimension_numbers<[1], [0], [0], [1], [0, 0, 1, 1], [], []>} : vector<4x4xbf16>, vector<4x1088xbf16>, vector<4x1088xf32> -> vector<4x1088xf32>
    %49 = arith.addf %44, %48 : vector<4x1088xf32>
    %c4_37 = arith.constant 4 : index
    %c0_38 = arith.constant 0 : index
    %c0_39 = arith.constant 0 : index
    %50 = vector.load %arg4[%c4_37, %c0_38, %c0_39] : memref<9x4x4xbf16, #tpu.memory_space<vmem>>, vector<1x4x4xbf16>
    %51 = vector.shape_cast %50 : vector<1x4x4xbf16> to vector<4x4xbf16>
    %52 = vector.extract_strided_slice %3 {offsets = [0, 35], sizes = [4, 1088], strides = [1, 1]} : vector<4x1190xbf16> to vector<4x1088xbf16>
    %cst_40 = arith.constant dense<0.000000e+00> : vector<4x1088xf32>
    %53 = tpu.matmul %51, %52, %cst_40 {dimension_numbers = #tpu.dot_dimension_numbers<[1], [0], [0], [1], [0, 0, 1, 1], [], []>} : vector<4x4xbf16>, vector<4x1088xbf16>, vector<4x1088xf32> -> vector<4x1088xf32>
    %54 = arith.addf %49, %53 : vector<4x1088xf32>
    %c5 = arith.constant 5 : index
    %c0_41 = arith.constant 0 : index
    %c0_42 = arith.constant 0 : index
    %55 = vector.load %arg3[%c5, %c0_41, %c0_42] : memref<9x4x4xbf16, #tpu.memory_space<vmem>>, vector<1x4x4xbf16>
    %56 = vector.shape_cast %55 : vector<1x4x4xbf16> to vector<4x4xbf16>
    %57 = vector.extract_strided_slice %1 {offsets = [0, 36], sizes = [4, 1088], strides = [1, 1]} : vector<4x1190xbf16> to vector<4x1088xbf16>
    %cst_43 = arith.constant dense<0.000000e+00> : vector<4x1088xf32>
    %58 = tpu.matmul %56, %57, %cst_43 {dimension_numbers = #tpu.dot_dimension_numbers<[1], [0], [0], [1], [0, 0, 1, 1], [], []>} : vector<4x4xbf16>, vector<4x1088xbf16>, vector<4x1088xf32> -> vector<4x1088xf32>
    %59 = arith.addf %54, %58 : vector<4x1088xf32>
    %c5_44 = arith.constant 5 : index
    %c0_45 = arith.constant 0 : index
    %c0_46 = arith.constant 0 : index
    %60 = vector.load %arg4[%c5_44, %c0_45, %c0_46] : memref<9x4x4xbf16, #tpu.memory_space<vmem>>, vector<1x4x4xbf16>
    %61 = vector.shape_cast %60 : vector<1x4x4xbf16> to vector<4x4xbf16>
    %62 = vector.extract_strided_slice %3 {offsets = [0, 36], sizes = [4, 1088], strides = [1, 1]} : vector<4x1190xbf16> to vector<4x1088xbf16>
    %cst_47 = arith.constant dense<0.000000e+00> : vector<4x1088xf32>
    %63 = tpu.matmul %61, %62, %cst_47 {dimension_numbers = #tpu.dot_dimension_numbers<[1], [0], [0], [1], [0, 0, 1, 1], [], []>} : vector<4x4xbf16>, vector<4x1088xbf16>, vector<4x1088xf32> -> vector<4x1088xf32>
    %64 = arith.addf %59, %63 : vector<4x1088xf32>
    %c6 = arith.constant 6 : index
    %c0_48 = arith.constant 0 : index
    %c0_49 = arith.constant 0 : index
    %65 = vector.load %arg3[%c6, %c0_48, %c0_49] : memref<9x4x4xbf16, #tpu.memory_space<vmem>>, vector<1x4x4xbf16>
    %66 = vector.shape_cast %65 : vector<1x4x4xbf16> to vector<4x4xbf16>
    %67 = vector.extract_strided_slice %1 {offsets = [0, 68], sizes = [4, 1088], strides = [1, 1]} : vector<4x1190xbf16> to vector<4x1088xbf16>
    %cst_50 = arith.constant dense<0.000000e+00> : vector<4x1088xf32>
    %68 = tpu.matmul %66, %67, %cst_50 {dimension_numbers = #tpu.dot_dimension_numbers<[1], [0], [0], [1], [0, 0, 1, 1], [], []>} : vector<4x4xbf16>, vector<4x1088xbf16>, vector<4x1088xf32> -> vector<4x1088xf32>
    %69 = arith.addf %64, %68 : vector<4x1088xf32>
    %c6_51 = arith.constant 6 : index
    %c0_52 = arith.constant 0 : index
    %c0_53 = arith.constant 0 : index
    %70 = vector.load %arg4[%c6_51, %c0_52, %c0_53] : memref<9x4x4xbf16, #tpu.memory_space<vmem>>, vector<1x4x4xbf16>
    %71 = vector.shape_cast %70 : vector<1x4x4xbf16> to vector<4x4xbf16>
    %72 = vector.extract_strided_slice %3 {offsets = [0, 68], sizes = [4, 1088], strides = [1, 1]} : vector<4x1190xbf16> to vector<4x1088xbf16>
    %cst_54 = arith.constant dense<0.000000e+00> : vector<4x1088xf32>
    %73 = tpu.matmul %71, %72, %cst_54 {dimension_numbers = #tpu.dot_dimension_numbers<[1], [0], [0], [1], [0, 0, 1, 1], [], []>} : vector<4x4xbf16>, vector<4x1088xbf16>, vector<4x1088xf32> -> vector<4x1088xf32>
    %74 = arith.addf %69, %73 : vector<4x1088xf32>
    %c7 = arith.constant 7 : index
    %c0_55 = arith.constant 0 : index
    %c0_56 = arith.constant 0 : index
    %75 = vector.load %arg3[%c7, %c0_55, %c0_56] : memref<9x4x4xbf16, #tpu.memory_space<vmem>>, vector<1x4x4xbf16>
    %76 = vector.shape_cast %75 : vector<1x4x4xbf16> to vector<4x4xbf16>
    %77 = vector.extract_strided_slice %1 {offsets = [0, 69], sizes = [4, 1088], strides = [1, 1]} : vector<4x1190xbf16> to vector<4x1088xbf16>
    %cst_57 = arith.constant dense<0.000000e+00> : vector<4x1088xf32>
    %78 = tpu.matmul %76, %77, %cst_57 {dimension_numbers = #tpu.dot_dimension_numbers<[1], [0], [0], [1], [0, 0, 1, 1], [], []>} : vector<4x4xbf16>, vector<4x1088xbf16>, vector<4x1088xf32> -> vector<4x1088xf32>
    %79 = arith.addf %74, %78 : vector<4x1088xf32>
    %c7_58 = arith.constant 7 : index
    %c0_59 = arith.constant 0 : index
    %c0_60 = arith.constant 0 : index
    %80 = vector.load %arg4[%c7_58, %c0_59, %c0_60] : memref<9x4x4xbf16, #tpu.memory_space<vmem>>, vector<1x4x4xbf16>
    %81 = vector.shape_cast %80 : vector<1x4x4xbf16> to vector<4x4xbf16>
    %82 = vector.extract_strided_slice %3 {offsets = [0, 69], sizes = [4, 1088], strides = [1, 1]} : vector<4x1190xbf16> to vector<4x1088xbf16>
    %cst_61 = arith.constant dense<0.000000e+00> : vector<4x1088xf32>
    %83 = tpu.matmul %81, %82, %cst_61 {dimension_numbers = #tpu.dot_dimension_numbers<[1], [0], [0], [1], [0, 0, 1, 1], [], []>} : vector<4x4xbf16>, vector<4x1088xbf16>, vector<4x1088xf32> -> vector<4x1088xf32>
    %84 = arith.addf %79, %83 : vector<4x1088xf32>
    %c8 = arith.constant 8 : index
    %c0_62 = arith.constant 0 : index
    %c0_63 = arith.constant 0 : index
    %85 = vector.load %arg3[%c8, %c0_62, %c0_63] : memref<9x4x4xbf16, #tpu.memory_space<vmem>>, vector<1x4x4xbf16>
    %86 = vector.shape_cast %85 : vector<1x4x4xbf16> to vector<4x4xbf16>
    %87 = vector.extract_strided_slice %1 {offsets = [0, 70], sizes = [4, 1088], strides = [1, 1]} : vector<4x1190xbf16> to vector<4x1088xbf16>
    %cst_64 = arith.constant dense<0.000000e+00> : vector<4x1088xf32>
    %88 = tpu.matmul %86, %87, %cst_64 {dimension_numbers = #tpu.dot_dimension_numbers<[1], [0], [0], [1], [0, 0, 1, 1], [], []>} : vector<4x4xbf16>, vector<4x1088xbf16>, vector<4x1088xf32> -> vector<4x1088xf32>
    %89 = arith.addf %84, %88 : vector<4x1088xf32>
    %c8_65 = arith.constant 8 : index
    %c0_66 = arith.constant 0 : index
    %c0_67 = arith.constant 0 : index
    %90 = vector.load %arg4[%c8_65, %c0_66, %c0_67] : memref<9x4x4xbf16, #tpu.memory_space<vmem>>, vector<1x4x4xbf16>
    %91 = vector.shape_cast %90 : vector<1x4x4xbf16> to vector<4x4xbf16>
    %92 = vector.extract_strided_slice %3 {offsets = [0, 70], sizes = [4, 1088], strides = [1, 1]} : vector<4x1190xbf16> to vector<4x1088xbf16>
    %cst_68 = arith.constant dense<0.000000e+00> : vector<4x1088xf32>
    %93 = tpu.matmul %91, %92, %cst_68 {dimension_numbers = #tpu.dot_dimension_numbers<[1], [0], [0], [1], [0, 0, 1, 1], [], []>} : vector<4x4xbf16>, vector<4x1088xbf16>, vector<4x1088xf32> -> vector<4x1088xf32>
    %94 = arith.addf %89, %93 : vector<4x1088xf32>
    %c0_69 = arith.constant 0 : index
    %c0_70 = arith.constant 0 : index
    %95 = vector.load %arg5[%c0_69, %c0_70] : memref<4x1xf32, #tpu.memory_space<vmem>>, vector<4x1xf32>
    %96 = vector.broadcast %95 : vector<4x1xf32> to vector<4x1088xf32>
    %97 = arith.addf %94, %96 : vector<4x1088xf32>
    %cst_71 = arith.constant 0.000000e+00 : f32
    %98 = vector.broadcast %cst_71 : f32 to vector<4x1088xf32>
    %99 = arith.maximumf %97, %98 : vector<4x1088xf32>
    %c0_72 = arith.constant 0 : index
    %c0_73 = arith.constant 0 : index
    %c0_74 = arith.constant 0 : index
    %100 = vector.load %arg6[%c0_72, %c0_73, %c0_74] : memref<1x4x1088xf32, #tpu.memory_space<vmem>>, vector<1x4x1088xf32>
    %101 = vector.shape_cast %100 : vector<1x4x1088xf32> to vector<4x1088xf32>
    %102 = vector.shape_cast %99 : vector<4x1088xf32> to vector<1x4x1088xf32>
    tpu.vector_store %arg6[%c0_72, %c0_73, %c0_74], %102 {strides = array<i32>} : memref<1x4x1088xf32, #tpu.memory_space<vmem>>, vector<1x4x1088xf32>,
    return
  }
  func.func @transform_0(%arg0: i32) -> (i32, i32, i32) {
    %c0_i32 = arith.constant 0 : i32
    %c0_i32_0 = arith.constant 0 : i32
    %c0_i32_1 = arith.constant 0 : i32
    return %arg0, %c0_i32, %c0_i32_0 : i32, i32, i32
  }
  func.func @transform_1(%arg0: i32) -> (i32, i32, i32) {
    %c0_i32 = arith.constant 0 : i32
    %c0_i32_0 = arith.constant 0 : i32
    %c0_i32_1 = arith.constant 0 : i32
    return %arg0, %c0_i32, %c0_i32_0 : i32, i32, i32
  }
  func.func @transform_2(%arg0: i32) -> (i32, i32, i32) {
    %c0_i32 = arith.constant 0 : i32
    %c0_i32_0 = arith.constant 0 : i32
    %c0_i32_1 = arith.constant 0 : i32
    %c0_i32_2 = arith.constant 0 : i32
    return %c0_i32, %c0_i32_0, %c0_i32_1 : i32, i32, i32
  }
  func.func @transform_3(%arg0: i32) -> (i32, i32, i32) {
    %c0_i32 = arith.constant 0 : i32
    %c0_i32_0 = arith.constant 0 : i32
    %c0_i32_1 = arith.constant 0 : i32
    %c0_i32_2 = arith.constant 0 : i32
    return %c0_i32, %c0_i32_0, %c0_i32_1 : i32, i32, i32
  }
  func.func @transform_4(%arg0: i32) -> (i32, i32) {
    %c0_i32 = arith.constant 0 : i32
    %c0_i32_0 = arith.constant 0 : i32
    %c0_i32_1 = arith.constant 0 : i32
    return %c0_i32, %c0_i32_0 : i32, i32
  }
  func.func @transform_5(%arg0: i32) -> (i32, i32, i32) {
    %c0_i32 = arith.constant 0 : i32
    %c0_i32_0 = arith.constant 0 : i32
    %c0_i32_1 = arith.constant 0 : i32
    return %arg0, %c0_i32, %c0_i32_0 : i32, i32, i32
  }
}

module attributes {stable_mosaic.version = 11 : i64} {
  func.func @_conv3x3_relu_kernel(%arg0: i32, %arg1: memref<1x4x1190xbf16, #tpu.memory_space<vmem>>, %arg2: memref<9x4x4xbf16, #tpu.memory_space<vmem>>, %arg3: memref<4x1xf32, #tpu.memory_space<vmem>>, %arg4: memref<1x4x1088xf32, #tpu.memory_space<vmem>>) attributes {dimension_semantics = [#tpu.dimension_semantics<parallel>], iteration_bounds = array<i64: 2>, scalar_prefetch = 0 : i64, scratch_operands = 0 : i64, tpu.core_type = #tpu.core_type<tc>, window_params = [{transform_indices = @transform_0, window_bounds = array<i64: 1, 4, 1190>}, {pipeline_mode = #tpu.pipeline_mode<synchronous>, transform_indices = @transform_1, window_bounds = array<i64: 9, 4, 4>}, {pipeline_mode = #tpu.pipeline_mode<synchronous>, transform_indices = @transform_2, window_bounds = array<i64: 4, 1>}, {transform_indices = @transform_3, window_bounds = array<i64: 1, 4, 1088>}]} {
    %c0 = arith.constant 0 : index
    %c0_0 = arith.constant 0 : index
    %c0_1 = arith.constant 0 : index
    %0 = vector.load %arg1[%c0, %c0_0, %c0_1] : memref<1x4x1190xbf16, #tpu.memory_space<vmem>>, vector<1x4x1190xbf16>
    %1 = vector.shape_cast %0 : vector<1x4x1190xbf16> to vector<4x1190xbf16>
    %cst = arith.constant 0.000000e+00 : f32
    %2 = vector.broadcast %cst : f32 to vector<4x1088xf32>
    %c0_2 = arith.constant 0 : index
    %c0_3 = arith.constant 0 : index
    %c0_4 = arith.constant 0 : index
    %3 = vector.load %arg2[%c0_2, %c0_3, %c0_4] : memref<9x4x4xbf16, #tpu.memory_space<vmem>>, vector<1x4x4xbf16>
    %4 = vector.shape_cast %3 : vector<1x4x4xbf16> to vector<4x4xbf16>
    %5 = vector.extract_strided_slice %1 {offsets = [0, 0], sizes = [4, 1088], strides = [1, 1]} : vector<4x1190xbf16> to vector<4x1088xbf16>
    %cst_5 = arith.constant dense<0.000000e+00> : vector<4x1088xf32>
    %6 = tpu.matmul %4, %5, %cst_5 {dimension_numbers = #tpu.dot_dimension_numbers<[1], [0], [0], [1], [0, 0, 1, 1], [], []>} : vector<4x4xbf16>, vector<4x1088xbf16>, vector<4x1088xf32> -> vector<4x1088xf32>
    %7 = arith.addf %2, %6 : vector<4x1088xf32>
    %c1 = arith.constant 1 : index
    %c0_6 = arith.constant 0 : index
    %c0_7 = arith.constant 0 : index
    %8 = vector.load %arg2[%c1, %c0_6, %c0_7] : memref<9x4x4xbf16, #tpu.memory_space<vmem>>, vector<1x4x4xbf16>
    %9 = vector.shape_cast %8 : vector<1x4x4xbf16> to vector<4x4xbf16>
    %10 = vector.extract_strided_slice %1 {offsets = [0, 1], sizes = [4, 1088], strides = [1, 1]} : vector<4x1190xbf16> to vector<4x1088xbf16>
    %cst_8 = arith.constant dense<0.000000e+00> : vector<4x1088xf32>
    %11 = tpu.matmul %9, %10, %cst_8 {dimension_numbers = #tpu.dot_dimension_numbers<[1], [0], [0], [1], [0, 0, 1, 1], [], []>} : vector<4x4xbf16>, vector<4x1088xbf16>, vector<4x1088xf32> -> vector<4x1088xf32>
    %12 = arith.addf %7, %11 : vector<4x1088xf32>
    %c2 = arith.constant 2 : index
    %c0_9 = arith.constant 0 : index
    %c0_10 = arith.constant 0 : index
    %13 = vector.load %arg2[%c2, %c0_9, %c0_10] : memref<9x4x4xbf16, #tpu.memory_space<vmem>>, vector<1x4x4xbf16>
    %14 = vector.shape_cast %13 : vector<1x4x4xbf16> to vector<4x4xbf16>
    %15 = vector.extract_strided_slice %1 {offsets = [0, 2], sizes = [4, 1088], strides = [1, 1]} : vector<4x1190xbf16> to vector<4x1088xbf16>
    %cst_11 = arith.constant dense<0.000000e+00> : vector<4x1088xf32>
    %16 = tpu.matmul %14, %15, %cst_11 {dimension_numbers = #tpu.dot_dimension_numbers<[1], [0], [0], [1], [0, 0, 1, 1], [], []>} : vector<4x4xbf16>, vector<4x1088xbf16>, vector<4x1088xf32> -> vector<4x1088xf32>
    %17 = arith.addf %12, %16 : vector<4x1088xf32>
    %c3 = arith.constant 3 : index
    %c0_12 = arith.constant 0 : index
    %c0_13 = arith.constant 0 : index
    %18 = vector.load %arg2[%c3, %c0_12, %c0_13] : memref<9x4x4xbf16, #tpu.memory_space<vmem>>, vector<1x4x4xbf16>
    %19 = vector.shape_cast %18 : vector<1x4x4xbf16> to vector<4x4xbf16>
    %20 = vector.extract_strided_slice %1 {offsets = [0, 34], sizes = [4, 1088], strides = [1, 1]} : vector<4x1190xbf16> to vector<4x1088xbf16>
    %cst_14 = arith.constant dense<0.000000e+00> : vector<4x1088xf32>
    %21 = tpu.matmul %19, %20, %cst_14 {dimension_numbers = #tpu.dot_dimension_numbers<[1], [0], [0], [1], [0, 0, 1, 1], [], []>} : vector<4x4xbf16>, vector<4x1088xbf16>, vector<4x1088xf32> -> vector<4x1088xf32>
    %22 = arith.addf %17, %21 : vector<4x1088xf32>
    %c4 = arith.constant 4 : index
    %c0_15 = arith.constant 0 : index
    %c0_16 = arith.constant 0 : index
    %23 = vector.load %arg2[%c4, %c0_15, %c0_16] : memref<9x4x4xbf16, #tpu.memory_space<vmem>>, vector<1x4x4xbf16>
    %24 = vector.shape_cast %23 : vector<1x4x4xbf16> to vector<4x4xbf16>
    %25 = vector.extract_strided_slice %1 {offsets = [0, 35], sizes = [4, 1088], strides = [1, 1]} : vector<4x1190xbf16> to vector<4x1088xbf16>
    %cst_17 = arith.constant dense<0.000000e+00> : vector<4x1088xf32>
    %26 = tpu.matmul %24, %25, %cst_17 {dimension_numbers = #tpu.dot_dimension_numbers<[1], [0], [0], [1], [0, 0, 1, 1], [], []>} : vector<4x4xbf16>, vector<4x1088xbf16>, vector<4x1088xf32> -> vector<4x1088xf32>
    %27 = arith.addf %22, %26 : vector<4x1088xf32>
    %c5 = arith.constant 5 : index
    %c0_18 = arith.constant 0 : index
    %c0_19 = arith.constant 0 : index
    %28 = vector.load %arg2[%c5, %c0_18, %c0_19] : memref<9x4x4xbf16, #tpu.memory_space<vmem>>, vector<1x4x4xbf16>
    %29 = vector.shape_cast %28 : vector<1x4x4xbf16> to vector<4x4xbf16>
    %30 = vector.extract_strided_slice %1 {offsets = [0, 36], sizes = [4, 1088], strides = [1, 1]} : vector<4x1190xbf16> to vector<4x1088xbf16>
    %cst_20 = arith.constant dense<0.000000e+00> : vector<4x1088xf32>
    %31 = tpu.matmul %29, %30, %cst_20 {dimension_numbers = #tpu.dot_dimension_numbers<[1], [0], [0], [1], [0, 0, 1, 1], [], []>} : vector<4x4xbf16>, vector<4x1088xbf16>, vector<4x1088xf32> -> vector<4x1088xf32>
    %32 = arith.addf %27, %31 : vector<4x1088xf32>
    %c6 = arith.constant 6 : index
    %c0_21 = arith.constant 0 : index
    %c0_22 = arith.constant 0 : index
    %33 = vector.load %arg2[%c6, %c0_21, %c0_22] : memref<9x4x4xbf16, #tpu.memory_space<vmem>>, vector<1x4x4xbf16>
    %34 = vector.shape_cast %33 : vector<1x4x4xbf16> to vector<4x4xbf16>
    %35 = vector.extract_strided_slice %1 {offsets = [0, 68], sizes = [4, 1088], strides = [1, 1]} : vector<4x1190xbf16> to vector<4x1088xbf16>
    %cst_23 = arith.constant dense<0.000000e+00> : vector<4x1088xf32>
    %36 = tpu.matmul %34, %35, %cst_23 {dimension_numbers = #tpu.dot_dimension_numbers<[1], [0], [0], [1], [0, 0, 1, 1], [], []>} : vector<4x4xbf16>, vector<4x1088xbf16>, vector<4x1088xf32> -> vector<4x1088xf32>
    %37 = arith.addf %32, %36 : vector<4x1088xf32>
    %c7 = arith.constant 7 : index
    %c0_24 = arith.constant 0 : index
    %c0_25 = arith.constant 0 : index
    %38 = vector.load %arg2[%c7, %c0_24, %c0_25] : memref<9x4x4xbf16, #tpu.memory_space<vmem>>, vector<1x4x4xbf16>
    %39 = vector.shape_cast %38 : vector<1x4x4xbf16> to vector<4x4xbf16>
    %40 = vector.extract_strided_slice %1 {offsets = [0, 69], sizes = [4, 1088], strides = [1, 1]} : vector<4x1190xbf16> to vector<4x1088xbf16>
    %cst_26 = arith.constant dense<0.000000e+00> : vector<4x1088xf32>
    %41 = tpu.matmul %39, %40, %cst_26 {dimension_numbers = #tpu.dot_dimension_numbers<[1], [0], [0], [1], [0, 0, 1, 1], [], []>} : vector<4x4xbf16>, vector<4x1088xbf16>, vector<4x1088xf32> -> vector<4x1088xf32>
    %42 = arith.addf %37, %41 : vector<4x1088xf32>
    %c8 = arith.constant 8 : index
    %c0_27 = arith.constant 0 : index
    %c0_28 = arith.constant 0 : index
    %43 = vector.load %arg2[%c8, %c0_27, %c0_28] : memref<9x4x4xbf16, #tpu.memory_space<vmem>>, vector<1x4x4xbf16>
    %44 = vector.shape_cast %43 : vector<1x4x4xbf16> to vector<4x4xbf16>
    %45 = vector.extract_strided_slice %1 {offsets = [0, 70], sizes = [4, 1088], strides = [1, 1]} : vector<4x1190xbf16> to vector<4x1088xbf16>
    %cst_29 = arith.constant dense<0.000000e+00> : vector<4x1088xf32>
    %46 = tpu.matmul %44, %45, %cst_29 {dimension_numbers = #tpu.dot_dimension_numbers<[1], [0], [0], [1], [0, 0, 1, 1], [], []>} : vector<4x4xbf16>, vector<4x1088xbf16>, vector<4x1088xf32> -> vector<4x1088xf32>
    %47 = arith.addf %42, %46 : vector<4x1088xf32>
    %c0_30 = arith.constant 0 : index
    %c0_31 = arith.constant 0 : index
    %48 = vector.load %arg3[%c0_30, %c0_31] : memref<4x1xf32, #tpu.memory_space<vmem>>, vector<4x1xf32>
    %49 = vector.broadcast %48 : vector<4x1xf32> to vector<4x1088xf32>
    %50 = arith.addf %47, %49 : vector<4x1088xf32>
    %cst_32 = arith.constant 0.000000e+00 : f32
    %51 = vector.broadcast %cst_32 : f32 to vector<4x1088xf32>
    %52 = arith.maximumf %50, %51 : vector<4x1088xf32>
    %c0_33 = arith.constant 0 : index
    %c0_34 = arith.constant 0 : index
    %c0_35 = arith.constant 0 : index
    %53 = vector.load %arg4[%c0_33, %c0_34, %c0_35] : memref<1x4x1088xf32, #tpu.memory_space<vmem>>, vector<1x4x1088xf32>
    %54 = vector.shape_cast %53 : vector<1x4x1088xf32> to vector<4x1088xf32>
    %55 = vector.shape_cast %52 : vector<4x1088xf32> to vector<1x4x1088xf32>
    tpu.vector_store %arg4[%c0_33, %c0_34, %c0_35], %55 {strides = array<i32>} : memref<1x4x1088xf32, #tpu.memory_space<vmem>>, vector<1x4x1088xf32>,
    return
  }
  func.func @transform_0(%arg0: i32) -> (i32, i32, i32) {
    %c0_i32 = arith.constant 0 : i32
    %c0_i32_0 = arith.constant 0 : i32
    %c0_i32_1 = arith.constant 0 : i32
    return %arg0, %c0_i32, %c0_i32_0 : i32, i32, i32
  }
  func.func @transform_1(%arg0: i32) -> (i32, i32, i32) {
    %c0_i32 = arith.constant 0 : i32
    %c0_i32_0 = arith.constant 0 : i32
    %c0_i32_1 = arith.constant 0 : i32
    %c0_i32_2 = arith.constant 0 : i32
    return %c0_i32, %c0_i32_0, %c0_i32_1 : i32, i32, i32
  }
  func.func @transform_2(%arg0: i32) -> (i32, i32) {
    %c0_i32 = arith.constant 0 : i32
    %c0_i32_0 = arith.constant 0 : i32
    %c0_i32_1 = arith.constant 0 : i32
    return %c0_i32, %c0_i32_0 : i32, i32
  }
  func.func @transform_3(%arg0: i32) -> (i32, i32, i32) {
    %c0_i32 = arith.constant 0 : i32
    %c0_i32_0 = arith.constant 0 : i32
    %c0_i32_1 = arith.constant 0 : i32
    return %arg0, %c0_i32, %c0_i32_0 : i32, i32, i32
  }
}

</mosaic_0001>

<bundles_post_ra>
// kernel: unet_up_forward.3
= control target key start
LH: loop header
LB: loop body
LE: loop exit
PB: predicated region body
PF: predicated region fallthrough
CT: control target
= control target key end

     0   :  { %s2069_s12 = smov 0   ;;  %s2345_s0 = inlined_call_operand.vmem [shape: bf16[2,8,342], index: 0, kind: input, shape index: {}]   ;;  %s2346_s1 = inlined_call_operand.vmem [shape: bf16[4,4,4,8], index: 1, kind: input, shape index: {}]   ;;  %s2347_s2 = inlined_call_operand.vmem [shape: f32[4,1], index: 2, kind: input, shape index: {}]   ;;  %s2348_s3 = inlined_call_operand.vmem [shape: f32[2,4,4,288], index: 3, kind: output, shape index: {}]  }
   0x1 LB: > { %s1801_s13 = sadd.s32 4294967295, %s2039_s12   ;;  %p1805_p0 = scmp.ge.s32.totalorder %s2039_s12, 1  ;;  %s2039_s12 = sphi %s2069_s12, %s13_s12  }
   0x2   : > { %p137_p1 = scmp.lt.s32.totalorder %s2039_s12, 3 }
   0x4   : > { %p138_p2 = pnand %p1805_p0, %p137_p1 }
   0x5   : > { %p161_p3 = scmp.lt.s32.totalorder (!%p138_p2), %s1801_s13, 1  ;;  %s2044_s18 = smov (!%p138_p2), 127  }
   0x6   : > { %141 = sbr.rel (%p138_p2) target bundleno = 464 (0x1d0), region = 32  ;;  %s2045_s19 = smov (!%p138_p2), 110  }
   0x7   : > { %s2046_s20 = smov (!%p138_p2), 109   ;;  %s2047_s21 = smov (!%p138_p2), 92  }
   0x8   : > { %s2048_s22 = smov (!%p138_p2), 91  }
   0xb   : > { %v2041_v0 = vmov 0.0   ;;  %vm2042_vm0 = vmmov 0   ;;  %s2350_s13 = smov (!%p161_p3, %s1801_s13), 1  ;;  %v2043_v1 = vmov 0   ;;  %v596_v6 = vld [vmem:[%s2347_s2] sm:$0xf] }
   0xc   : > { %1914 = vmatprep.subr.bf16.mxu1 %v2041_v0  ;;  %1916 = vmatprep.mubr.msk.bf16.mxu1 %vm2042_vm0, %v2041_v0  ;;  %s2010_s14 = smul.u32 12, %s2350_s13  ;;  %vm198_vm1 = vcmask 1043456   ;;  %v1808_v10 = vld [vmem:[%s2346_s1 + $0x2] sm:$0x3]  ;;  %vm194_vm2 = vcmask 64512   ;;  %vm191_vm3 = vcmask 1039360  }
   0xd   : > { %240 = vmatprep.mubr.bf16.mxu0 %v2043_v1  ;;  %2028 = vset.pattern.permute.xlu1 %v2043_v1  ;;  %v962_v12 = vld [vmem:[%s2347_s2] sm:$0xf]  ;;  %vm390_vm4 = vcmask 900096   ;;  %vm497_vm5 = vcmask 891904   ;;  %v1818_v31 = vld [vmem:[%s2346_s1 + $0x4] sm:$0x3] }
   0xe   : > { %2029 = vset.pattern.permute.xlu0 %v2043_v1  ;;  %s165_s17 = scalar_lea.vmem %s2345_s0, %s2010_s14  ;;  %v1364_v13 = vld [vmem:[%s2347_s2] sm:$0xf]  ;;  %v1822_v36 = vld [vmem:[%s2346_s1 + $0x6] sm:$0x3]  ;;  %v1827_v37 = vld [vmem:[%s2346_s1 + $0xa] sm:$0x3] }
   0xf   : > { %v2030_v2 = vld [vmem:[%s165_s17 + $0x8] ss:$0 sps:$4 sm:$0xff]   ;;  %v172_v3 = vld [vmem:[%s165_s17] sm:$0xff]  ;;  %v1834_v39 = vld [vmem:[%s2346_s1 + $0xc] sm:$0x3]  ;;  %vm1158_vm6 = vcmask 752640  }
  0x10   : > { %v1809_v4 = vcombine.low %v172_v3, %v172_v3  ;;  %189 = vrot.lane.b32.xlu1 %v2030_v2, %s2044_s18  ;;  %v2089_v5 = vcombine.high %v172_v3, %v172_v3  ;;  %v2108_v11 = vsel %vm198_vm1, %v2030_v2, 0  ;;  %v1730_v16 = vld [vmem:[%s2347_s2] sm:$0xf]  ;;  %v1826_v38 = vld [vmem:[%s2346_s1 + $0x8] sm:$0x3]  ;;  %vm1265_vm7 = vcmask 744448  }
  0x11   : > { %v174_v23 = vld [vmem:[%s2346_s1] sm:$0x3]  ;;  %v1838_v40 = vld [vmem:[%s2346_s1 + $0xe] sm:$0x3]  ;;  %v1845_v42 = vld [vmem:[%s2346_s1 + $0x12] sm:$0x3] }
  0x12   : > { %185 = vrot.lane.b32.xlu0 %v1809_v4, %s2044_s18  ;;  %v293_v21 = vsel %vm198_vm1, %v1809_v4, 0  ;;  %v1844_v46 = vld [vmem:[%s2346_s1 + $0x10] sm:$0x3]  ;;  %v1852_v53 = vld [vmem:[%s2346_s1 + $0x14] sm:$0x3]  ;;  %s2011_s11 = smul.u32 48, %s2350_s13 }
  0x13   : > { %v1856_v58 = vld [vmem:[%s2346_s1 + $0x16] sm:$0x3]  ;;  %v1863_v59 = vld [vmem:[%s2346_s1 + $0x1a] sm:$0x3]  ;;  %v1862_v60 = vld [vmem:[%s2346_s1 + $0x18] sm:$0x3] }
  0x14   : > { %384 = vrot.lane.b32.xlu1 %v1809_v4, %s2045_s19  ;;  %v1870_v61 = vld [vmem:[%s2346_s1 + $0x1c] sm:$0x3]  ;;  %v1874_v62 = vld [vmem:[%s2346_s1 + $0x1e] sm:$0x3]  ;;  %s2328_s16 = scalar_lea.vmem %s2348_s3, %s2011_s11  ;;  %vm610_vm8 = vcmask 257024  }
  0x16   : > { %187 = vrot.lane.b32.xlu0 %v2089_v5, %s2044_s18 }
  0x18   : > { %388 = vrot.lane.b32.xlu1 %v2030_v2, %s2045_s19 }
  0x1a   : > { %386 = vrot.lane.b32.xlu0 %v2089_v5, %s2045_s19 }
  0x1c   : > { %493 = vrot.lane.b32.xlu1 %v2089_v5, %s2046_s20 }
  0x1e   : > { %491 = vrot.lane.b32.xlu0 %v1809_v4, %s2046_s20 }
  0x20   : > { %1152 = vrot.lane.b32.xlu1 %v1809_v4, %s2047_s21 }
  0x22   : > { %495 = vrot.lane.b32.xlu0 %v2030_v2, %s2046_s20 }
  0x24   : > { %1156 = vrot.lane.b32.xlu1 %v2030_v2, %s2047_s21 }
  0x26   : > { %1154 = vrot.lane.b32.xlu0 %v2089_v5, %s2047_s21 }
  0x28   : > { %1261 = vrot.lane.b32.xlu1 %v2089_v5, %s2048_s22 }
  0x2a   : > { %1259 = vrot.lane.b32.xlu0 %v1809_v4, %s2048_s22 }
  0x2c   : > { %599 = vperm.xlu1 %2028, %v596_v6  }
  0x2e   : > { %1263 = vrot.lane.b32.xlu0 %v2030_v2, %s2048_s22 }
  0x30   : > { %1367 = vperm.xlu1 %2028, %v1364_v13  }
  0x32   : > { %965 = vperm.xlu0 %2029, %v962_v12  }
  0x34   : > { %1733 = vperm.xlu1 %2028, %v1730_v16  }
  0x82   : > { %v190_v7 = vpop.permute.xlu1 %189 }
  0x83   : > { %v2100_v9 = vsel %vm198_vm1, %v190_v7, 0 }
  0x84   : > { %v186_v8 = vpop.permute.xlu0 %185  ;;  %1915 = vmatpush3.bf16.msra.mxu1 %v2100_v9 }
  0x85   : > { %1920 = vmatprep.subr.bf16.mxu1 %v2041_v0 }
  0x86   : > { %v385_v14 = vpop.permute.xlu1 %384 }
  0x87   : > { %1917 = vmatmul.mubr.msk.bf16.vlgmr.msra.gmra.mxu1 %vm194_vm2, %v1808_v10 }
  0x88   : > { %v188_v15 = vpop.permute.xlu0 %187  ;;  %1921 = vmatpush3.bf16.msra.mxu1 %v2108_v11  ;;  %1922 = vmatprep.mubr.msk.bf16.mxu1 %vm2042_vm0, %v2041_v0 }
  0x89   : > { %v193_v17 = vsel %vm191_vm3, %v188_v15, %v190_v7  ;;  %v192_v18 = vsel %vm191_vm3, %v186_v8, %v188_v15  ;;  %1926 = vmatprep.subr.bf16.mxu1 %v2041_v0 }
  0x8a   : > { %1812 = vmatprep.subr.msk.bf16.mxu0 %vm198_vm1, %v193_v17  ;;  %v200_v19 = vsel %vm198_vm1, %v192_v18, 0  ;;  %v389_v20 = vpop.permute.xlu1 %388 }
  0x8b   : > { %223 = vmatpush1.bf16.msra.mxu0 %v200_v19  ;;  %v2137_v25 = vsel %vm198_vm1, %v389_v20, 0 }
  0x8c   : > { %1815 = vmatprep.subr.msk.bf16.mxu0 %vm198_vm1, %v2089_v5  ;;  %v387_v22 = vpop.permute.xlu0 %386 }
  0x8d   : > { %v2133_v24 = vsel %vm390_vm4, %v387_v22, %v389_v20  ;;  %v391_v27 = vsel %vm390_vm4, %v385_v14, %v387_v22 }
  0x8e   : > { %1813 = vmatmul.mubr.msk.bf16.vlgmr.msra.gmra.mxu0 %vm194_vm2, %v1808_v10  ;;  %v494_v28 = vpop.permute.xlu1 %493  ;;  %v2149_v29 = vsel %vm198_vm1, %v391_v27, 0 }
  0x8f   : > { %316 = vmatpush1.bf16.msra.mxu0 %v293_v21  ;;  %333 = vmatprep.mubr.bf16.mxu0 %v2043_v1 }
  0x90   : > { %1923 = vmatmul.mubr.msk.bf16.vlgmr.msra.gmra.mxu1 %vm194_vm2, %v174_v23  ;;  %1819 = vmatprep.subr.msk.bf16.mxu0 %vm198_vm1, %v2133_v24  ;;  %v492_v26 = vpop.permute.xlu0 %491 }
  0x91   : > { %1927 = vmatpush3.bf16.msra.mxu1 %v2137_v25  ;;  %1928 = vmatprep.mubr.msk.bf16.mxu1 %vm2042_vm0, %v2041_v0  ;;  %v498_v34 = vsel %vm497_vm5, %v492_v26, %v494_v28 }
  0x92   : > { %1932 = vmatprep.subr.bf16.mxu1 %v2041_v0  ;;  %v2170_v35 = vsel %vm198_vm1, %v498_v34, 0  ;;  %v1153_v41 = vpop.permute.xlu1 %1152 }
  0x94   : > { %v496_v30 = vpop.permute.xlu0 %495 }
  0x95   : > { %v2154_v32 = vsel %vm497_vm5, %v494_v28, %v496_v30  ;;  %v2158_v33 = vsel %vm198_vm1, %v496_v30, 0 }
  0x96   : > { %1816 = vmatmul.mubr.msk.bf16.vlgmr.msra.gmra.mxu0 %vm194_vm2, %v174_v23  ;;  %v1157_v44 = vpop.permute.xlu1 %1156 }
  0x97   : > { %420 = vmatpush1.bf16.msra.mxu0 %v2149_v29  ;;  %437 = vmatprep.mubr.bf16.mxu0 %v2043_v1  ;;  %v1171_v48 = vsel %vm198_vm1, %v1157_v44, 0 }
  0x98   : > { %1929 = vmatmul.mubr.msk.bf16.vlgmr.msra.gmra.mxu1 %vm194_vm2, %v1818_v31  ;;  %1823 = vmatprep.subr.msk.bf16.mxu0 %vm198_vm1, %v2154_v32  ;;  %v1155_v43 = vpop.permute.xlu0 %1154 }
  0x99   : > { %1933 = vmatpush3.bf16.msra.mxu1 %v2158_v33  ;;  %1934 = vmatprep.mubr.msk.bf16.mxu1 %vm2042_vm0, %v2041_v0  ;;  %v1160_v47 = vsel %vm1158_vm6, %v1155_v43, %v1157_v44  ;;  %v1159_v49 = vsel %vm1158_vm6, %v1153_v41, %v1155_v43 }
  0x9a   : > { %1938 = vmatprep.subr.bf16.mxu1 %v2041_v0  ;;  %v1262_v50 = vpop.permute.xlu1 %1261  ;;  %v1165_v52 = vsel %vm198_vm1, %v1159_v49, 0 }
  0x9c   : > { %v1260_v45 = vpop.permute.xlu0 %1259 }
  0x9d   : > { %v1266_v56 = vsel %vm1265_vm7, %v1260_v45, %v1262_v50 }
  0x9e   : > { %1820 = vmatmul.mubr.msk.bf16.vlgmr.msra.gmra.mxu0 %vm194_vm2, %v1818_v31  ;;  %v1272_v57 = vsel %vm198_vm1, %v1266_v56, 0 }
  0x9f   : > { %527 = vmatpush1.bf16.msra.mxu0 %v2170_v35  ;;  %544 = vmatprep.mubr.bf16.mxu0 %v2043_v1 }
  0xa0   : > { %1828 = vmatprep.subr.msk.bf16.mxu0 %vm198_vm1, %v193_v17  ;;  %1935 = vmatmul.mubr.msk.bf16.vlgmr.msra.gmra.mxu1 %vm194_vm2, %v1822_v36  ;;  %v1264_v51 = vpop.permute.xlu0 %1263 }
  0xa1   : > { %1939 = vmatpush3.bf16.msra.mxu1 %v2100_v9  ;;  %1940 = vmatprep.mubr.msk.bf16.mxu1 %vm2042_vm0, %v2041_v0  ;;  %v1267_v54 = vsel %vm1265_vm7, %v1262_v50, %v1264_v51  ;;  %v1278_v55 = vsel %vm198_vm1, %v1264_v51, 0 }
  0xa2   : > { %1944 = vmatprep.subr.bf16.mxu1 %v2041_v0 }
  0xa6   : > { %1824 = vmatmul.mubr.msk.bf16.vlgmr.msra.gmra.mxu0 %vm194_vm2, %v1822_v36 }
  0xa7   : > { %634 = vmatpush1.bf16.msra.mxu0 %v200_v19  ;;  %651 = vmatprep.mubr.bf16.mxu0 %v2043_v1  ;;  %v600_v22 = vpop.permute.xlu1 %599 }
  0xa8   : > { %1941 = vmatmul.mubr.msk.bf16.vlgmr.msra.gmra.mxu1 %vm194_vm2, %v1827_v37  ;;  %1831 = vmatprep.subr.msk.bf16.mxu0 %vm198_vm1, %v2089_v5 }
  0xa9   : > { %1945 = vmatpush3.bf16.msra.mxu1 %v2108_v11  ;;  %1946 = vmatprep.mubr.msk.bf16.mxu1 %vm2042_vm0, %v2041_v0 }
  0xaa   : > { %1950 = vmatprep.subr.bf16.mxu1 %v2041_v0 }
  0xae   : > { %1829 = vmatmul.mubr.msk.bf16.vlgmr.msra.gmra.mxu0 %vm194_vm2, %v1827_v37 }
  0xaf   : > { %718 = vmatpush1.bf16.msra.mxu0 %v293_v21  ;;  %735 = vmatprep.mubr.bf16.mxu0 %v2043_v1 }
  0xb0   : > { %1835 = vmatprep.subr.msk.bf16.mxu0 %vm198_vm1, %v2133_v24  ;;  %1947 = vmatmul.mubr.msk.bf16.vlgmr.msra.gmra.mxu1 %vm194_vm2, %v1826_v38 }
  0xb1   : > { %1951 = vmatpush3.bf16.msra.mxu1 %v2137_v25  ;;  %1952 = vmatprep.mubr.msk.bf16.mxu1 %vm2042_vm0, %v2041_v0 }
  0xb2   : > { %1956 = vmatprep.subr.bf16.mxu1 %v2041_v0 }
  0xb6   : > { %1832 = vmatmul.mubr.msk.bf16.vlgmr.msra.gmra.mxu0 %vm194_vm2, %v1826_v38 }
  0xb7   : > { %804 = vmatpush1.bf16.msra.mxu0 %v2149_v29  ;;  %821 = vmatprep.mubr.bf16.mxu0 %v2043_v1 }
  0xb8   : > { %1839 = vmatprep.subr.msk.bf16.mxu0 %vm198_vm1, %v2154_v32  ;;  %1953 = vmatmul.mubr.msk.bf16.vlgmr.msra.gmra.mxu1 %vm194_vm2, %v1834_v39 }
  0xb9   : > { %1957 = vmatpush3.bf16.msra.mxu1 %v2158_v33  ;;  %1958 = vmatprep.mubr.msk.bf16.mxu1 %vm2042_vm0, %v2041_v0 }
  0xba   : > { %1962 = vmatprep.subr.bf16.mxu1 %v2041_v0 }
  0xbe   : > { %1836 = vmatmul.mubr.msk.bf16.vlgmr.msra.gmra.mxu0 %vm194_vm2, %v1834_v39 }
  0xbf   : > { %893 = vmatpush1.bf16.msra.mxu0 %v2170_v35  ;;  %910 = vmatprep.mubr.bf16.mxu0 %v2043_v1 }
  0xc0   : > { %1846 = vmatprep.subr.msk.bf16.mxu0 %vm198_vm1, %v2154_v32  ;;  %1959 = vmatmul.mubr.msk.bf16.vlgmr.msra.gmra.mxu1 %vm194_vm2, %v1838_v40 }
  0xc1   : > { %1963 = vmatpush3.bf16.msra.mxu1 %v2158_v33  ;;  %1964 = vmatprep.mubr.msk.bf16.mxu1 %vm2042_vm0, %v2041_v0 }
  0xc2   : > { %1968 = vmatprep.subr.bf16.mxu1 %v2041_v0 }
  0xc6   : > { %1840 = vmatmul.mubr.msk.bf16.vlgmr.msra.gmra.mxu0 %vm194_vm2, %v1838_v40 }
  0xc7   : > { %1000 = vmatpush1.bf16.msra.mxu0 %v2170_v35  ;;  %1017 = vmatprep.mubr.bf16.mxu0 %v2043_v1 }
  0xc8   : > { %1849 = vmatprep.subr.msk.bf16.mxu0 %vm198_vm1, %v2133_v24  ;;  %1965 = vmatmul.mubr.msk.bf16.vlgmr.msra.gmra.mxu1 %vm194_vm2, %v1845_v42 }
  0xc9   : > { %1969 = vmatpush3.bf16.msra.mxu1 %v2137_v25  ;;  %1970 = vmatprep.mubr.msk.bf16.mxu1 %vm2042_vm0, %v2041_v0 }
  0xca   : > { %1974 = vmatprep.subr.bf16.mxu1 %v2041_v0 }
  0xce   : > { %1847 = vmatmul.mubr.msk.bf16.vlgmr.msra.gmra.mxu0 %vm194_vm2, %v1845_v42 }
  0xcf   : > { %1084 = vmatpush1.bf16.msra.mxu0 %v2149_v29  ;;  %1101 = vmatprep.mubr.bf16.mxu0 %v2043_v1 }
  0xd0   : > { %1971 = vmatmul.mubr.msk.bf16.vlgmr.msra.gmra.mxu1 %vm194_vm2, %v1844_v46  ;;  %1853 = vmatprep.subr.msk.bf16.mxu0 %vm198_vm1, %v1160_v47 }
  0xd1   : > { %1975 = vmatpush3.bf16.msra.mxu1 %v1171_v48  ;;  %1976 = vmatprep.mubr.msk.bf16.mxu1 %vm2042_vm0, %v2041_v0 }
  0xd2   : > { %1980 = vmatprep.subr.bf16.mxu1 %v2041_v0 }
  0xd6   : > { %1850 = vmatmul.mubr.msk.bf16.vlgmr.msra.gmra.mxu0 %vm194_vm2, %v1844_v46 }
  0xd7   : > { %1188 = vmatpush1.bf16.msra.mxu0 %v1165_v52  ;;  %1205 = vmatprep.mubr.bf16.mxu0 %v2043_v1 }
  0xd8   : > { %1977 = vmatmul.mubr.msk.bf16.vlgmr.msra.gmra.mxu1 %vm194_vm2, %v1852_v53  ;;  %1857 = vmatprep.subr.msk.bf16.mxu0 %vm198_vm1, %v1267_v54 }
  0xd9   : > { %1981 = vmatpush3.bf16.msra.mxu1 %v1278_v55  ;;  %1982 = vmatprep.mubr.msk.bf16.mxu1 %vm2042_vm0, %v2041_v0 }
  0xda   : > { %1986 = vmatprep.subr.bf16.mxu1 %v2041_v0 }
  0xde   : > { %1854 = vmatmul.mubr.msk.bf16.vlgmr.msra.gmra.mxu0 %vm194_vm2, %v1852_v53 }
  0xdf   : > { %1295 = vmatpush1.bf16.msra.mxu0 %v1272_v57  ;;  %1312 = vmatprep.mubr.bf16.mxu0 %v2043_v1 }
  0xe0   : > { %1864 = vmatprep.subr.msk.bf16.mxu0 %vm198_vm1, %v2154_v32  ;;  %1983 = vmatmul.mubr.msk.bf16.vlgmr.msra.gmra.mxu1 %vm194_vm2, %v1856_v58 }
  0xe1   : > { %1987 = vmatpush3.bf16.msra.mxu1 %v2158_v33  ;;  %1988 = vmatprep.mubr.msk.bf16.mxu1 %vm2042_vm0, %v2041_v0 }
  0xe2   : > { %1992 = vmatprep.subr.bf16.mxu1 %v2041_v0 }
  0xe6   : > { %1858 = vmatmul.mubr.msk.bf16.vlgmr.msra.gmra.mxu0 %vm194_vm2, %v1856_v58 }
  0xe7   : > { %1402 = vmatpush1.bf16.msra.mxu0 %v2170_v35  ;;  %1419 = vmatprep.mubr.bf16.mxu0 %v2043_v1 }
  0xe8   : > { %1867 = vmatprep.subr.msk.bf16.mxu0 %vm198_vm1, %v2133_v24  ;;  %1989 = vmatmul.mubr.msk.bf16.vlgmr.msra.gmra.mxu1 %vm194_vm2, %v1863_v59 }
  0xe9   : > { %1993 = vmatpush3.bf16.msra.mxu1 %v2137_v25  ;;  %1994 = vmatprep.mubr.msk.bf16.mxu1 %vm2042_vm0, %v2041_v0 }
  0xea   : > { %1998 = vmatprep.subr.bf16.mxu1 %v2041_v0 }
  0xee   : > { %1865 = vmatmul.mubr.msk.bf16.vlgmr.msra.gmra.mxu0 %vm194_vm2, %v1863_v59 }
  0xef   : > { %1486 = vmatpush1.bf16.msra.mxu0 %v2149_v29  ;;  %1503 = vmatprep.mubr.bf16.mxu0 %v2043_v1 }
  0xf0   : > { %1871 = vmatprep.subr.msk.bf16.mxu0 %vm198_vm1, %v1160_v47  ;;  %1995 = vmatmul.mubr.msk.bf16.vlgmr.msra.gmra.mxu1 %vm194_vm2, %v1862_v60 }
  0xf1   : > { %1999 = vmatpush3.bf16.msra.mxu1 %v1171_v48  ;;  %2000 = vmatprep.mubr.msk.bf16.mxu1 %vm2042_vm0, %v2041_v0 }
  0xf2   : > { %2004 = vmatprep.subr.bf16.mxu1 %v2041_v0 }
  0xf6   : > { %1868 = vmatmul.mubr.msk.bf16.vlgmr.msra.gmra.mxu0 %vm194_vm2, %v1862_v60 }
  0xf7   : > { %1572 = vmatpush1.bf16.msra.mxu0 %v1165_v52  ;;  %1589 = vmatprep.mubr.bf16.mxu0 %v2043_v1 }
  0xf8   : > { %1875 = vmatprep.subr.msk.bf16.mxu0 %vm198_vm1, %v1267_v54  ;;  %2001 = vmatmul.mubr.msk.bf16.vlgmr.msra.gmra.mxu1 %vm194_vm2, %v1870_v61 }
  0xf9   : > { %2005 = vmatpush3.bf16.msra.mxu1 %v1278_v55  ;;  %2006 = vmatprep.mubr.msk.bf16.mxu1 %vm2042_vm0, %v2041_v0 }
  0xfe   : > { %1872 = vmatmul.mubr.msk.bf16.vlgmr.msra.gmra.mxu0 %vm194_vm2, %v1870_v61 }
  0xff   : > { %1661 = vmatpush1.bf16.msra.mxu0 %v1272_v57  ;;  %1678 = vmatprep.mubr.bf16.mxu0 %v2043_v1 }
 0x100   : > { %2007 = vmatmul.mubr.msk.bf16.vlgmr.msra.gmra.mxu1 %vm194_vm2, %v1874_v62 }
 0x106   : > { %1876 = vmatmul.mubr.msk.bf16.vlgmr.msra.gmra.mxu0 %vm194_vm2, %v1874_v62 }
 0x147   : > { %v283_v63 = vpop.f32.mrf.mxu1 }
 0x149   : > { %v1918_v2 = vpop.f32.mrf.mxu1 }
 0x14b   : > { %v286_v3 = vpop.f32.mrf.mxu1 }
 0x14d   : > { %v1919_v5 = vpop.f32.mrf.mxu1 }
 0x14e   : > { %v242_v4 = vpop.f32.mrf.mxu0 }
 0x150   : > { %v244_v0 = vpop.f32.mrf.mxu0  ;;  %v376_v6 = vpop.f32.mrf.mxu1 }
 0x151   : > { %v377_v18 = vadd.f32 %v376_v6, %v283_v63 }
 0x152   : > { %v246_v7 = vpop.f32.mrf.mxu0  ;;  %v1924_v8 = vpop.f32.mrf.mxu1 }
 0x154   : > { %v247_v9 = vpop.f32.mrf.mxu0  ;;  %v379_v10 = vpop.f32.mrf.mxu1 }
 0x156   : > { %v335_v11 = vpop.f32.mrf.mxu0  ;;  %v1925_v12 = vpop.f32.mrf.mxu1 }
 0x157   : > { %v336_v28 = vadd.f32 %v335_v11, %v242_v4 }
 0x158   : > { %v337_v13 = vpop.f32.mrf.mxu0  ;;  %v480_v1 = vpop.f32.mrf.mxu1 }
 0x159   : > { %v488_v21 = vadd.f32 %v480_v1, %v377_v18  ;;  %v338_v32 = vadd.f32 %v337_v13, %v244_v0  ;;  %v966_v0 = vpop.permute.xlu0 %965 }
 0x15a   : > { %v339_v14 = vpop.f32.mrf.mxu0  ;;  %v1930_v15 = vpop.f32.mrf.mxu1 }
 0x15c   : > { %v340_v16 = vpop.f32.mrf.mxu0  ;;  %v483_v17 = vpop.f32.mrf.mxu1 }
 0x15e   : > { %v439_v19 = vpop.f32.mrf.mxu0  ;;  %v1931_v20 = vpop.f32.mrf.mxu1 }
 0x15f   : > { %v486_v33 = vadd.f32 %v439_v19, %v336_v28 }
 0x160   : > { %v441_v23 = vpop.f32.mrf.mxu0  ;;  %v587_v24 = vpop.f32.mrf.mxu1 }
 0x161   : > { %v595_v25 = vadd.f32 %v587_v24, %v488_v21  ;;  %v487_v36 = vadd.f32 %v441_v23, %v338_v32 }
 0x162   : > { %v443_v26 = vpop.f32.mrf.mxu0  ;;  %v1936_v27 = vpop.f32.mrf.mxu1 }
 0x163   : > { %v604_v29 = vadd.f32 %v600_v22, %v595_v25 }
 0x164   : > { %v444_v30 = vpop.f32.mrf.mxu0  ;;  %v590_v31 = vpop.f32.mrf.mxu1 }
 0x165   : > { %611 = vst.msk [vmem:[%s2328_s16 + $0x8] sm:$0xf] %vm610_vm8, %v604_v29 }
 0x166   : > { %v546_v34 = vpop.f32.mrf.mxu0  ;;  %v1937_v35 = vpop.f32.mrf.mxu1 }
 0x167   : > { %v593_v37 = vadd.f32 %v546_v34, %v486_v33 }
 0x168   : > { %v548_v38 = vpop.f32.mrf.mxu0  ;;  %v694_v39 = vpop.f32.mrf.mxu1 }
 0x169   : > { %v594_v40 = vadd.f32 %v548_v38, %v487_v36  ;;  %v602_v43 = vadd.f32 %v600_v22, %v593_v37 }
 0x16a   : > { %v550_v41 = vpop.f32.mrf.mxu0  ;;  %v1942_v42 = vpop.f32.mrf.mxu1 }
 0x16b   : > { %v603_v44 = vadd.f32 %v600_v22, %v594_v40 }
 0x16c   : > { %v551_v45 = vpop.f32.mrf.mxu0  ;;  %v697_v46 = vpop.f32.mrf.mxu1 }
 0x16d   : > { %v607_v47 = vcombine.low %v602_v43, %v603_v44 }
 0x16e   : > { %v653_v48 = vpop.f32.mrf.mxu0  ;;  %v1943_v49 = vpop.f32.mrf.mxu1 }
 0x16f   : > { %609 = vst [vmem:[%s2328_s16] sm:$0xff] %v607_v47 }
 0x170   : > { %v655_v50 = vpop.f32.mrf.mxu0  ;;  %v778_v51 = vpop.f32.mrf.mxu1 }
 0x171   : > { %v779_v2 = vadd.f32 %v778_v51, %v694_v39 }
 0x172   : > { %v657_v52 = vpop.f32.mrf.mxu0  ;;  %v1948_v53 = vpop.f32.mrf.mxu1 }
 0x174   : > { %v658_v54 = vpop.f32.mrf.mxu0  ;;  %v781_v55 = vpop.f32.mrf.mxu1 }
 0x176   : > { %v737_v56 = vpop.f32.mrf.mxu0  ;;  %v1949_v57 = vpop.f32.mrf.mxu1 }
 0x177   : > { %v738_v11 = vadd.f32 %v737_v56, %v653_v48 }
 0x178   : > { %v739_v58 = vpop.f32.mrf.mxu0  ;;  %v864_v59 = vpop.f32.mrf.mxu1 }
 0x179   : > { %v872_v5 = vadd.f32 %v864_v59, %v779_v2  ;;  %v740_v14 = vadd.f32 %v739_v58, %v655_v50  ;;  %v1368_v50 = vpop.permute.xlu1 %1367 }
 0x17a   : > { %v741_v60 = vpop.f32.mrf.mxu0  ;;  %v1954_v61 = vpop.f32.mrf.mxu1 }
 0x17c   : > { %v742_v62 = vpop.f32.mrf.mxu0  ;;  %v867_v63 = vpop.f32.mrf.mxu1 }
 0x17e   : > { %v823_v3 = vpop.f32.mrf.mxu0  ;;  %v1955_v4 = vpop.f32.mrf.mxu1 }
 0x17f   : > { %v870_v15 = vadd.f32 %v823_v3, %v738_v11 }
 0x180   : > { %v825_v6 = vpop.f32.mrf.mxu0  ;;  %v953_v7 = vpop.f32.mrf.mxu1 }
 0x181   : > { %v961_v8 = vadd.f32 %v953_v7, %v872_v5  ;;  %v871_v18 = vadd.f32 %v825_v6, %v740_v14 }
 0x182   : > { %v827_v9 = vpop.f32.mrf.mxu0  ;;  %v1960_v10 = vpop.f32.mrf.mxu1 }
 0x183   : > { %v970_v12 = vadd.f32 %v966_v0, %v961_v8 }
 0x184   : > { %v828_v13 = vpop.f32.mrf.mxu0  ;;  %v956_v1 = vpop.f32.mrf.mxu1 }
 0x185   : > { %1843 = vst.msk [vmem:[%s2328_s16 + $0x14] sm:$0xf] %vm610_vm8, %v970_v12 }
 0x186   : > { %v912_v16 = vpop.f32.mrf.mxu0  ;;  %v1961_v17 = vpop.f32.mrf.mxu1 }
 0x187   : > { %v959_v19 = vadd.f32 %v912_v16, %v870_v15 }
 0x188   : > { %v914_v20 = vpop.f32.mrf.mxu0  ;;  %v1060_v21 = vpop.f32.mrf.mxu1 }
 0x189   : > { %v960_v22 = vadd.f32 %v914_v20, %v871_v18  ;;  %v968_v25 = vadd.f32 %v966_v0, %v959_v19 }
 0x18a   : > { %v916_v23 = vpop.f32.mrf.mxu0  ;;  %v1966_v24 = vpop.f32.mrf.mxu1 }
 0x18b   : > { %v969_v26 = vadd.f32 %v966_v0, %v960_v22 }
 0x18c   : > { %v917_v27 = vpop.f32.mrf.mxu0  ;;  %v1063_v28 = vpop.f32.mrf.mxu1 }
 0x18d   : > { %v973_v29 = vcombine.low %v968_v25, %v969_v26 }
 0x18e   : > { %v1019_v30 = vpop.f32.mrf.mxu0  ;;  %v1967_v31 = vpop.f32.mrf.mxu1 }
 0x18f   : > { %1842 = vst [vmem:[%s2328_s16 + $0xc] sm:$0xff] %v973_v29 }
 0x190   : > { %v1021_v32 = vpop.f32.mrf.mxu0  ;;  %v1144_v33 = vpop.f32.mrf.mxu1 }
 0x191   : > { %v1145_v46 = vadd.f32 %v1144_v33, %v1060_v21 }
 0x192   : > { %v1023_v34 = vpop.f32.mrf.mxu0  ;;  %v1972_v35 = vpop.f32.mrf.mxu1 }
 0x194   : > { %v1024_v36 = vpop.f32.mrf.mxu0  ;;  %v1147_v37 = vpop.f32.mrf.mxu1 }
 0x196   : > { %v1103_v38 = vpop.f32.mrf.mxu0  ;;  %v1973_v39 = vpop.f32.mrf.mxu1 }
 0x197   : > { %v1104_v56 = vadd.f32 %v1103_v38, %v1019_v30 }
 0x198   : > { %v1105_v40 = vpop.f32.mrf.mxu0  ;;  %v1248_v41 = vpop.f32.mrf.mxu1 }
 0x199   : > { %v1256_v49 = vadd.f32 %v1248_v41, %v1145_v46  ;;  %v1106_v60 = vadd.f32 %v1105_v40, %v1021_v32  ;;  %v1734_v32 = vpop.permute.xlu1 %1733 }
 0x19a   : > { %v1107_v42 = vpop.f32.mrf.mxu0  ;;  %v1978_v43 = vpop.f32.mrf.mxu1 }
 0x19c   : > { %v1108_v44 = vpop.f32.mrf.mxu0  ;;  %v1251_v45 = vpop.f32.mrf.mxu1 }
 0x19e   : > { %v1207_v47 = vpop.f32.mrf.mxu0  ;;  %v1979_v48 = vpop.f32.mrf.mxu1 }
 0x19f   : > { %v1254_v61 = vadd.f32 %v1207_v47, %v1104_v56 }
 0x1a0   : > { %v1209_v51 = vpop.f32.mrf.mxu0  ;;  %v1355_v52 = vpop.f32.mrf.mxu1 }
 0x1a1   : > { %v1363_v53 = vadd.f32 %v1355_v52, %v1256_v49  ;;  %v1255_v2 = vadd.f32 %v1209_v51, %v1106_v60 }
 0x1a2   : > { %v1211_v54 = vpop.f32.mrf.mxu0  ;;  %v1984_v55 = vpop.f32.mrf.mxu1 }
 0x1a3   : > { %v1372_v57 = vadd.f32 %v1368_v50, %v1363_v53 }
 0x1a4   : > { %v1212_v58 = vpop.f32.mrf.mxu0  ;;  %v1358_v59 = vpop.f32.mrf.mxu1 }
 0x1a5   : > { %1861 = vst.msk [vmem:[%s2328_s16 + $0x20] sm:$0xf] %vm610_vm8, %v1372_v57 }
 0x1a6   : > { %v1314_v62 = vpop.f32.mrf.mxu0  ;;  %v1985_v63 = vpop.f32.mrf.mxu1 }
 0x1a7   : > { %v1361_v3 = vadd.f32 %v1314_v62, %v1254_v61 }
 0x1a8   : > { %v1316_v4 = vpop.f32.mrf.mxu0  ;;  %v1462_v5 = vpop.f32.mrf.mxu1 }
 0x1a9   : > { %v1362_v0 = vadd.f32 %v1316_v4, %v1255_v2  ;;  %v1370_v8 = vadd.f32 %v1368_v50, %v1361_v3 }
 0x1aa   : > { %v1318_v6 = vpop.f32.mrf.mxu0  ;;  %v1990_v7 = vpop.f32.mrf.mxu1 }
 0x1ab   : > { %v1371_v9 = vadd.f32 %v1368_v50, %v1362_v0 }
 0x1ac   : > { %v1319_v10 = vpop.f32.mrf.mxu0  ;;  %v1465_v11 = vpop.f32.mrf.mxu1 }
 0x1ad   : > { %v1375_v12 = vcombine.low %v1370_v8, %v1371_v9 }
 0x1ae   : > { %v1421_v13 = vpop.f32.mrf.mxu0  ;;  %v1991_v1 = vpop.f32.mrf.mxu1 }
 0x1af   : > { %1860 = vst [vmem:[%s2328_s16 + $0x18] sm:$0xff] %v1375_v12 }
 0x1b0   : > { %v1423_v14 = vpop.f32.mrf.mxu0  ;;  %v1546_v15 = vpop.f32.mrf.mxu1 }
 0x1b1   : > { %v1547_v28 = vadd.f32 %v1546_v15, %v1462_v5 }
 0x1b2   : > { %v1425_v16 = vpop.f32.mrf.mxu0  ;;  %v1996_v17 = vpop.f32.mrf.mxu1 }
 0x1b4   : > { %v1426_v18 = vpop.f32.mrf.mxu0  ;;  %v1549_v19 = vpop.f32.mrf.mxu1 }
 0x1b6   : > { %v1505_v20 = vpop.f32.mrf.mxu0  ;;  %v1997_v21 = vpop.f32.mrf.mxu1 }
 0x1b7   : > { %v1506_v38 = vadd.f32 %v1505_v20, %v1421_v13 }
 0x1b8   : > { %v1507_v22 = vpop.f32.mrf.mxu0  ;;  %v1632_v23 = vpop.f32.mrf.mxu1 }
 0x1b9   : > { %v1640_v31 = vadd.f32 %v1632_v23, %v1547_v28  ;;  %v1508_v42 = vadd.f32 %v1507_v22, %v1423_v14 }
 0x1ba   : > { %v1509_v24 = vpop.f32.mrf.mxu0  ;;  %v2002_v25 = vpop.f32.mrf.mxu1 }
 0x1bc   : > { %v1510_v26 = vpop.f32.mrf.mxu0  ;;  %v1635_v27 = vpop.f32.mrf.mxu1 }
 0x1be   : > { %v1591_v29 = vpop.f32.mrf.mxu0  ;;  %v2003_v30 = vpop.f32.mrf.mxu1 }
 0x1bf   : > { %v1638_v43 = vadd.f32 %v1591_v29, %v1506_v38 }
 0x1c0   : > { %v1593_v33 = vpop.f32.mrf.mxu0  ;;  %v1721_v34 = vpop.f32.mrf.mxu1 }
 0x1c1   : > { %v1729_v35 = vadd.f32 %v1721_v34, %v1640_v31  ;;  %v1639_v46 = vadd.f32 %v1593_v33, %v1508_v42 }
 0x1c2   : > { %v1595_v36 = vpop.f32.mrf.mxu0  ;;  %v2008_v37 = vpop.f32.mrf.mxu1 }
 0x1c3   : > { %v1738_v39 = vadd.f32 %v1734_v32, %v1729_v35 }
 0x1c4   : > { %v1596_v40 = vpop.f32.mrf.mxu0  ;;  %v1724_v41 = vpop.f32.mrf.mxu1 }
 0x1c5   : > { %1879 = vst.msk [vmem:[%s2328_s16 + $0x2c] sm:$0xf] %vm610_vm8, %v1738_v39 }
 0x1c6   : > { %v1680_v44 = vpop.f32.mrf.mxu0  ;;  %v2009_v45 = vpop.f32.mrf.mxu1 }
 0x1c7   : > { %v1727_v47 = vadd.f32 %v1680_v44, %v1638_v43 }
 0x1c8   : > { %v1682_v48 = vpop.f32.mrf.mxu0 }
 0x1c9   : > { %v1728_v49 = vadd.f32 %v1682_v48, %v1639_v46  ;;  %v1736_v51 = vadd.f32 %v1734_v32, %v1727_v47 }
 0x1ca   : > { %v1684_v50 = vpop.f32.mrf.mxu0 }
 0x1cb   : > { %v1737_v52 = vadd.f32 %v1734_v32, %v1728_v49 }
 0x1cc   : > { %v1685_v53 = vpop.f32.mrf.mxu0 }
 0x1cd   : > { %v1741_v54 = vcombine.low %v1736_v51, %v1737_v52 }
 0x1cf   : > { %1878 = vst [vmem:[%s2328_s16 + $0x24] sm:$0xff] %v1741_v54 }
 0x1d0 PF: > { %s13_s12 = sadd.s32 1, %s2039_s12  }
 0x1d1   : > { %p10_p4 = scmp.ge.s32.totalorder %s13_s12, 4  }
 0x1d3   :  { %12 = sbr.rel (!%p10_p4) target bundleno = 1 (0x1), region = 80 }

// kernel: unet_up_forward.4
= control target key start
LH: loop header
LB: loop body
LE: loop exit
PB: predicated region body
PF: predicated region fallthrough
CT: control target
= control target key end

     0   :  { %s5702_s18 = smov 0   ;;  %s6964_s0 = inlined_call_operand.vmem [shape: bf16[2,4,1190], index: 0, kind: input, shape index: {}]   ;;  %s6965_s1 = inlined_call_operand.vmem [shape: bf16[2,4,1190], index: 1, kind: input, shape index: {}]   ;;  %s6966_s2 = inlined_call_operand.vmem [shape: bf16[9,4,4], index: 2, kind: input, shape index: {}]   ;;  %s6967_s3 = inlined_call_operand.vmem [shape: bf16[9,4,4], index: 3, kind: input, shape index: {}]   ;;  %s6968_s4 = inlined_call_operand.vmem [shape: f32[4,1], index: 4, kind: input, shape index: {}]   ;;  %s6969_s5 = inlined_call_operand.vmem [shape: f32[2,4,1088], index: 5, kind: output, shape index: {}]  }
   0x1 LB: > { %s5289_s19 = sadd.s32 4294967295, %s5658_s18   ;;  %p5293_p0 = scmp.ge.s32.totalorder %s5658_s18, 1  ;;  %s5658_s18 = sphi %s5702_s18, %s15_s18  }
   0x2   : > { %p197_p1 = scmp.lt.s32.totalorder %s5658_s18, 3 }
   0x4   : > { %p198_p2 = pnand %p5293_p0, %p197_p1 }
   0x5   : > { %p230_p3 = scmp.lt.s32.totalorder (!%p198_p2), %s5289_s19, 1  ;;  %s5662_s27 = smov (!%p198_p2), 127  }
   0x6   : > { %201 = sbr.rel (%p198_p2) target bundleno = 660 (0x294), region = 40  ;;  %s5665_s7 = smov (!%p198_p2), 126  }
   0x7   : > { %s5666_s8 = smov (!%p198_p2), 94   ;;  %s5667_s9 = smov (!%p198_p2), 93  }
   0x8   : > { %s5668_s14 = smov (!%p198_p2), 92   ;;  %s5669_s21 = smov (!%p198_p2), 60  }
   0x9   : > { %s5670_s28 = smov (!%p198_p2), 59  }
   0xb   : > { %v261_v0 = vlaneseq  ;;  %v5660_v1 = vmov 1983009808   ;;  %v5661_v3 = vmov 0   ;;  %s6971_s19 = smov (!%p230_p3, %s5289_s19), 1  ;;  %vm302_vm0 = vcmask 1041408  }
   0xc   : > { %v259_v2 = vunpack.c.l.s4 %v5660_v1  ;;  %362 = vmatprep.mubr.bf16.mxu0 %v5661_v3  ;;  %403 = vmatprep.mubr.bf16.mxu1 %v5661_v3  ;;  %s5623_s20 = smul.u32 20, %s6971_s19  ;;  %v253_v29 = vld [vmem:[%s6967_s3] sm:$0x3]  ;;  %vm298_vm1 = vcmask 31744   ;;  %v5663_v36 = vmov 0.0   ;;  %vm5664_vm2 = vmmov 0  }
   0xd   : > { %v262_v4 = vshrl.u32 %v261_v0, 7  ;;  %5645 = vset.pattern.permute.xlu0 %v5661_v3  ;;  %v252_v42 = vld [vmem:[%s6966_s2] sm:$0x3]  ;;  %vm832_vm3 = vcmask 1039360   ;;  %v5317_v54 = vld [vmem:[%s6966_s2 + $0x2] sm:$0x3] }
   0xe   : > { %v260_v5 = vunpack.c.0.s8 %v259_v2  ;;  %s5719_s23 = scalar_lea.vmem %s6964_s0, %s5623_s20  ;;  %s5724_s26 = scalar_lea.vmem %s6965_s1, %s5623_s20  ;;  %vm1375_vm4 = vcmask 1031168   ;;  %vm1918_vm5 = vcmask 769024   ;;  %vm2461_vm6 = vcmask 760832  }
   0xf   : > { %v246_v7 = vld [vmem:[%s5719_s23] sm:$0xff]  ;;  %v250_v11 = vld [vmem:[%s5724_s26 + $0x8] sm:$0xff]  ;;  %v5817_v37 = vld.sshfl [vmem:[%s5724_s26 + $0x10] sm:$0x33 pattern:$0x76325410] }
  0x10   : > { %v263_v6 = vsub.s32 %v260_v5, %v262_v4  ;;  %v537_v9 = vcombine.high %v246_v7, %v246_v7  ;;  %v249_v10 = vld [vmem:[%s5724_s26] sm:$0xff]  ;;  %v247_v12 = vld [vmem:[%s5719_s23 + $0x8] sm:$0xff]  ;;  %v274_v16 = vcombine.high %v250_v11, %v250_v11  ;;  %v5822_v38 = vld.sshfl [vmem:[%s5719_s23 + $0x10] sm:$0x33 pattern:$0x76325410] }
  0x11   : > { %v257_v14 = vcombine.high %v249_v10, %v249_v10  ;;  %v554_v24 = vcombine.high %v247_v12, %v247_v12  ;;  %v328_v39 = vsel %vm302_vm0, %v5817_v37, 0  ;;  %v606_v45 = vsel %vm302_vm0, %v5822_v38, 0  ;;  %s5624_s29 = smul.u32 36, %s6971_s19 }
  0x12   : > { %v5727_v8 = vrot.slane %v246_v7, %v263_v6  ;;  %v5732_v13 = vrot.slane %v249_v10, %v263_v6  ;;  %v5734_v15 = vrot.slane %v250_v11, %v263_v6  ;;  %v5738_v17 = vrot.slane %v537_v9, %v263_v6 }
  0x13   : > { %v5748_v20 = vrot.slane %v257_v14, %v263_v6  ;;  %v5750_v21 = vrot.slane %v274_v16, %v263_v6  ;;  %v5758_v23 = vrot.slane %v247_v12, %v263_v6  ;;  %v5795_v33 = vrot.slane %v554_v24, %v263_v6  ;;  %s6942_s6 = scalar_lea.vmem %s6969_s5, %s5624_s29 }
  0x14   : > { %814 = vrot.lane.b32.xlu0 %v5727_v8, %s5662_s27  ;;  %v5742_v18 = vcombine.high %v5727_v8, %v5727_v8  ;;  %v5746_v19 = vcombine.high %v5732_v13, %v5732_v13  ;;  %818 = vrot.lane.b32.xlu1 %v5738_v17, %s5662_s27  ;;  %v5756_v22 = vcombine.high %v5738_v17, %v5738_v17  ;;  %v304_v25 = vsel %vm302_vm0, %v5732_v13, 0 }
  0x15   : > { %v5764_v26 = vcombine.high %v5748_v20, %v5748_v20  ;;  %v5768_v27 = vcombine.high %v5734_v15, %v5734_v15  ;;  %v310_v28 = vsel %vm302_vm0, %v5748_v20, 0  ;;  %v5781_v30 = vcombine.high %v5750_v21, %v5750_v21 }
  0x16   : > { %5298 = vmatprep.subr.msk.bf16.mxu0 %vm302_vm0, %v5746_v19  ;;  %v316_v31 = vsel %vm302_vm0, %v5734_v15, 0  ;;  %v5793_v32 = vcombine.high %v5758_v23, %v5758_v23  ;;  %v322_v34 = vsel %vm302_vm0, %v5750_v21, 0  ;;  %v5810_v35 = vcombine.high %v5795_v33, %v5795_v33 }
  0x17   : > { %345 = vmatpush1.bf16.msra.mxu0 %v304_v25  ;;  %5300 = vmatprep.subr.msk.bf16.mxu1 %vm302_vm0, %v5764_v26  ;;  %v582_v40 = vsel %vm302_vm0, %v5727_v8, 0  ;;  %v588_v41 = vsel %vm302_vm0, %v5738_v17, 0  ;;  %v594_v43 = vsel %vm302_vm0, %v5758_v23, 0  ;;  %v600_v44 = vsel %vm302_vm0, %v5795_v33, 0 }
  0x18   : > { %816 = vrot.lane.b32.xlu0 %v5742_v18, %s5662_s27  ;;  %5302 = vmatprep.subr.msk.bf16.mxu0 %vm302_vm0, %v5768_v27  ;;  %vm3004_vm7 = vcmask 752640   ;;  %vm3550_vm8 = vcmask 490496   ;;  %vm4100_vm9 = vcmask 482304   ;;  %vm4649_vm10 = vcmask 474112  }
  0x19   : > { %820 = vrot.lane.b32.xlu1 %v5756_v22, %s5662_s27  ;;  %386 = vmatpush1.bf16.msra.mxu1 %v310_v28  ;;  %v5327_v28 = vld [vmem:[%s6967_s3 + $0x2] sm:$0x3]  ;;  %vm5220_vm11 = vcmask 519168  }
  0x1a   : > { %5299 = vmatmul.mubr.msk.bf16.vlgmr.msra.gmra.mxu0 %vm298_vm1, %v253_v29  ;;  %5304 = vmatprep.subr.msk.bf16.mxu1 %vm302_vm0, %v5781_v30 }
  0x1b   : > { %427 = vmatpush1.bf16.msra.mxu0 %v316_v31  ;;  %444 = vmatprep.mubr.bf16.mxu0 %v5661_v3 }
  0x1c   : > { %822 = vrot.lane.b32.xlu0 %v5758_v23, %s5662_s27  ;;  %5301 = vmatmul.mubr.msk.bf16.vlgmr.msra.gmra.mxu1 %vm298_vm1, %v253_v29 }
  0x1d   : > { %824 = vrot.lane.b32.xlu1 %v5793_v32, %s5662_s27  ;;  %468 = vmatpush1.bf16.msra.mxu1 %v322_v34 }
  0x1e   : > { %485 = vmatprep.mubr.bf16.mxu1 %v5661_v3  ;;  %5515 = vmatprep.subr.bf16.mxu0 %v5663_v36 }
  0x1f   : > { %5308 = vmatprep.subr.msk.bf16.mxu1 %vm302_vm0, %v5742_v18 }
  0x20   : > { %826 = vrot.lane.b32.xlu0 %v5795_v33, %s5662_s27 }
  0x21   : > { %828 = vrot.lane.b32.xlu1 %v5810_v35, %s5662_s27 }
  0x22   : > { %5303 = vmatmul.mubr.msk.bf16.vlgmr.msra.gmra.mxu0 %vm298_vm1, %v253_v29 }
  0x23   : > { %5516 = vmatpush3.bf16.msra.mxu0 %v328_v39  ;;  %5517 = vmatprep.mubr.msk.bf16.mxu0 %vm5664_vm2, %v5663_v36 }
  0x24   : > { %830 = vrot.lane.b32.xlu0 %v5822_v38, %s5662_s27  ;;  %5305 = vmatmul.mubr.msk.bf16.vlgmr.msra.gmra.mxu1 %vm298_vm1, %v253_v29 }
  0x25   : > { %1086 = vrot.lane.b32.xlu1 %v5732_v13, %s5662_s27  ;;  %623 = vmatpush1.bf16.msra.mxu1 %v582_v40 }
  0x26   : > { %640 = vmatprep.mubr.bf16.mxu1 %v5661_v3  ;;  %5310 = vmatprep.subr.msk.bf16.mxu0 %vm302_vm0, %v5756_v22 }
  0x27   : > { %5312 = vmatprep.subr.msk.bf16.mxu1 %vm302_vm0, %v5793_v32 }
  0x28   : > { %1088 = vrot.lane.b32.xlu0 %v5746_v19, %s5662_s27 }
  0x29   : > { %1090 = vrot.lane.b32.xlu1 %v5748_v20, %s5662_s27 }
  0x2a   : > { %5518 = vmatmul.mubr.msk.bf16.vlgmr.msra.gmra.mxu0 %vm298_vm1, %v253_v29 }
  0x2b   : > { %664 = vmatpush1.bf16.msra.mxu0 %v588_v41  ;;  %681 = vmatprep.mubr.bf16.mxu0 %v5661_v3 }
  0x2c   : > { %1092 = vrot.lane.b32.xlu0 %v5764_v26, %s5662_s27  ;;  %5309 = vmatmul.mubr.msk.bf16.vlgmr.msra.gmra.mxu1 %vm298_vm1, %v252_v42 }
  0x2d   : > { %1094 = vrot.lane.b32.xlu1 %v5734_v15, %s5662_s27  ;;  %705 = vmatpush1.bf16.msra.mxu1 %v594_v43 }
  0x2e   : > { %722 = vmatprep.mubr.bf16.mxu1 %v5661_v3  ;;  %5314 = vmatprep.subr.msk.bf16.mxu0 %vm302_vm0, %v5810_v35 }
  0x2f   : > { %5521 = vmatprep.subr.bf16.mxu1 %v5663_v36 }
  0x30   : > { %1096 = vrot.lane.b32.xlu0 %v5768_v27, %s5662_s27 }
  0x31   : > { %1098 = vrot.lane.b32.xlu1 %v5750_v21, %s5662_s27 }
  0x32   : > { %5311 = vmatmul.mubr.msk.bf16.vlgmr.msra.gmra.mxu0 %vm298_vm1, %v252_v42 }
  0x33   : > { %746 = vmatpush1.bf16.msra.mxu0 %v600_v44  ;;  %763 = vmatprep.mubr.bf16.mxu0 %v5661_v3 }
  0x34   : > { %1100 = vrot.lane.b32.xlu0 %v5781_v30, %s5662_s27  ;;  %5313 = vmatmul.mubr.msk.bf16.vlgmr.msra.gmra.mxu1 %vm298_vm1, %v252_v42 }
  0x35   : > { %1102 = vrot.lane.b32.xlu1 %v5817_v37, %s5662_s27  ;;  %5522 = vmatpush3.bf16.msra.mxu1 %v606_v45 }
  0x36   : > { %5523 = vmatprep.mubr.msk.bf16.mxu1 %vm5664_vm2, %v5663_v36 }
  0x38   : > { %1357 = vrot.lane.b32.xlu0 %v5727_v8, %s5665_s7 }
  0x39   : > { %1359 = vrot.lane.b32.xlu1 %v5742_v18, %s5665_s7 }
  0x3a   : > { %5315 = vmatmul.mubr.msk.bf16.vlgmr.msra.gmra.mxu0 %vm298_vm1, %v252_v42 }
  0x3b   : > { %903 = vmatprep.mubr.bf16.mxu0 %v5661_v3 }
  0x3c   : > { %1361 = vrot.lane.b32.xlu0 %v5738_v17, %s5665_s7  ;;  %5524 = vmatmul.mubr.msk.bf16.vlgmr.msra.gmra.mxu1 %vm298_vm1, %v252_v42 }
  0x3d   : > { %1363 = vrot.lane.b32.xlu1 %v5756_v22, %s5665_s7  ;;  %944 = vmatprep.mubr.bf16.mxu1 %v5661_v3 }
  0x40   : > { %1365 = vrot.lane.b32.xlu0 %v5758_v23, %s5665_s7 }
  0x41   : > { %1367 = vrot.lane.b32.xlu1 %v5793_v32, %s5665_s7 }
  0x44   : > { %1369 = vrot.lane.b32.xlu0 %v5795_v33, %s5665_s7 }
  0x45   : > { %1371 = vrot.lane.b32.xlu1 %v5810_v35, %s5665_s7 }
  0x48   : > { %1373 = vrot.lane.b32.xlu0 %v5822_v38, %s5665_s7 }
  0x49   : > { %1629 = vrot.lane.b32.xlu1 %v5732_v13, %s5665_s7 }
  0x4c   : > { %1631 = vrot.lane.b32.xlu0 %v5746_v19, %s5665_s7 }
  0x4d   : > { %1633 = vrot.lane.b32.xlu1 %v5748_v20, %s5665_s7 }
  0x50   : > { %1635 = vrot.lane.b32.xlu0 %v5764_v26, %s5665_s7 }
  0x51   : > { %1637 = vrot.lane.b32.xlu1 %v5734_v15, %s5665_s7 }
  0x54   : > { %1639 = vrot.lane.b32.xlu0 %v5768_v27, %s5665_s7 }
  0x55   : > { %1641 = vrot.lane.b32.xlu1 %v5750_v21, %s5665_s7 }
  0x58   : > { %1643 = vrot.lane.b32.xlu0 %v5781_v30, %s5665_s7 }
  0x59   : > { %1645 = vrot.lane.b32.xlu1 %v5817_v37, %s5665_s7 }
  0x5c   : > { %1900 = vrot.lane.b32.xlu0 %v5727_v8, %s5666_s8 }
  0x5d   : > { %1902 = vrot.lane.b32.xlu1 %v5742_v18, %s5666_s8 }
  0x60   : > { %1904 = vrot.lane.b32.xlu0 %v5738_v17, %s5666_s8 }
  0x61   : > { %1906 = vrot.lane.b32.xlu1 %v5756_v22, %s5666_s8 }
  0x64   : > { %1908 = vrot.lane.b32.xlu0 %v5758_v23, %s5666_s8 }
  0x65   : > { %1910 = vrot.lane.b32.xlu1 %v5793_v32, %s5666_s8 }
  0x68   : > { %1912 = vrot.lane.b32.xlu0 %v5795_v33, %s5666_s8 }
  0x69   : > { %1914 = vrot.lane.b32.xlu1 %v5810_v35, %s5666_s8 }
  0x6c   : > { %1916 = vrot.lane.b32.xlu0 %v5822_v38, %s5666_s8 }
  0x6d   : > { %2172 = vrot.lane.b32.xlu1 %v5732_v13, %s5666_s8 }
  0x70   : > { %2174 = vrot.lane.b32.xlu0 %v5746_v19, %s5666_s8 }
  0x71   : > { %2176 = vrot.lane.b32.xlu1 %v5748_v20, %s5666_s8 }
  0x74   : > { %2178 = vrot.lane.b32.xlu0 %v5764_v26, %s5666_s8 }
  0x75   : > { %2180 = vrot.lane.b32.xlu1 %v5734_v15, %s5666_s8 }
  0x78   : > { %2182 = vrot.lane.b32.xlu0 %v5768_v27, %s5666_s8 }
  0x79   : > { %2184 = vrot.lane.b32.xlu1 %v5750_v21, %s5666_s8 }
  0x7c   : > { %2186 = vrot.lane.b32.xlu0 %v5781_v30, %s5666_s8 }
  0x7d   : > { %2188 = vrot.lane.b32.xlu1 %v5817_v37, %s5666_s8 }
  0x80   : > { %2443 = vrot.lane.b32.xlu0 %v5727_v8, %s5667_s9 }
  0x81   : > { %2445 = vrot.lane.b32.xlu1 %v5742_v18, %s5667_s9 }
  0x84   : > { %2447 = vrot.lane.b32.xlu0 %v5738_v17, %s5667_s9 }
  0x85   : > { %2449 = vrot.lane.b32.xlu1 %v5756_v22, %s5667_s9 }
  0x86   : > { %v815_v46 = vpop.permute.xlu0 %814  ;;  %v819_v47 = vpop.permute.xlu1 %818 }
  0x88   : > { %2451 = vrot.lane.b32.xlu0 %v5758_v23, %s5667_s9 }
  0x89   : > { %2453 = vrot.lane.b32.xlu1 %v5793_v32, %s5667_s9 }
  0x8a   : > { %v817_v48 = vpop.permute.xlu0 %816 }
  0x8b   : > { %v833_v49 = vsel %vm832_vm3, %v815_v46, %v817_v48  ;;  %v834_v50 = vsel %vm832_vm3, %v817_v48, %v819_v47  ;;  %v821_v51 = vpop.permute.xlu1 %820 }
  0x8c   : > { %5318 = vmatprep.subr.msk.bf16.mxu0 %vm302_vm0, %v834_v50  ;;  %v845_v52 = vsel %vm302_vm0, %v833_v49, 0  ;;  %2455 = vrot.lane.b32.xlu0 %v5795_v33, %s5667_s9  ;;  %v835_v53 = vsel %vm832_vm3, %v819_v47, %v821_v51 }
  0x8d   : > { %886 = vmatpush1.bf16.msra.mxu0 %v845_v52  ;;  %2457 = vrot.lane.b32.xlu1 %v5810_v35, %s5667_s9  ;;  %v851_v58 = vsel %vm302_vm0, %v835_v53, 0 }
  0x8e   : > { %v823_v55 = vpop.permute.xlu0 %822 }
  0x8f   : > { %v836_v56 = vsel %vm832_vm3, %v821_v51, %v823_v55  ;;  %v825_v57 = vpop.permute.xlu1 %824 }
  0x90   : > { %5320 = vmatprep.subr.msk.bf16.mxu1 %vm302_vm0, %v836_v56  ;;  %5319 = vmatmul.mubr.msk.bf16.vlgmr.msra.gmra.mxu0 %vm298_vm1, %v5317_v54  ;;  %v837_v59 = vsel %vm832_vm3, %v823_v55, %v825_v57 }
  0x91   : > { %927 = vmatpush1.bf16.msra.mxu1 %v851_v58  ;;  %985 = vmatprep.mubr.bf16.mxu0 %v5661_v3  ;;  %v857_v63 = vsel %vm302_vm0, %v837_v59, 0 }
  0x92   : > { %v827_v60 = vpop.permute.xlu0 %826  ;;  %2459 = vrot.lane.b32.xlu0 %v5822_v38, %s5667_s9  ;;  %2715 = vrot.lane.b32.xlu1 %v5732_v13, %s5667_s9 }
  0x93   : > { %v838_v61 = vsel %vm832_vm3, %v825_v57, %v827_v60  ;;  %v829_v62 = vpop.permute.xlu1 %828 }
  0x94   : > { %5321 = vmatmul.mubr.msk.bf16.vlgmr.msra.gmra.mxu1 %vm298_vm1, %v5317_v54  ;;  %5322 = vmatprep.subr.msk.bf16.mxu0 %vm302_vm0, %v838_v61  ;;  %v839_v0 = vsel %vm832_vm3, %v827_v60, %v829_v62  ;;  %v5337_v61 = vld [vmem:[%s6966_s2 + $0x4] sm:$0x3] }
  0x95   : > { %968 = vmatpush1.bf16.msra.mxu0 %v857_v63  ;;  %1026 = vmatprep.mubr.bf16.mxu1 %v5661_v3  ;;  %v863_v6 = vsel %vm302_vm0, %v839_v0, 0 }
  0x96   : > { %v831_v1 = vpop.permute.xlu0 %830  ;;  %5527 = vmatprep.subr.bf16.mxu0 %v5663_v36  ;;  %2717 = vrot.lane.b32.xlu0 %v5746_v19, %s5667_s9 }
  0x97   : > { %v840_v2 = vsel %vm832_vm3, %v829_v62, %v831_v1  ;;  %v869_v4 = vsel %vm302_vm0, %v831_v1, 0  ;;  %2719 = vrot.lane.b32.xlu1 %v5748_v20, %s5667_s9  ;;  %v1087_v5 = vpop.permute.xlu1 %1086 }
  0x98   : > { %5324 = vmatprep.subr.msk.bf16.mxu1 %vm302_vm0, %v840_v2  ;;  %5323 = vmatmul.mubr.msk.bf16.vlgmr.msra.gmra.mxu0 %vm298_vm1, %v5317_v54 }
  0x99   : > { %1009 = vmatpush1.bf16.msra.mxu1 %v863_v6  ;;  %5528 = vmatpush3.bf16.msra.mxu0 %v869_v4 }
  0x9a   : > { %v1089_v7 = vpop.permute.xlu0 %1088  ;;  %5529 = vmatprep.mubr.msk.bf16.mxu0 %vm5664_vm2, %v5663_v36  ;;  %2721 = vrot.lane.b32.xlu0 %v5764_v26, %s5667_s9 }
  0x9b   : > { %v1104_v9 = vsel %vm832_vm3, %v1087_v5, %v1089_v7  ;;  %2723 = vrot.lane.b32.xlu1 %v5734_v15, %s5667_s9  ;;  %v1091_v10 = vpop.permute.xlu1 %1090 }
  0x9c   : > { %5325 = vmatmul.mubr.msk.bf16.vlgmr.msra.gmra.mxu1 %vm298_vm1, %v5317_v54  ;;  %v1105_v11 = vsel %vm832_vm3, %v1089_v7, %v1091_v10  ;;  %v1116_v14 = vsel %vm302_vm0, %v1104_v9, 0 }
  0x9d   : > { %1174 = vmatprep.mubr.bf16.mxu1 %v5661_v3  ;;  %5328 = vmatprep.subr.msk.bf16.mxu1 %vm302_vm0, %v1105_v11 }
  0x9e   : > { %v1093_v12 = vpop.permute.xlu0 %1092  ;;  %2725 = vrot.lane.b32.xlu0 %v5768_v27, %s5667_s9  ;;  %1157 = vmatpush1.bf16.msra.mxu1 %v1116_v14 }
  0x9f   : > { %v1106_v16 = vsel %vm832_vm3, %v1091_v10, %v1093_v12  ;;  %2727 = vrot.lane.b32.xlu1 %v5750_v21, %s5667_s9  ;;  %v1095_v24 = vpop.permute.xlu1 %1094 }
  0xa0   : > { %5530 = vmatmul.mubr.msk.bf16.vlgmr.msra.gmra.mxu0 %vm298_vm1, %v5317_v54  ;;  %v1107_v25 = vsel %vm832_vm3, %v1093_v12, %v1095_v24  ;;  %v1122_v31 = vsel %vm302_vm0, %v1106_v16, 0 }
  0xa1   : > { %1215 = vmatprep.mubr.bf16.mxu0 %v5661_v3  ;;  %5330 = vmatprep.subr.msk.bf16.mxu0 %vm302_vm0, %v1107_v25 }
  0xa2   : > { %v1097_v29 = vpop.permute.xlu0 %1096  ;;  %2729 = vrot.lane.b32.xlu0 %v5781_v30, %s5667_s9  ;;  %1198 = vmatpush1.bf16.msra.mxu0 %v1122_v31 }
  0xa3   : > { %v1108_v34 = vsel %vm832_vm3, %v1095_v24, %v1097_v29  ;;  %2731 = vrot.lane.b32.xlu1 %v5817_v37, %s5667_s9  ;;  %v1099_v39 = vpop.permute.xlu1 %1098 }
  0xa4   : > { %5329 = vmatmul.mubr.msk.bf16.vlgmr.msra.gmra.mxu1 %vm298_vm1, %v5327_v28  ;;  %v1109_v40 = vsel %vm832_vm3, %v1097_v29, %v1099_v39  ;;  %v1128_v42 = vsel %vm302_vm0, %v1108_v34, 0 }
  0xa5   : > { %1256 = vmatprep.mubr.bf16.mxu1 %v5661_v3  ;;  %5332 = vmatprep.subr.msk.bf16.mxu1 %vm302_vm0, %v1109_v40 }
  0xa6   : > { %v1101_v41 = vpop.permute.xlu0 %1100  ;;  %2986 = vrot.lane.b32.xlu0 %v5727_v8, %s5668_s14  ;;  %1239 = vmatpush1.bf16.msra.mxu1 %v1128_v42 }
  0xa7   : > { %v1110_v43 = vsel %vm832_vm3, %v1099_v39, %v1101_v41  ;;  %2988 = vrot.lane.b32.xlu1 %v5742_v18, %s5668_s14  ;;  %v1103_v44 = vpop.permute.xlu1 %1102  ;;  %5533 = vmatprep.subr.bf16.mxu1 %v5663_v36 }
  0xa8   : > { %5331 = vmatmul.mubr.msk.bf16.vlgmr.msra.gmra.mxu0 %vm298_vm1, %v5327_v28  ;;  %v1111_v45 = vsel %vm832_vm3, %v1101_v41, %v1103_v44  ;;  %v1134_v47 = vsel %vm302_vm0, %v1110_v43, 0  ;;  %v1140_v48 = vsel %vm302_vm0, %v1103_v44, 0  ;;  %v5347_v41 = vld [vmem:[%s6967_s3 + $0x4] sm:$0x3] }
  0xa9   : > { %1297 = vmatprep.mubr.bf16.mxu0 %v5661_v3  ;;  %5334 = vmatprep.subr.msk.bf16.mxu0 %vm302_vm0, %v1111_v45 }
  0xaa   : > { %v1358_v46 = vpop.permute.xlu0 %1357  ;;  %2990 = vrot.lane.b32.xlu0 %v5738_v17, %s5668_s14  ;;  %1280 = vmatpush1.bf16.msra.mxu0 %v1134_v47 }
  0xab   : > { %2992 = vrot.lane.b32.xlu1 %v5756_v22, %s5668_s14  ;;  %v1360_v49 = vpop.permute.xlu1 %1359 }
  0xac   : > { %5333 = vmatmul.mubr.msk.bf16.vlgmr.msra.gmra.mxu1 %vm298_vm1, %v5327_v28  ;;  %v1376_v50 = vsel %vm1375_vm4, %v1358_v46, %v1360_v49 }
  0xad   : > { %5534 = vmatpush3.bf16.msra.mxu1 %v1140_v48  ;;  %5535 = vmatprep.mubr.msk.bf16.mxu1 %vm5664_vm2, %v5663_v36  ;;  %v1388_v52 = vsel %vm302_vm0, %v1376_v50, 0 }
  0xae   : > { %v1362_v51 = vpop.permute.xlu0 %1361  ;;  %2994 = vrot.lane.b32.xlu0 %v5758_v23, %s5668_s14 }
  0xaf   : > { %v1377_v53 = vsel %vm1375_vm4, %v1360_v49, %v1362_v51  ;;  %2996 = vrot.lane.b32.xlu1 %v5793_v32, %s5668_s14  ;;  %v1364_v54 = vpop.permute.xlu1 %1363 }
  0xb0   : > { %5335 = vmatmul.mubr.msk.bf16.vlgmr.msra.gmra.mxu0 %vm298_vm1, %v5327_v28  ;;  %5338 = vmatprep.subr.msk.bf16.mxu0 %vm302_vm0, %v1377_v53  ;;  %v1378_v55 = vsel %vm1375_vm4, %v1362_v51, %v1364_v54 }
  0xb1   : > { %1429 = vmatpush1.bf16.msra.mxu0 %v1388_v52  ;;  %1446 = vmatprep.mubr.bf16.mxu0 %v5661_v3  ;;  %v1394_v57 = vsel %vm302_vm0, %v1378_v55, 0 }
  0xb2   : > { %v1366_v56 = vpop.permute.xlu0 %1365  ;;  %2998 = vrot.lane.b32.xlu0 %v5795_v33, %s5668_s14 }
  0xb3   : > { %v1379_v58 = vsel %vm1375_vm4, %v1364_v54, %v1366_v56  ;;  %3000 = vrot.lane.b32.xlu1 %v5810_v35, %s5668_s14  ;;  %v1368_v59 = vpop.permute.xlu1 %1367 }
  0xb4   : > { %5536 = vmatmul.mubr.msk.bf16.vlgmr.msra.gmra.mxu1 %vm298_vm1, %v5327_v28  ;;  %5340 = vmatprep.subr.msk.bf16.mxu1 %vm302_vm0, %v1379_v58  ;;  %v1380_v60 = vsel %vm1375_vm4, %v1366_v56, %v1368_v59 }
  0xb5   : > { %1470 = vmatpush1.bf16.msra.mxu1 %v1394_v57  ;;  %1487 = vmatprep.mubr.bf16.mxu1 %v5661_v3  ;;  %v1400_v63 = vsel %vm302_vm0, %v1380_v60, 0  ;;  %v6142_v60 = vcombine.high %v5822_v38, %v5822_v38 }
  0xb6   : > { %v1370_v62 = vpop.permute.xlu0 %1369  ;;  %3002 = vrot.lane.b32.xlu0 %v5822_v38, %s5668_s14 }
  0xb7   : > { %v1381_v0 = vsel %vm1375_vm4, %v1368_v59, %v1370_v62  ;;  %3258 = vrot.lane.b32.xlu1 %v5732_v13, %s5668_s14  ;;  %v1372_v1 = vpop.permute.xlu1 %1371 }
  0xb8   : > { %5339 = vmatmul.mubr.msk.bf16.vlgmr.msra.gmra.mxu0 %vm298_vm1, %v5337_v61  ;;  %5342 = vmatprep.subr.msk.bf16.mxu0 %vm302_vm0, %v1381_v0  ;;  %v1382_v2 = vsel %vm1375_vm4, %v1370_v62, %v1372_v1 }
  0xb9   : > { %1511 = vmatpush1.bf16.msra.mxu0 %v1400_v63  ;;  %1528 = vmatprep.mubr.bf16.mxu0 %v5661_v3  ;;  %v1406_v5 = vsel %vm302_vm0, %v1382_v2, 0 }
  0xba   : > { %v1374_v4 = vpop.permute.xlu0 %1373  ;;  %5539 = vmatprep.subr.bf16.mxu0 %v5663_v36  ;;  %3260 = vrot.lane.b32.xlu0 %v5746_v19, %s5668_s14 }
  0xbb   : > { %v1383_v6 = vsel %vm1375_vm4, %v1372_v1, %v1374_v4  ;;  %3262 = vrot.lane.b32.xlu1 %v5748_v20, %s5668_s14  ;;  %v1630_v7 = vpop.permute.xlu1 %1629  ;;  %v1412_v9 = vsel %vm302_vm0, %v1374_v4, 0 }
  0xbc   : > { %5341 = vmatmul.mubr.msk.bf16.vlgmr.msra.gmra.mxu1 %vm298_vm1, %v5337_v61  ;;  %5344 = vmatprep.subr.msk.bf16.mxu1 %vm302_vm0, %v1383_v6 }
  0xbd   : > { %1552 = vmatpush1.bf16.msra.mxu1 %v1406_v5  ;;  %1569 = vmatprep.mubr.bf16.mxu1 %v5661_v3  ;;  %v6161_v5 = vld [vmem:[%s6966_s2 + $0x6] sm:$0x3] }
  0xbe   : > { %v1632_v10 = vpop.permute.xlu0 %1631  ;;  %3264 = vrot.lane.b32.xlu0 %v5764_v26, %s5668_s14 }
  0xbf   : > { %v1647_v11 = vsel %vm1375_vm4, %v1630_v7, %v1632_v10  ;;  %3266 = vrot.lane.b32.xlu1 %v5734_v15, %s5668_s14  ;;  %v1634_v12 = vpop.permute.xlu1 %1633 }
  0xc0   : > { %5343 = vmatmul.mubr.msk.bf16.vlgmr.msra.gmra.mxu0 %vm298_vm1, %v5337_v61  ;;  %v1648_v14 = vsel %vm1375_vm4, %v1632_v10, %v1634_v12  ;;  %v1659_v16 = vsel %vm302_vm0, %v1647_v11, 0 }
  0xc1   : > { %5540 = vmatpush3.bf16.msra.mxu0 %v1412_v9  ;;  %5541 = vmatprep.mubr.msk.bf16.mxu0 %vm5664_vm2, %v5663_v36 }
  0xc2   : > { %5348 = vmatprep.subr.msk.bf16.mxu1 %vm302_vm0, %v1648_v14  ;;  %v1636_v24 = vpop.permute.xlu0 %1635  ;;  %3268 = vrot.lane.b32.xlu0 %v5768_v27, %s5668_s14 }
  0xc3   : > { %v1649_v25 = vsel %vm1375_vm4, %v1634_v12, %v1636_v24  ;;  %3270 = vrot.lane.b32.xlu1 %v5750_v21, %s5668_s14  ;;  %v1638_v28 = vpop.permute.xlu1 %1637 }
  0xc4   : > { %5345 = vmatmul.mubr.msk.bf16.vlgmr.msra.gmra.mxu1 %vm298_vm1, %v5337_v61  ;;  %v1650_v29 = vsel %vm1375_vm4, %v1636_v24, %v1638_v28  ;;  %v1665_v31 = vsel %vm302_vm0, %v1649_v25, 0 }
  0xc5   : > { %1700 = vmatpush1.bf16.msra.mxu1 %v1659_v16  ;;  %1717 = vmatprep.mubr.bf16.mxu1 %v5661_v3 }
  0xc6   : > { %5350 = vmatprep.subr.msk.bf16.mxu0 %vm302_vm0, %v1650_v29  ;;  %v1640_v34 = vpop.permute.xlu0 %1639  ;;  %3272 = vrot.lane.b32.xlu0 %v5781_v30, %s5668_s14 }
  0xc7   : > { %v1651_v39 = vsel %vm1375_vm4, %v1638_v28, %v1640_v34  ;;  %3274 = vrot.lane.b32.xlu1 %v5817_v37, %s5668_s14  ;;  %v1642_v40 = vpop.permute.xlu1 %1641 }
  0xc8   : > { %5542 = vmatmul.mubr.msk.bf16.vlgmr.msra.gmra.mxu0 %vm298_vm1, %v5337_v61  ;;  %v1652_v42 = vsel %vm1375_vm4, %v1640_v34, %v1642_v40  ;;  %v1671_v43 = vsel %vm302_vm0, %v1651_v39, 0 }
  0xc9   : > { %1741 = vmatpush1.bf16.msra.mxu0 %v1665_v31  ;;  %1758 = vmatprep.mubr.bf16.mxu0 %v5661_v3 }
  0xca   : > { %5352 = vmatprep.subr.msk.bf16.mxu1 %vm302_vm0, %v1652_v42  ;;  %v1644_v44 = vpop.permute.xlu0 %1643  ;;  %3530 = vrot.lane.b32.xlu0 %v5727_v8, %s5669_s21 }
  0xcb   : > { %v1653_v45 = vsel %vm1375_vm4, %v1642_v40, %v1644_v44  ;;  %3532 = vrot.lane.b32.xlu1 %v5742_v18, %s5669_s21  ;;  %v1646_v46 = vpop.permute.xlu1 %1645 }
  0xcc   : > { %5349 = vmatmul.mubr.msk.bf16.vlgmr.msra.gmra.mxu1 %vm298_vm1, %v5347_v41  ;;  %v1654_v47 = vsel %vm1375_vm4, %v1644_v44, %v1646_v46  ;;  %v1677_v48 = vsel %vm302_vm0, %v1653_v45, 0  ;;  %v1683_v51 = vsel %vm302_vm0, %v1646_v46, 0 }
  0xcd   : > { %1782 = vmatpush1.bf16.msra.mxu1 %v1671_v43  ;;  %1799 = vmatprep.mubr.bf16.mxu1 %v5661_v3 }
  0xce   : > { %5354 = vmatprep.subr.msk.bf16.mxu0 %vm302_vm0, %v1654_v47  ;;  %v1901_v49 = vpop.permute.xlu0 %1900  ;;  %5545 = vmatprep.subr.bf16.mxu1 %v5663_v36 }
  0xcf   : > { %3534 = vrot.lane.b32.xlu0 %v5738_v17, %s5669_s21  ;;  %3536 = vrot.lane.b32.xlu1 %v5756_v22, %s5669_s21  ;;  %v1903_v50 = vpop.permute.xlu1 %1902 }
  0xd0   : > { %5351 = vmatmul.mubr.msk.bf16.vlgmr.msra.gmra.mxu0 %vm298_vm1, %v5347_v41  ;;  %v1919_v53 = vsel %vm1918_vm5, %v1901_v49, %v1903_v50 }
  0xd1   : > { %1823 = vmatpush1.bf16.msra.mxu0 %v1677_v48  ;;  %1840 = vmatprep.mubr.bf16.mxu0 %v5661_v3  ;;  %v1931_v56 = vsel %vm302_vm0, %v1919_v53, 0 }
  0xd2   : > { %v1905_v52 = vpop.permute.xlu0 %1904 }
  0xd3   : > { %v1920_v54 = vsel %vm1918_vm5, %v1903_v50, %v1905_v52  ;;  %3538 = vrot.lane.b32.xlu0 %v5758_v23, %s5669_s21  ;;  %3540 = vrot.lane.b32.xlu1 %v5793_v32, %s5669_s21  ;;  %v1907_v55 = vpop.permute.xlu1 %1906 }
  0xd4   : > { %5353 = vmatmul.mubr.msk.bf16.vlgmr.msra.gmra.mxu1 %vm298_vm1, %v5347_v41  ;;  %5358 = vmatprep.subr.msk.bf16.mxu0 %vm302_vm0, %v1920_v54  ;;  %v1921_v58 = vsel %vm1918_vm5, %v1905_v52, %v1907_v55 }
  0xd5   : > { %5546 = vmatpush3.bf16.msra.mxu1 %v1683_v51  ;;  %5547 = vmatprep.mubr.msk.bf16.mxu1 %vm5664_vm2, %v5663_v36  ;;  %v1937_v62 = vsel %vm302_vm0, %v1921_v58, 0 }
  0xd6   : > { %v1909_v57 = vpop.permute.xlu0 %1908 }
  0xd7   : > { %v1922_v59 = vsel %vm1918_vm5, %v1907_v55, %v1909_v57  ;;  %3542 = vrot.lane.b32.xlu0 %v5795_v33, %s5669_s21  ;;  %3544 = vrot.lane.b32.xlu1 %v5810_v35, %s5669_s21  ;;  %v1911_v61 = vpop.permute.xlu1 %1910 }
  0xd8   : > { %5355 = vmatmul.mubr.msk.bf16.vlgmr.msra.gmra.mxu0 %vm298_vm1, %v5347_v41  ;;  %5360 = vmatprep.subr.msk.bf16.mxu1 %vm302_vm0, %v1922_v59  ;;  %v1923_v0 = vsel %vm1918_vm5, %v1909_v57, %v1911_v61 }
  0xd9   : > { %1972 = vmatpush1.bf16.msra.mxu0 %v1931_v56  ;;  %1989 = vmatprep.mubr.bf16.mxu0 %v5661_v3  ;;  %v1943_v9 = vsel %vm302_vm0, %v1923_v0, 0  ;;  %v6220_v56 = vcombine.high %v5817_v37, %v5817_v37 }
  0xda   : > { %v1913_v63 = vpop.permute.xlu0 %1912  ;;  %v6154_v2 = vpop.f32.mrf.mxu0 }
  0xdb   : > { %v1924_v1 = vsel %vm1918_vm5, %v1911_v61, %v1913_v63  ;;  %3546 = vrot.lane.b32.xlu0 %v5822_v38, %s5669_s21  ;;  %3548 = vrot.lane.b32.xlu1 %v6142_v60, %s5669_s21  ;;  %v1915_v4 = vpop.permute.xlu1 %1914 }
  0xdc   : > { %5548 = vmatmul.mubr.msk.bf16.vlgmr.msra.gmra.mxu1 %vm298_vm1, %v5347_v41  ;;  %5362 = vmatprep.subr.msk.bf16.mxu0 %vm302_vm0, %v1924_v1  ;;  %v6164_v6 = vpop.f32.mrf.mxu0  ;;  %v6166_v7 = vpop.f32.mrf.mxu1  ;;  %v1925_v11 = vsel %vm1918_vm5, %v1913_v63, %v1915_v4 }
  0xdd   : > { %2013 = vmatpush1.bf16.msra.mxu1 %v1937_v62  ;;  %2030 = vmatprep.mubr.bf16.mxu1 %v5661_v3  ;;  %v1949_v29 = vsel %vm302_vm0, %v1925_v11, 0 }
  0xde   : > { %v1917_v10 = vpop.permute.xlu0 %1916  ;;  %v368_v14 = vpop.f32.mrf.mxu0 }
  0xdf   : > { %v1926_v12 = vsel %vm1918_vm5, %v1915_v4, %v1917_v10  ;;  %3806 = vrot.lane.b32.xlu0 %v5732_v13, %s5669_s21  ;;  %3808 = vrot.lane.b32.xlu1 %v5746_v19, %s5669_s21  ;;  %v6175_v16 = vpop.f32.mrf.mxu1  ;;  %v2173_v24 = vpop.permute.xlu1 %2172  ;;  %v1955_v44 = vsel %vm302_vm0, %v1917_v10, 0 }
  0xe0   : > { %5359 = vmatmul.mubr.msk.bf16.vlgmr.msra.gmra.mxu0 %vm298_vm1, %v6161_v5  ;;  %5364 = vmatprep.subr.msk.bf16.mxu1 %vm302_vm0, %v1926_v12  ;;  %v369_v25 = vpop.f32.mrf.mxu0 }
  0xe1   : > { %2054 = vmatpush1.bf16.msra.mxu0 %v1943_v9  ;;  %2071 = vmatprep.mubr.bf16.mxu0 %v5661_v3  ;;  %v409_v28 = vpop.f32.mrf.mxu1 }
  0xe2   : > { %5551 = vmatprep.subr.bf16.mxu0 %v5663_v36  ;;  %v2175_v31 = vpop.permute.xlu0 %2174  ;;  %v6187_v34 = vpop.f32.mrf.mxu0 }
  0xe3   : > { %3810 = vrot.lane.b32.xlu0 %v5748_v20, %s5669_s21  ;;  %3812 = vrot.lane.b32.xlu1 %v5764_v26, %s5669_s21  ;;  %v410_v39 = vpop.f32.mrf.mxu1  ;;  %v2177_v40 = vpop.permute.xlu1 %2176  ;;  %v2190_v46 = vsel %vm1918_vm5, %v2173_v24, %v2175_v31 }
  0xe4   : > { %5361 = vmatmul.mubr.msk.bf16.vlgmr.msra.gmra.mxu1 %vm298_vm1, %v6161_v5  ;;  %v2191_v41 = vsel %vm1918_vm5, %v2175_v31, %v2177_v40  ;;  %v6193_v42 = vpop.f32.mrf.mxu0  ;;  %v2202_v53 = vsel %vm302_vm0, %v2190_v46, 0 }
  0xe5   : > { %2095 = vmatpush1.bf16.msra.mxu1 %v1949_v29  ;;  %2112 = vmatprep.mubr.bf16.mxu1 %v5661_v3  ;;  %v6195_v43 = vpop.f32.mrf.mxu1 }
  0xe6   : > { %5368 = vmatprep.subr.msk.bf16.mxu1 %vm302_vm0, %v2191_v41  ;;  %v2179_v45 = vpop.permute.xlu0 %2178  ;;  %v450_v47 = vpop.f32.mrf.mxu0 }
  0xe7   : > { %3814 = vrot.lane.b32.xlu0 %v5734_v15, %s5669_s21  ;;  %3816 = vrot.lane.b32.xlu1 %v5768_v27, %s5669_s21  ;;  %v6204_v48 = vpop.f32.mrf.mxu1  ;;  %v2181_v49 = vpop.permute.xlu1 %2180  ;;  %v2192_v55 = vsel %vm1918_vm5, %v2177_v40, %v2179_v45 }
  0xe8   : > { %5363 = vmatmul.mubr.msk.bf16.vlgmr.msra.gmra.mxu0 %vm298_vm1, %v6161_v5  ;;  %v2193_v50 = vsel %vm1918_vm5, %v2179_v45, %v2181_v49  ;;  %v451_v51 = vpop.f32.mrf.mxu0  ;;  %v2208_v0 = vsel %vm302_vm0, %v2192_v55, 0 }
  0xe9   : > { %5552 = vmatpush3.bf16.msra.mxu0 %v1955_v44  ;;  %5553 = vmatprep.mubr.msk.bf16.mxu0 %vm5664_vm2, %v5663_v36  ;;  %v491_v52 = vpop.f32.mrf.mxu1 }
  0xea   : > { %5370 = vmatprep.subr.msk.bf16.mxu0 %vm302_vm0, %v2193_v50  ;;  %v2183_v54 = vpop.permute.xlu0 %2182  ;;  %v6222_v57 = vpop.f32.mrf.mxu0 }
  0xeb   : > { %3818 = vrot.lane.b32.xlu0 %v5750_v21, %s5669_s21  ;;  %3820 = vrot.lane.b32.xlu1 %v5781_v30, %s5669_s21  ;;  %v492_v58 = vpop.f32.mrf.mxu1  ;;  %v2185_v59 = vpop.permute.xlu1 %2184  ;;  %v2194_v9 = vsel %vm1918_vm5, %v2181_v49, %v2183_v54 }
  0xec   : > { %5365 = vmatmul.mubr.msk.bf16.vlgmr.msra.gmra.mxu1 %vm298_vm1, %v6161_v5  ;;  %v2195_v61 = vsel %vm1918_vm5, %v2183_v54, %v2185_v59  ;;  %v5519_v62 = vpop.f32.mrf.mxu0  ;;  %v2214_v28 = vsel %vm302_vm0, %v2194_v9, 0 }
  0xed   : > { %2243 = vmatpush1.bf16.msra.mxu1 %v2202_v53  ;;  %2260 = vmatprep.mubr.bf16.mxu1 %v5661_v3  ;;  %v642_v63 = vpop.f32.mrf.mxu1 }
  0xee   : > { %5372 = vmatprep.subr.msk.bf16.mxu1 %vm302_vm0, %v2195_v61  ;;  %v2187_v1 = vpop.permute.xlu0 %2186  ;;  %v6231_v4 = vadd.f32 %v642_v63, %v6154_v2  ;;  %v531_v10 = vpop.f32.mrf.mxu0  ;;  %v6246_v2 = vld [vmem:[%s6967_s3 + $0x6] sm:$0x3] }
  0xef   : > { %3822 = vrot.lane.b32.xlu0 %v5817_v37, %s5669_s21  ;;  %3824 = vrot.lane.b32.xlu1 %v6220_v56, %s5669_s21  ;;  %v644_v11 = vpop.f32.mrf.mxu1  ;;  %v2189_v12 = vpop.permute.xlu1 %2188 }
  0xf0   : > { %5554 = vmatmul.mubr.msk.bf16.vlgmr.msra.gmra.mxu0 %vm298_vm1, %v6161_v5  ;;  %v6241_v14 = vadd.f32 %v644_v11, %v6164_v6  ;;  %v2197_v37 = vsel %vm1918_vm5, %v2187_v1, %v2189_v12  ;;  %v5520_v24 = vpop.f32.mrf.mxu0  ;;  %v2196_v6 = vsel %vm1918_vm5, %v2185_v59, %v2187_v1  ;;  %v2226_v54 = vsel %vm302_vm0, %v2189_v12, 0 }
  0xf1   : > { %2284 = vmatpush1.bf16.msra.mxu0 %v2208_v0  ;;  %2301 = vmatprep.mubr.bf16.mxu0 %v5661_v3  ;;  %v646_v25 = vpop.f32.mrf.mxu1  ;;  %v2220_v45 = vsel %vm302_vm0, %v2196_v6, 0 }
  0xf2   : > { %5374 = vmatprep.subr.msk.bf16.mxu0 %vm302_vm0, %v2197_v37  ;;  %v2444_v5 = vpop.permute.xlu0 %2443  ;;  %v683_v29 = vpop.f32.mrf.mxu0 }
  0xf3   : > { %4080 = vrot.lane.b32.xlu0 %v5727_v8, %s5670_s28  ;;  %4082 = vrot.lane.b32.xlu1 %v5742_v18, %s5670_s28  ;;  %v647_v31 = vpop.f32.mrf.mxu1  ;;  %v2446_v39 = vpop.permute.xlu1 %2445  ;;  %v6260_v40 = vadd.f32 %v683_v29, %v6166_v7 }
  0xf4   : > { %5369 = vmatmul.mubr.msk.bf16.vlgmr.msra.gmra.mxu1 %vm298_vm1, %v6246_v2  ;;  %v685_v41 = vpop.f32.mrf.mxu0  ;;  %v2462_v58 = vsel %vm2461_vm6, %v2444_v5, %v2446_v39 }
  0xf5   : > { %2325 = vmatpush1.bf16.msra.mxu1 %v2214_v28  ;;  %2342 = vmatprep.mubr.bf16.mxu1 %v5661_v3  ;;  %v724_v44 = vpop.f32.mrf.mxu1  ;;  %v6266_v47 = vadd.f32 %v685_v41, %v6175_v16  ;;  %v2474_v9 = vsel %vm302_vm0, %v2462_v58, 0  ;;  %v5377_v41 = vld [vmem:[%s6966_s2 + $0x8] sm:$0x3] }
  0xf6   : > { %5557 = vmatprep.subr.bf16.mxu1 %v5663_v36  ;;  %v2448_v46 = vpop.permute.xlu0 %2447  ;;  %v6269_v49 = vadd.f32 %v724_v44, %v6187_v34  ;;  %v687_v7 = vpop.f32.mrf.mxu0 }
  0xf7   : > { %v2463_v50 = vsel %vm2461_vm6, %v2446_v39, %v2448_v46  ;;  %4084 = vrot.lane.b32.xlu0 %v5738_v17, %s5670_s28  ;;  %4086 = vrot.lane.b32.xlu1 %v5756_v22, %s5670_s28  ;;  %v726_v51 = vpop.f32.mrf.mxu1  ;;  %v2450_v52 = vpop.permute.xlu1 %2449 }
  0xf8   : > { %5371 = vmatmul.mubr.msk.bf16.vlgmr.msra.gmra.mxu0 %vm298_vm1, %v6246_v2  ;;  %v6279_v16 = vadd.f32 %v726_v51, %v6193_v42  ;;  %v688_v34 = vpop.f32.mrf.mxu0 }
  0xf9   : > { %2366 = vmatpush1.bf16.msra.mxu0 %v2220_v45  ;;  %2383 = vmatprep.mubr.bf16.mxu0 %v5661_v3  ;;  %v728_v53 = vpop.f32.mrf.mxu1 }
  0xfa   : > { %5378 = vmatprep.subr.msk.bf16.mxu0 %vm302_vm0, %v2463_v50  ;;  %v2452_v55 = vpop.permute.xlu0 %2451  ;;  %v765_v42 = vpop.f32.mrf.mxu0 }
  0xfb   : > { %v2465_v59 = vsel %vm2461_vm6, %v2450_v52, %v2452_v55  ;;  %4088 = vrot.lane.b32.xlu0 %v5758_v23, %s5670_s28  ;;  %4090 = vrot.lane.b32.xlu1 %v5793_v32, %s5670_s28  ;;  %v729_v61 = vpop.f32.mrf.mxu1  ;;  %v2454_v62 = vpop.permute.xlu1 %2453  ;;  %v6293_v63 = vadd.f32 %v765_v42, %v6195_v43  ;;  %v2464_v43 = vsel %vm2461_vm6, %v2448_v46, %v2450_v52 }
  0xfc   : > { %5373 = vmatmul.mubr.msk.bf16.vlgmr.msra.gmra.mxu1 %vm298_vm1, %v6246_v2  ;;  %v767_v0 = vpop.f32.mrf.mxu0  ;;  %v2480_v5 = vsel %vm302_vm0, %v2464_v43, 0  ;;  %v2466_v6 = vsel %vm2461_vm6, %v2452_v55, %v2454_v62  ;;  %v6372_v43 = vld.sshfl [vmem:[%s5724_s26 + $0x10] sm:$0x33 pattern:$0x76325410]  ;;  %s5671_s26 = smov 58  }
  0xfd   : > { %5558 = vmatpush3.bf16.msra.mxu1 %v2226_v54  ;;  %5559 = vmatprep.mubr.msk.bf16.mxu1 %vm5664_vm2, %v5663_v36  ;;  %v806_v1 = vpop.f32.mrf.mxu1  ;;  %v6300_v11 = vadd.f32 %v767_v0, %v6204_v48 }
  0xfe   : > { %5380 = vmatprep.subr.msk.bf16.mxu1 %vm302_vm0, %v2465_v59  ;;  %v2456_v10 = vpop.permute.xlu0 %2455  ;;  %v6303_v12 = vadd.f32 %v806_v1, %v6222_v57  ;;  %v769_v24 = vpop.f32.mrf.mxu0 }
  0xff   : > { %v2467_v37 = vsel %vm2461_vm6, %v2454_v62, %v2456_v10  ;;  %4092 = vrot.lane.b32.xlu0 %v5795_v33, %s5670_s28  ;;  %4094 = vrot.lane.b32.xlu1 %v5810_v35, %s5670_s28  ;;  %v5525_v25 = vpop.f32.mrf.mxu1  ;;  %v2458_v48 = vpop.permute.xlu1 %2457  ;;  %v5387_v24 = vld [vmem:[%s6967_s3 + $0x8] sm:$0x3] }
 0x100   : > { %5375 = vmatmul.mubr.msk.bf16.vlgmr.msra.gmra.mxu0 %vm298_vm1, %v6246_v2  ;;  %v770_v57 = vpop.f32.mrf.mxu0  ;;  %v2468_v45 = vsel %vm2461_vm6, %v2456_v10, %v2458_v48 }
 0x101   : > { %2515 = vmatpush1.bf16.msra.mxu0 %v2474_v9  ;;  %2532 = vmatprep.mubr.bf16.mxu0 %v5661_v3  ;;  %v809_v28 = vpop.f32.mrf.mxu1  ;;  %v2492_v50 = vsel %vm302_vm0, %v2468_v45, 0 }
 0x102   : > { %5382 = vmatprep.subr.msk.bf16.mxu0 %vm302_vm0, %v2467_v37 }
 0x103   : > { %4096 = vrot.lane.b32.xlu0 %v5822_v38, %s5670_s28  ;;  %4098 = vrot.lane.b32.xlu1 %v6142_v60, %s5670_s28  ;;  %v5526_v29 = vpop.f32.mrf.mxu1  ;;  %v2486_v38 = vsel %vm302_vm0, %v2466_v6, 0 }
 0x104   : > { %5560 = vmatmul.mubr.msk.bf16.vlgmr.msra.gmra.mxu1 %vm298_vm1, %v6246_v2  ;;  %v2460_v31 = vpop.permute.xlu0 %2459  ;;  %v2716_v39 = vpop.permute.xlu1 %2715 }
 0x105   : > { %2556 = vmatpush1.bf16.msra.mxu1 %v2480_v5  ;;  %v2469_v44 = vsel %vm2461_vm6, %v2458_v48, %v2460_v31  ;;  %2573 = vmatprep.mubr.bf16.mxu1 %v5661_v3  ;;  %v2498_v34 = vsel %vm302_vm0, %v2460_v31, 0 }
 0x106   : > { %5384 = vmatprep.subr.msk.bf16.mxu1 %vm302_vm0, %v2469_v44 }
 0x107   : > { %4355 = vrot.lane.b32.xlu0 %v5732_v13, %s5670_s28  ;;  %4357 = vrot.lane.b32.xlu1 %v5746_v19, %s5670_s28 }
 0x108   : > { %5379 = vmatmul.mubr.msk.bf16.vlgmr.msra.gmra.mxu0 %vm298_vm1, %v5377_v41  ;;  %v2718_v2 = vpop.permute.xlu0 %2717 }
 0x109   : > { %2597 = vmatpush1.bf16.msra.mxu0 %v2486_v38  ;;  %2614 = vmatprep.mubr.bf16.mxu0 %v5661_v3  ;;  %v2720_v46 = vpop.permute.xlu1 %2719  ;;  %v2733_v53 = vsel %vm2461_vm6, %v2716_v39, %v2718_v2 }
 0x10a   : > { %5563 = vmatprep.subr.bf16.mxu0 %v5663_v36  ;;  %v2734_v7 = vsel %vm2461_vm6, %v2718_v2, %v2720_v46  ;;  %v2745_v59 = vsel %vm302_vm0, %v2733_v53, 0 }
 0x10b   : > { %4359 = vrot.lane.b32.xlu0 %v5748_v20, %s5670_s28  ;;  %4361 = vrot.lane.b32.xlu1 %v5764_v26, %s5670_s28 }
 0x10c   : > { %5381 = vmatmul.mubr.msk.bf16.vlgmr.msra.gmra.mxu1 %vm298_vm1, %v5377_v41  ;;  %v2722_v51 = vpop.permute.xlu0 %2721 }
 0x10d   : > { %2638 = vmatpush1.bf16.msra.mxu1 %v2492_v50  ;;  %2655 = vmatprep.mubr.bf16.mxu1 %v5661_v3  ;;  %v2724_v52 = vpop.permute.xlu1 %2723  ;;  %v2735_v42 = vsel %vm2461_vm6, %v2720_v46, %v2722_v51 }
 0x10e   : > { %5388 = vmatprep.subr.msk.bf16.mxu1 %vm302_vm0, %v2734_v7  ;;  %v2736_v54 = vsel %vm2461_vm6, %v2722_v51, %v2724_v52  ;;  %v2751_v1 = vsel %vm302_vm0, %v2735_v42, 0  ;;  %v5651_v7 = vld.sshfl [vmem:[%s5719_s23 + $0x10] sm:$0x33 pattern:$0x76325410] }
 0x10f   : > { %4363 = vrot.lane.b32.xlu0 %v5734_v15, %s5670_s28  ;;  %4365 = vrot.lane.b32.xlu1 %v5768_v27, %s5670_s28 }
 0x110   : > { %5383 = vmatmul.mubr.msk.bf16.vlgmr.msra.gmra.mxu0 %vm298_vm1, %v5377_v41  ;;  %v2726_v55 = vpop.permute.xlu0 %2725 }
 0x111   : > { %5564 = vmatpush3.bf16.msra.mxu0 %v2498_v34  ;;  %5565 = vmatprep.mubr.msk.bf16.mxu0 %vm5664_vm2, %v5663_v36  ;;  %v2728_v58 = vpop.permute.xlu1 %2727  ;;  %v2737_v9 = vsel %vm2461_vm6, %v2724_v52, %v2726_v55 }
 0x112   : > { %5390 = vmatprep.subr.msk.bf16.mxu0 %vm302_vm0, %v2736_v54  ;;  %v2738_v61 = vsel %vm2461_vm6, %v2726_v55, %v2728_v58  ;;  %v2757_v48 = vsel %vm302_vm0, %v2737_v9, 0 }
 0x113   : > { %4367 = vrot.lane.b32.xlu0 %v5750_v21, %s5670_s28  ;;  %4369 = vrot.lane.b32.xlu1 %v5781_v30, %s5670_s28 }
 0x114   : > { %5385 = vmatmul.mubr.msk.bf16.vlgmr.msra.gmra.mxu1 %vm298_vm1, %v5377_v41  ;;  %v2730_v62 = vpop.permute.xlu0 %2729 }
 0x115   : > { %2786 = vmatpush1.bf16.msra.mxu1 %v2745_v59  ;;  %2803 = vmatprep.mubr.bf16.mxu1 %v5661_v3  ;;  %v2732_v0 = vpop.permute.xlu1 %2731  ;;  %v2739_v57 = vsel %vm2461_vm6, %v2728_v58, %v2730_v62 }
 0x116   : > { %5392 = vmatprep.subr.msk.bf16.mxu1 %vm302_vm0, %v2738_v61  ;;  %v2740_v10 = vsel %vm2461_vm6, %v2730_v62, %v2732_v0  ;;  %v2763_v6 = vsel %vm302_vm0, %v2739_v57, 0  ;;  %v2769_v31 = vsel %vm302_vm0, %v2732_v0, 0 }
 0x117   : > { %4371 = vrot.lane.b32.xlu0 %v6372_v43, %s5670_s28  ;;  %4373 = vrot.lane.b32.xlu1 %v6220_v56, %s5670_s28 }
 0x118   : > { %5566 = vmatmul.mubr.msk.bf16.vlgmr.msra.gmra.mxu0 %vm298_vm1, %v5377_v41  ;;  %v2987_v37 = vpop.permute.xlu0 %2986 }
 0x119   : > { %2827 = vmatpush1.bf16.msra.mxu0 %v2751_v1  ;;  %2844 = vmatprep.mubr.bf16.mxu0 %v5661_v3  ;;  %v2989_v25 = vpop.permute.xlu1 %2988 }
 0x11a   : > { %5394 = vmatprep.subr.msk.bf16.mxu0 %vm302_vm0, %v2740_v10  ;;  %v3005_v39 = vsel %vm3004_vm7, %v2987_v37, %v2989_v25 }
 0x11b   : > { %4629 = vrot.lane.b32.xlu0 %v5727_v8, %s5671_s26  ;;  %4631 = vrot.lane.b32.xlu1 %v5742_v18, %s5671_s26  ;;  %v3017_v44 = vsel %vm302_vm0, %v3005_v39, 0 }
 0x11c   : > { %5389 = vmatmul.mubr.msk.bf16.vlgmr.msra.gmra.mxu1 %vm298_vm1, %v5387_v24  ;;  %v2991_v28 = vpop.permute.xlu0 %2990 }
 0x11d   : > { %2868 = vmatpush1.bf16.msra.mxu1 %v2757_v48  ;;  %2885 = vmatprep.mubr.bf16.mxu1 %v5661_v3  ;;  %v2993_v5 = vpop.permute.xlu1 %2992  ;;  %v3006_v29 = vsel %vm3004_vm7, %v2989_v25, %v2991_v28 }
 0x11e   : > { %5569 = vmatprep.subr.bf16.mxu1 %v5663_v36  ;;  %v3007_v38 = vsel %vm3004_vm7, %v2991_v28, %v2993_v5 }
 0x11f   : > { %4633 = vrot.lane.b32.xlu0 %v5738_v17, %s5671_s26  ;;  %4635 = vrot.lane.b32.xlu1 %v5756_v22, %s5671_s26  ;;  %v3023_v2 = vsel %vm302_vm0, %v3007_v38, 0 }
 0x120   : > { %5391 = vmatmul.mubr.msk.bf16.vlgmr.msra.gmra.mxu0 %vm298_vm1, %v5387_v24  ;;  %v2995_v8 = vpop.permute.xlu0 %2994 }
 0x121   : > { %2909 = vmatpush1.bf16.msra.mxu0 %v2763_v6  ;;  %2926 = vmatprep.mubr.bf16.mxu0 %v5661_v3  ;;  %v2997_v18 = vpop.permute.xlu1 %2996  ;;  %v3008_v41 = vsel %vm3004_vm7, %v2993_v5, %v2995_v8 }
 0x122   : > { %5398 = vmatprep.subr.msk.bf16.mxu0 %vm302_vm0, %v3006_v29  ;;  %v3009_v46 = vsel %vm3004_vm7, %v2995_v8, %v2997_v18 }
 0x123   : > { %4637 = vrot.lane.b32.xlu0 %v5758_v23, %s5671_s26  ;;  %4639 = vrot.lane.b32.xlu1 %v5793_v32, %s5671_s26  ;;  %v3029_v52 = vsel %vm302_vm0, %v3009_v46, 0 }
 0x124   : > { %5393 = vmatmul.mubr.msk.bf16.vlgmr.msra.gmra.mxu1 %vm298_vm1, %v5387_v24  ;;  %v2999_v17 = vpop.permute.xlu0 %2998 }
 0x125   : > { %5570 = vmatpush3.bf16.msra.mxu1 %v2769_v31  ;;  %5571 = vmatprep.mubr.msk.bf16.mxu1 %vm5664_vm2, %v5663_v36  ;;  %v3001_v22 = vpop.permute.xlu1 %3000  ;;  %v3010_v23 = vsel %vm3004_vm7, %v2997_v18, %v2999_v17 }
 0x126   : > { %5400 = vmatprep.subr.msk.bf16.mxu1 %vm302_vm0, %v3008_v41  ;;  %v3011_v34 = vsel %vm3004_vm7, %v2999_v17, %v3001_v22 }
 0x127   : > { %4641 = vrot.lane.b32.xlu0 %v5795_v33, %s5671_s26  ;;  %4643 = vrot.lane.b32.xlu1 %v5810_v35, %s5671_s26  ;;  %v5397_v35 = vld [vmem:[%s6966_s2 + $0xa] sm:$0x3]  ;;  %v3035_v54 = vsel %vm302_vm0, %v3011_v34, 0 }
 0x128   : > { %5395 = vmatmul.mubr.msk.bf16.vlgmr.msra.gmra.mxu0 %vm298_vm1, %v5387_v24  ;;  %v3003_v32 = vpop.permute.xlu0 %3002 }
 0x129   : > { %3058 = vmatpush1.bf16.msra.mxu0 %v3017_v44  ;;  %3075 = vmatprep.mubr.bf16.mxu0 %v5661_v3  ;;  %v3259_v45 = vpop.permute.xlu1 %3258  ;;  %v3012_v50 = vsel %vm3004_vm7, %v3001_v22, %v3003_v32  ;;  %v3041_v58 = vsel %vm302_vm0, %v3003_v32, 0 }
 0x12a   : > { %5402 = vmatprep.subr.msk.bf16.mxu0 %vm302_vm0, %v3010_v23 }
 0x12b   : > { %4645 = vrot.lane.b32.xlu0 %v5651_v7, %s5671_s26  ;;  %4647 = vrot.lane.b32.xlu1 %v6142_v60, %s5671_s26 }
 0x12c   : > { %5572 = vmatmul.mubr.msk.bf16.vlgmr.msra.gmra.mxu1 %vm298_vm1, %v5387_v24  ;;  %v3261_v33 = vpop.permute.xlu0 %3260 }
 0x12d   : > { %3099 = vmatpush1.bf16.msra.mxu1 %v3023_v2  ;;  %3116 = vmatprep.mubr.bf16.mxu1 %v5661_v3  ;;  %v3263_v51 = vpop.permute.xlu1 %3262  ;;  %v3276_v59 = vsel %vm3004_vm7, %v3259_v45, %v3261_v33 }
 0x12e   : > { %5404 = vmatprep.subr.msk.bf16.mxu1 %vm302_vm0, %v3012_v50  ;;  %v3277_v55 = vsel %vm3004_vm7, %v3261_v33, %v3263_v51  ;;  %v3288_v61 = vsel %vm302_vm0, %v3276_v59, 0 }
 0x12f   : > { %4904 = vrot.lane.b32.xlu0 %v5732_v13, %s5671_s26  ;;  %4906 = vrot.lane.b32.xlu1 %v5746_v19, %s5671_s26 }
 0x130   : > { %5399 = vmatmul.mubr.msk.bf16.vlgmr.msra.gmra.mxu0 %vm298_vm1, %v5397_v35  ;;  %v3265_v60 = vpop.permute.xlu0 %3264 }
 0x131   : > { %3140 = vmatpush1.bf16.msra.mxu0 %v3029_v52  ;;  %3157 = vmatprep.mubr.bf16.mxu0 %v5661_v3  ;;  %v3267_v53 = vpop.permute.xlu1 %3266  ;;  %v3278_v62 = vsel %vm3004_vm7, %v3263_v51, %v3265_v60 }
 0x132   : > { %5575 = vmatprep.subr.bf16.mxu0 %v5663_v36  ;;  %v3279_v42 = vsel %vm3004_vm7, %v3265_v60, %v3267_v53  ;;  %v3294_v1 = vsel %vm302_vm0, %v3278_v62, 0 }
 0x133   : > { %4908 = vrot.lane.b32.xlu0 %v5748_v20, %s5671_s26  ;;  %4910 = vrot.lane.b32.xlu1 %v5764_v26, %s5671_s26 }
 0x134   : > { %5401 = vmatmul.mubr.msk.bf16.vlgmr.msra.gmra.mxu1 %vm298_vm1, %v5397_v35  ;;  %v3269_v13 = vpop.permute.xlu0 %3268 }
 0x135   : > { %3181 = vmatpush1.bf16.msra.mxu1 %v3035_v54  ;;  %3198 = vmatprep.mubr.bf16.mxu1 %v5661_v3  ;;  %v3271_v19 = vpop.permute.xlu1 %3270  ;;  %v3280_v9 = vsel %vm3004_vm7, %v3267_v53, %v3269_v13 }
 0x136   : > { %5408 = vmatprep.subr.msk.bf16.mxu1 %vm302_vm0, %v3277_v55  ;;  %v3281_v0 = vsel %vm3004_vm7, %v3269_v13, %v3271_v19  ;;  %v3300_v24 = vsel %vm302_vm0, %v3280_v9, 0 }
 0x137   : > { %4912 = vrot.lane.b32.xlu0 %v5734_v15, %s5671_s26  ;;  %4914 = vrot.lane.b32.xlu1 %v5768_v27, %s5671_s26 }
 0x138   : > { %5403 = vmatmul.mubr.msk.bf16.vlgmr.msra.gmra.mxu0 %vm298_vm1, %v5397_v35  ;;  %v3273_v20 = vpop.permute.xlu0 %3272 }
 0x139   : > { %5576 = vmatpush3.bf16.msra.mxu0 %v3041_v58  ;;  %5577 = vmatprep.mubr.msk.bf16.mxu0 %vm5664_vm2, %v5663_v36  ;;  %v3275_v26 = vpop.permute.xlu1 %3274 }
 0x13a   : > { %5410 = vmatprep.subr.msk.bf16.mxu0 %vm302_vm0, %v3279_v42  ;;  %v3283_v10 = vsel %vm3004_vm7, %v3273_v20, %v3275_v26  ;;  %v3312_v6 = vsel %vm302_vm0, %v3275_v26, 0 }
 0x13b   : > { %4916 = vrot.lane.b32.xlu0 %v5750_v21, %s5671_s26  ;;  %4918 = vrot.lane.b32.xlu1 %v5781_v30, %s5671_s26  ;;  %v5407_v21 = vld [vmem:[%s6967_s3 + $0xa] sm:$0x3] }
 0x13c   : > { %5405 = vmatmul.mubr.msk.bf16.vlgmr.msra.gmra.mxu1 %vm298_vm1, %v5397_v35  ;;  %v3531_v15 = vpop.permute.xlu0 %3530 }
 0x13d   : > { %3329 = vmatpush1.bf16.msra.mxu1 %v3288_v61  ;;  %3346 = vmatprep.mubr.bf16.mxu1 %v5661_v3  ;;  %v3533_v27 = vpop.permute.xlu1 %3532 }
 0x13e   : > { %5412 = vmatprep.subr.msk.bf16.mxu1 %vm302_vm0, %v3281_v0  ;;  %v3551_v29 = vsel %vm3550_vm8, %v3531_v15, %v3533_v27 }
 0x13f   : > { %4920 = vrot.lane.b32.xlu0 %v6372_v43, %s5671_s26  ;;  %4922 = vrot.lane.b32.xlu1 %v6220_v56, %s5671_s26  ;;  %v3282_v43 = vsel %vm3004_vm7, %v3271_v19, %v3273_v20  ;;  %v3564_v39 = vsel %vm302_vm0, %v3551_v29, 0 }
 0x140   : > { %5578 = vmatmul.mubr.msk.bf16.vlgmr.msra.gmra.mxu0 %vm298_vm1, %v5397_v35  ;;  %v3306_v48 = vsel %vm302_vm0, %v3282_v43, 0  ;;  %v6527_v35 = vld [vmem:[%s6966_s2 + $0xc] sm:$0x3] }
 0x141   : > { %3370 = vmatpush1.bf16.msra.mxu0 %v3294_v1  ;;  %3387 = vmatprep.mubr.bf16.mxu0 %v5661_v3  ;;  %v3535_v30 = vpop.permute.xlu0 %3534  ;;  %v3537_v37 = vpop.permute.xlu1 %3536 }
 0x142   : > { %5414 = vmatprep.subr.msk.bf16.mxu0 %vm302_vm0, %v3283_v10  ;;  %v3552_v57 = vsel %vm3550_vm8, %v3533_v27, %v3535_v30  ;;  %v3553_v41 = vsel %vm3550_vm8, %v3535_v30, %v3537_v37 }
 0x143   : > { %v3570_v32 = vsel %vm302_vm0, %v3553_v41, 0 }
 0x144   : > { %5409 = vmatmul.mubr.msk.bf16.vlgmr.msra.gmra.mxu1 %vm298_vm1, %v5407_v21 }
 0x145   : > { %3411 = vmatpush1.bf16.msra.mxu1 %v3300_v24  ;;  %3428 = vmatprep.mubr.bf16.mxu1 %v5661_v3  ;;  %v3539_v56 = vpop.permute.xlu0 %3538  ;;  %v3541_v25 = vpop.permute.xlu1 %3540 }
 0x146   : > { %5581 = vmatprep.subr.bf16.mxu1 %v5663_v36  ;;  %v3554_v8 = vsel %vm3550_vm8, %v3537_v37, %v3539_v56  ;;  %v3555_v46 = vsel %vm3550_vm8, %v3539_v56, %v3541_v25 }
 0x147   : > { %v3576_v34 = vsel %vm302_vm0, %v3555_v46, 0 }
 0x148   : > { %5411 = vmatmul.mubr.msk.bf16.vlgmr.msra.gmra.mxu0 %vm298_vm1, %v5407_v21 }
 0x149   : > { %3452 = vmatpush1.bf16.msra.mxu0 %v3306_v48  ;;  %3469 = vmatprep.mubr.bf16.mxu0 %v5661_v3  ;;  %v3543_v28 = vpop.permute.xlu0 %3542  ;;  %v3545_v5 = vpop.permute.xlu1 %3544 }
 0x14a   : > { %5418 = vmatprep.subr.msk.bf16.mxu0 %vm302_vm0, %v3552_v57  ;;  %v3556_v17 = vsel %vm3550_vm8, %v3541_v25, %v3543_v28 }
 0x14c   : > { %5413 = vmatmul.mubr.msk.bf16.vlgmr.msra.gmra.mxu1 %vm298_vm1, %v5407_v21 }
 0x14d   : > { %5582 = vmatpush3.bf16.msra.mxu1 %v3312_v6  ;;  %5583 = vmatprep.mubr.msk.bf16.mxu1 %vm5664_vm2, %v5663_v36  ;;  %v3547_v18 = vpop.permute.xlu0 %3546  ;;  %v3549_v31 = vpop.permute.xlu1 %3548 }
 0x14e   : > { %5420 = vmatprep.subr.msk.bf16.mxu1 %vm302_vm0, %v3554_v8  ;;  %v3558_v50 = vsel %vm3550_vm8, %v3545_v5, %v3547_v18  ;;  %v3559_v26 = vsel %vm3550_vm8, %v3547_v18, %v3549_v31 }
 0x150   : > { %v905_v22 = vpop.f32.mrf.mxu0  ;;  %5415 = vmatmul.mubr.msk.bf16.vlgmr.msra.gmra.mxu0 %vm298_vm1, %v5407_v21 }
 0x151   : > { %v6510_v44 = vadd.f32 %v905_v22, %v6231_v4  ;;  %3605 = vmatpush1.bf16.msra.mxu0 %v3564_v39  ;;  %3622 = vmatprep.mubr.bf16.mxu0 %v5661_v3  ;;  %v3807_v38 = vpop.permute.xlu0 %3806  ;;  %v3809_v23 = vpop.permute.xlu1 %3808 }
 0x152   : > { %v907_v45 = vpop.f32.mrf.mxu0  ;;  %5422 = vmatprep.subr.msk.bf16.mxu0 %vm302_vm0, %v3556_v17 }
 0x153   : > { %v6516_v2 = vadd.f32 %v907_v45, %v6241_v14 }
 0x154   : > { %v909_v7 = vpop.f32.mrf.mxu0  ;;  %v946_v4 = vpop.f32.mrf.mxu1  ;;  %5584 = vmatmul.mubr.msk.bf16.vlgmr.msra.gmra.mxu1 %vm298_vm1, %v5407_v21  ;;  %v3826_v21 = vsel %vm3550_vm8, %v3807_v38, %v3809_v23 }
 0x155   : > { %v6522_v33 = vadd.f32 %v946_v4, %v6260_v40  ;;  %3646 = vmatpush1.bf16.msra.mxu1 %v3570_v32  ;;  %3663 = vmatprep.mubr.bf16.mxu1 %v5661_v3  ;;  %v3811_v14 = vpop.permute.xlu0 %3810  ;;  %v3813_v51 = vpop.permute.xlu1 %3812  ;;  %v3557_v40 = vsel %vm3550_vm8, %v3543_v28, %v3545_v5  ;;  %v3839_v25 = vsel %vm302_vm0, %v3826_v21, 0  ;;  %v6594_v32 = vld [vmem:[%s6967_s3 + $0xc] sm:$0x3] }
 0x156   : > { %v948_v52 = vpop.f32.mrf.mxu1  ;;  %v910_v60 = vpop.f32.mrf.mxu0  ;;  %5424 = vmatprep.subr.msk.bf16.mxu1 %vm302_vm0, %v3558_v50  ;;  %v3582_v42 = vsel %vm302_vm0, %v3557_v40, 0  ;;  %v3827_v61 = vsel %vm3550_vm8, %v3809_v23, %v3811_v14  ;;  %v3828_v57 = vsel %vm3550_vm8, %v3811_v14, %v3813_v51 }
 0x157   : > { %v6533_v53 = vadd.f32 %v948_v52, %v6266_v47  ;;  %v3845_v31 = vsel %vm302_vm0, %v3828_v57, 0 }
 0x158   : > { %v950_v54 = vpop.f32.mrf.mxu1  ;;  %v987_v55 = vpop.f32.mrf.mxu0  ;;  %5419 = vmatmul.mubr.msk.bf16.vlgmr.msra.gmra.mxu0 %vm298_vm1, %v6527_v35 }
 0x159   : > { %v6539_v13 = vadd.f32 %v987_v55, %v6269_v49  ;;  %3687 = vmatpush1.bf16.msra.mxu0 %v3576_v34  ;;  %3704 = vmatprep.mubr.bf16.mxu0 %v5661_v3  ;;  %v3815_v19 = vpop.permute.xlu0 %3814  ;;  %v3817_v58 = vpop.permute.xlu1 %3816 }
 0x15a   : > { %v951_v59 = vpop.f32.mrf.mxu1  ;;  %v989_v47 = vpop.f32.mrf.mxu0  ;;  %5587 = vmatprep.subr.bf16.mxu0 %v5663_v36  ;;  %v3829_v30 = vsel %vm3550_vm8, %v3813_v51, %v3815_v19  ;;  %v3830_v17 = vsel %vm3550_vm8, %v3815_v19, %v3817_v58 }
 0x15b   : > { %v6545_v20 = vadd.f32 %v989_v47, %v6279_v16  ;;  %v3588_v16 = vsel %vm302_vm0, %v3559_v26, 0  ;;  %v3851_v50 = vsel %vm302_vm0, %v3830_v17, 0 }
 0x15c   : > { %v991_v49 = vpop.f32.mrf.mxu0  ;;  %v1028_v62 = vpop.f32.mrf.mxu1  ;;  %5421 = vmatmul.mubr.msk.bf16.vlgmr.msra.gmra.mxu1 %vm298_vm1, %v6527_v35 }
 0x15d   : > { %v6552_v0 = vadd.f32 %v1028_v62, %v6293_v63  ;;  %3728 = vmatpush1.bf16.msra.mxu1 %v3582_v42  ;;  %3745 = vmatprep.mubr.bf16.mxu1 %v5661_v3  ;;  %v3819_v15 = vpop.permute.xlu0 %3818  ;;  %v3821_v27 = vpop.permute.xlu1 %3820 }
 0x15e   : > { %v1030_v1 = vpop.f32.mrf.mxu1  ;;  %v992_v9 = vpop.f32.mrf.mxu0  ;;  %5428 = vmatprep.subr.msk.bf16.mxu1 %vm302_vm0, %v3827_v61  ;;  %v3831_v28 = vsel %vm3550_vm8, %v3817_v58, %v3819_v15 }
 0x15f   : > { %v6558_v10 = vadd.f32 %v1030_v1, %v6300_v11 }
 0x160   : > { %v1032_v63 = vpop.f32.mrf.mxu1  ;;  %v1069_v37 = vpop.f32.mrf.mxu0  ;;  %5423 = vmatmul.mubr.msk.bf16.vlgmr.msra.gmra.mxu0 %vm298_vm1, %v6527_v35 }
 0x161   : > { %v6565_v24 = vadd.f32 %v1069_v37, %v6303_v12  ;;  %5588 = vmatpush3.bf16.msra.mxu0 %v3588_v16  ;;  %5589 = vmatprep.mubr.msk.bf16.mxu0 %vm5664_vm2, %v5663_v36  ;;  %v3823_v43 = vpop.permute.xlu0 %3822  ;;  %v3825_v56 = vpop.permute.xlu1 %3824 }
 0x162   : > { %v1033_v11 = vpop.f32.mrf.mxu1  ;;  %v5531_v48 = vpop.f32.mrf.mxu0  ;;  %5430 = vmatprep.subr.msk.bf16.mxu0 %vm302_vm0, %v3829_v30  ;;  %v3833_v22 = vsel %vm3550_vm8, %v3821_v27, %v3823_v43  ;;  %v3834_v55 = vsel %vm3550_vm8, %v3823_v43, %v3825_v56 }
 0x164   : > { %v1072_v5 = vpop.f32.mrf.mxu0  ;;  %v1176_v6 = vpop.f32.mrf.mxu1  ;;  %5425 = vmatmul.mubr.msk.bf16.vlgmr.msra.gmra.mxu1 %vm298_vm1, %v6527_v35 }
 0x165   : > { %v6576_v12 = vadd.f32 %v1176_v6, %v6510_v44  ;;  %3880 = vmatpush1.bf16.msra.mxu1 %v3839_v25  ;;  %3897 = vmatprep.mubr.bf16.mxu1 %v5661_v3  ;;  %v4081_v29 = vpop.permute.xlu0 %4080  ;;  %v4083_v8 = vpop.permute.xlu1 %4082 }
 0x166   : > { %v1178_v18 = vpop.f32.mrf.mxu1  ;;  %v5532_v39 = vpop.f32.mrf.mxu0  ;;  %5432 = vmatprep.subr.msk.bf16.mxu1 %vm302_vm0, %v3831_v28  ;;  %v4101_v62 = vsel %vm4100_vm9, %v4081_v29, %v4083_v8 }
 0x167   : > { %v6582_v41 = vadd.f32 %v1178_v18, %v6516_v2  ;;  %v4114_v21 = vsel %vm302_vm0, %v4101_v62, 0 }
 0x168   : > { %v1180_v44 = vpop.f32.mrf.mxu1  ;;  %v1217_v38 = vpop.f32.mrf.mxu0  ;;  %5590 = vmatmul.mubr.msk.bf16.vlgmr.msra.gmra.mxu0 %vm298_vm1, %v6527_v35 }
 0x169   : > { %v6589_v23 = vadd.f32 %v1217_v38, %v6522_v33  ;;  %3921 = vmatpush1.bf16.msra.mxu0 %v3845_v31  ;;  %3938 = vmatprep.mubr.bf16.mxu0 %v5661_v3  ;;  %v4085_v45 = vpop.permute.xlu0 %4084  ;;  %v4087_v2 = vpop.permute.xlu1 %4086  ;;  %v3832_v33 = vsel %vm3550_vm8, %v3819_v15, %v3821_v27  ;;  %v6661_v31 = vld [vmem:[%s6966_s2 + $0xe] sm:$0x3] }
 0x16a   : > { %v1181_v46 = vpop.f32.mrf.mxu1  ;;  %v1219_v7 = vpop.f32.mrf.mxu0  ;;  %5434 = vmatprep.subr.msk.bf16.mxu0 %vm302_vm0, %v3833_v22  ;;  %v4102_v19 = vsel %vm4100_vm9, %v4083_v8, %v4085_v45  ;;  %v4103_v63 = vsel %vm4100_vm9, %v4085_v45, %v4087_v2 }
 0x16b   : > { %v6600_v4 = vadd.f32 %v1219_v7, %v6533_v53  ;;  %v3857_v53 = vsel %vm302_vm0, %v3832_v33, 0  ;;  %v4120_v57 = vsel %vm302_vm0, %v4103_v63, 0 }
 0x16c   : > { %v1221_v35 = vpop.f32.mrf.mxu0  ;;  %v1258_v14 = vpop.f32.mrf.mxu1  ;;  %5429 = vmatmul.mubr.msk.bf16.vlgmr.msra.gmra.mxu1 %vm298_vm1, %v6594_v32 }
 0x16d   : > { %v6606_v51 = vadd.f32 %v1258_v14, %v6539_v13  ;;  %3962 = vmatpush1.bf16.msra.mxu1 %v3851_v50  ;;  %3979 = vmatprep.mubr.bf16.mxu1 %v5661_v3  ;;  %v4089_v52 = vpop.permute.xlu0 %4088  ;;  %v4091_v34 = vpop.permute.xlu1 %4090  ;;  %v5176_v35 = vld [vmem:[%s6968_s4] sm:$0xf] }
 0x16e   : > { %v1260_v60 = vpop.f32.mrf.mxu1  ;;  %v1222_v40 = vpop.f32.mrf.mxu0  ;;  %5593 = vmatprep.subr.bf16.mxu1 %v5663_v36  ;;  %v4104_v15 = vsel %vm4100_vm9, %v4087_v2, %v4089_v52  ;;  %v4105_v6 = vsel %vm4100_vm9, %v4089_v52, %v4091_v34  ;;  %5179 = vperm.xlu0 %5645, %v5176_v35  }
 0x16f   : > { %v6612_v54 = vadd.f32 %v1260_v60, %v6545_v20  ;;  %v3863_v20 = vsel %vm302_vm0, %v3834_v55, 0  ;;  %v4126_v22 = vsel %vm302_vm0, %v4105_v6, 0 }
 0x170   : > { %v1262_v13 = vpop.f32.mrf.mxu1  ;;  %v1299_v58 = vpop.f32.mrf.mxu0  ;;  %5431 = vmatmul.mubr.msk.bf16.vlgmr.msra.gmra.mxu0 %vm298_vm1, %v6594_v32 }
 0x171   : > { %v6619_v59 = vadd.f32 %v1299_v58, %v6552_v0  ;;  %4003 = vmatpush1.bf16.msra.mxu0 %v3857_v53  ;;  %4020 = vmatprep.mubr.bf16.mxu0 %v5661_v3  ;;  %v4093_v42 = vpop.permute.xlu0 %4092  ;;  %v4095_v47 = vpop.permute.xlu1 %4094 }
 0x172   : > { %v1263_v26 = vpop.f32.mrf.mxu1  ;;  %v1301_v61 = vpop.f32.mrf.mxu0  ;;  %5438 = vmatprep.subr.msk.bf16.mxu0 %vm302_vm0, %v4102_v19  ;;  %v4106_v37 = vsel %vm4100_vm9, %v4091_v34, %v4093_v42 }
 0x173   : > { %v6625_v49 = vadd.f32 %v1301_v61, %v6558_v10 }
 0x174   : > { %v1303_v0 = vpop.f32.mrf.mxu0  ;;  %v1340_v27 = vpop.f32.mrf.mxu1  ;;  %5433 = vmatmul.mubr.msk.bf16.vlgmr.msra.gmra.mxu1 %vm298_vm1, %v6594_v32 }
 0x175   : > { %v6632_v1 = vadd.f32 %v1340_v27, %v6565_v24  ;;  %5594 = vmatpush3.bf16.msra.mxu1 %v3863_v20  ;;  %5595 = vmatprep.mubr.msk.bf16.mxu1 %vm5664_vm2, %v5663_v36  ;;  %v4097_v16 = vpop.permute.xlu0 %4096  ;;  %v4099_v9 = vpop.permute.xlu1 %4098 }
 0x176   : > { %v5537_v10 = vpop.f32.mrf.mxu1  ;;  %v1304_v30 = vpop.f32.mrf.mxu0  ;;  %5440 = vmatprep.subr.msk.bf16.mxu1 %vm302_vm0, %v4104_v15  ;;  %v4108_v29 = vsel %vm4100_vm9, %v4095_v47, %v4097_v16 }
 0x178   : > { %v1343_v43 = vpop.f32.mrf.mxu1  ;;  %v1448_v56 = vpop.f32.mrf.mxu0  ;;  %5435 = vmatmul.mubr.msk.bf16.vlgmr.msra.gmra.mxu0 %vm298_vm1, %v6594_v32 }
 0x179   : > { %v6643_v24 = vadd.f32 %v1448_v56, %v6576_v12  ;;  %4155 = vmatpush1.bf16.msra.mxu0 %v4114_v21  ;;  %4172 = vmatprep.mubr.bf16.mxu0 %v5661_v3  ;;  %v4356_v11 = vpop.permute.xlu0 %4355  ;;  %v4358_v25 = vpop.permute.xlu1 %4357 }
 0x17a   : > { %v5538_v48 = vpop.f32.mrf.mxu1  ;;  %v1450_v28 = vpop.f32.mrf.mxu0  ;;  %5442 = vmatprep.subr.msk.bf16.mxu0 %vm302_vm0, %v4106_v37 }
 0x17b   : > { %v6649_v5 = vadd.f32 %v1450_v28, %v6582_v41  ;;  %v6731_v28 = vld [vmem:[%s6967_s3 + $0xe] sm:$0x3] }
 0x17c   : > { %v1452_v12 = vpop.f32.mrf.mxu0  ;;  %v1489_v8 = vpop.f32.mrf.mxu1  ;;  %5596 = vmatmul.mubr.msk.bf16.vlgmr.msra.gmra.mxu1 %vm298_vm1, %v6594_v32 }
 0x17d   : > { %v6656_v18 = vadd.f32 %v1489_v8, %v6589_v23  ;;  %4196 = vmatpush1.bf16.msra.mxu1 %v4120_v57  ;;  %4213 = vmatprep.mubr.bf16.mxu1 %v5661_v3  ;;  %v4360_v39 = vpop.permute.xlu0 %4359  ;;  %v4362_v41 = vpop.permute.xlu1 %4361  ;;  %v4107_v23 = vsel %vm4100_vm9, %v4093_v42, %v4095_v47  ;;  %v4375_v42 = vsel %vm4100_vm9, %v4356_v11, %v4358_v25 }
 0x17e   : > { %v1491_v17 = vpop.f32.mrf.mxu1  ;;  %v1453_v44 = vpop.f32.mrf.mxu0  ;;  %5444 = vmatprep.subr.msk.bf16.mxu1 %vm302_vm0, %v4108_v29  ;;  %v4132_v33 = vsel %vm302_vm0, %v4107_v23, 0  ;;  %v4376_v52 = vsel %vm4100_vm9, %v4358_v25, %v4360_v39  ;;  %v4388_v15 = vsel %vm302_vm0, %v4375_v42, 0  ;;  %v4377_v27 = vsel %vm4100_vm9, %v4360_v39, %v4362_v41 }
 0x17f   : > { %v6667_v38 = vadd.f32 %v1491_v17, %v6600_v4  ;;  %v4394_v37 = vsel %vm302_vm0, %v4377_v27, 0 }
 0x180   : > { %v1493_v32 = vpop.f32.mrf.mxu1  ;;  %v1530_v45 = vpop.f32.mrf.mxu0  ;;  %5439 = vmatmul.mubr.msk.bf16.vlgmr.msra.gmra.mxu0 %vm298_vm1, %v6661_v31 }
 0x181   : > { %v6673_v2 = vadd.f32 %v1530_v45, %v6606_v51  ;;  %4237 = vmatpush1.bf16.msra.mxu0 %v4126_v22  ;;  %4254 = vmatprep.mubr.bf16.mxu0 %v5661_v3  ;;  %v4364_v46 = vpop.permute.xlu0 %4363  ;;  %v4366_v50 = vpop.permute.xlu1 %4365  ;;  %v4109_v51 = vsel %vm4100_vm9, %v4097_v16, %v4099_v9 }
 0x182   : > { %v1494_v7 = vpop.f32.mrf.mxu1  ;;  %v1532_v4 = vpop.f32.mrf.mxu0  ;;  %5599 = vmatprep.subr.bf16.mxu0 %v5663_v36  ;;  %v4138_v19 = vsel %vm302_vm0, %v4109_v51, 0  ;;  %v4378_v47 = vsel %vm4100_vm9, %v4362_v41, %v4364_v46  ;;  %v4379_v11 = vsel %vm4100_vm9, %v4364_v46, %v4366_v50 }
 0x183   : > { %v6682_v14 = vadd.f32 %v1532_v4, %v6612_v54  ;;  %v4400_v12 = vsel %vm302_vm0, %v4379_v11, 0 }
 0x184   : > { %v1534_v34 = vpop.f32.mrf.mxu0  ;;  %v1571_v60 = vpop.f32.mrf.mxu1  ;;  %5441 = vmatmul.mubr.msk.bf16.vlgmr.msra.gmra.mxu1 %vm298_vm1, %v6661_v31 }
 0x185   : > { %v6689_v53 = vadd.f32 %v1571_v60, %v6619_v59  ;;  %4278 = vmatpush1.bf16.msra.mxu1 %v4132_v33  ;;  %4295 = vmatprep.mubr.bf16.mxu1 %v5661_v3  ;;  %v4368_v40 = vpop.permute.xlu0 %4367  ;;  %v4370_v55 = vpop.permute.xlu1 %4369 }
 0x186   : > { %v1573_v54 = vpop.f32.mrf.mxu1  ;;  %v1535_v13 = vpop.f32.mrf.mxu0  ;;  %5448 = vmatprep.subr.msk.bf16.mxu1 %vm302_vm0, %v4376_v52  ;;  %v4380_v16 = vsel %vm4100_vm9, %v4366_v50, %v4368_v40 }
 0x187   : > { %v6695_v58 = vadd.f32 %v1573_v54, %v6625_v49 }
 0x188   : > { %v1575_v59 = vpop.f32.mrf.mxu1  ;;  %v1612_v26 = vpop.f32.mrf.mxu0  ;;  %5443 = vmatmul.mubr.msk.bf16.vlgmr.msra.gmra.mxu0 %vm298_vm1, %v6661_v31 }
 0x189   : > { %v6702_v20 = vadd.f32 %v1612_v26, %v6632_v1  ;;  %5600 = vmatpush3.bf16.msra.mxu0 %v4138_v19  ;;  %5601 = vmatprep.mubr.msk.bf16.mxu0 %vm5664_vm2, %v5663_v36  ;;  %v4372_v61 = vpop.permute.xlu0 %4371  ;;  %v4374_v62 = vpop.permute.xlu1 %4373 }
 0x18a   : > { %v1576_v49 = vpop.f32.mrf.mxu1  ;;  %v5543_v0 = vpop.f32.mrf.mxu0  ;;  %5450 = vmatprep.subr.msk.bf16.mxu0 %vm302_vm0, %v4378_v47  ;;  %v4382_v25 = vsel %vm4100_vm9, %v4370_v55, %v4372_v61  ;;  %v4383_v46 = vsel %vm4100_vm9, %v4372_v61, %v4374_v62 }
 0x18c   : > { %v1615_v9 = vpop.f32.mrf.mxu0  ;;  %v1719_v10 = vpop.f32.mrf.mxu1  ;;  %5445 = vmatmul.mubr.msk.bf16.vlgmr.msra.gmra.mxu1 %vm298_vm1, %v6661_v31 }
 0x18d   : > { %v6713_v1 = vadd.f32 %v1719_v10, %v6643_v24  ;;  %4429 = vmatpush1.bf16.msra.mxu1 %v4388_v15  ;;  %4446 = vmatprep.mubr.bf16.mxu1 %v5661_v3  ;;  %v4630_v21 = vpop.permute.xlu0 %4629  ;;  %v4632_v30 = vpop.permute.xlu1 %4631 }
 0x18e   : > { %v1721_v63 = vpop.f32.mrf.mxu1  ;;  %v5544_v43 = vpop.f32.mrf.mxu0  ;;  %5452 = vmatprep.subr.msk.bf16.mxu1 %vm302_vm0, %v4380_v16  ;;  %v4650_v60 = vsel %vm4649_vm10, %v4630_v21, %v4632_v30 }
 0x18f   : > { %v6719_v56 = vadd.f32 %v1721_v63, %v6649_v5  ;;  %v4663_v42 = vsel %vm302_vm0, %v4650_v60, 0 }
 0x190   : > { %v1723_v24 = vpop.f32.mrf.mxu1  ;;  %v1760_v48 = vpop.f32.mrf.mxu0  ;;  %5602 = vmatmul.mubr.msk.bf16.vlgmr.msra.gmra.mxu0 %vm298_vm1, %v6661_v31 }
 0x191   : > { %v6726_v57 = vadd.f32 %v1760_v48, %v6656_v18  ;;  %4470 = vmatpush1.bf16.msra.mxu0 %v4394_v37  ;;  %4487 = vmatprep.mubr.bf16.mxu0 %v5661_v3  ;;  %v4634_v5 = vpop.permute.xlu0 %4633  ;;  %v4636_v6 = vpop.permute.xlu1 %4635  ;;  %v4381_v18 = vsel %vm4100_vm9, %v4368_v40, %v4370_v55  ;;  %v6798_v37 = vld [vmem:[%s6966_s2 + $0x10] sm:$0x3] }
 0x192   : > { %v1724_v29 = vpop.f32.mrf.mxu1  ;;  %v1762_v8 = vpop.f32.mrf.mxu0  ;;  %5454 = vmatprep.subr.msk.bf16.mxu0 %vm302_vm0, %v4382_v25  ;;  %v4651_v50 = vsel %vm4649_vm10, %v4632_v30, %v4634_v5  ;;  %v4652_v59 = vsel %vm4649_vm10, %v4634_v5, %v4636_v6 }
 0x193   : > { %v6737_v31 = vadd.f32 %v1762_v8, %v6667_v38  ;;  %v4406_v38 = vsel %vm302_vm0, %v4381_v18, 0  ;;  %v4669_v27 = vsel %vm302_vm0, %v4652_v59, 0 }
 0x194   : > { %v1764_v39 = vpop.f32.mrf.mxu0  ;;  %v1801_v41 = vpop.f32.mrf.mxu1  ;;  %5449 = vmatmul.mubr.msk.bf16.vlgmr.msra.gmra.mxu1 %vm298_vm1, %v6731_v28 }
 0x195   : > { %v6743_v17 = vadd.f32 %v1801_v41, %v6673_v2  ;;  %4511 = vmatpush1.bf16.msra.mxu1 %v4400_v12  ;;  %4528 = vmatprep.mubr.bf16.mxu1 %v5661_v3  ;;  %v4638_v22 = vpop.permute.xlu0 %4637  ;;  %v4640_v44 = vpop.permute.xlu1 %4639 }
 0x196   : > { %v1803_v23 = vpop.f32.mrf.mxu1  ;;  %v1765_v32 = vpop.f32.mrf.mxu0  ;;  %5605 = vmatprep.subr.bf16.mxu1 %v5663_v36  ;;  %v4653_v40 = vsel %vm4649_vm10, %v4636_v6, %v4638_v22  ;;  %v4654_v10 = vsel %vm4649_vm10, %v4638_v22, %v4640_v44 }
 0x197   : > { %v6749_v45 = vadd.f32 %v1803_v23, %v6682_v14  ;;  %v4412_v14 = vsel %vm302_vm0, %v4383_v46, 0  ;;  %v4675_v11 = vsel %vm302_vm0, %v4654_v10, 0 }
 0x198   : > { %v1805_v2 = vpop.f32.mrf.mxu1  ;;  %v1842_v7 = vpop.f32.mrf.mxu0  ;;  %5451 = vmatmul.mubr.msk.bf16.vlgmr.msra.gmra.mxu0 %vm298_vm1, %v6731_v28 }
 0x199   : > { %v6756_v33 = vadd.f32 %v1842_v7, %v6689_v53  ;;  %4552 = vmatpush1.bf16.msra.mxu0 %v4406_v38  ;;  %4569 = vmatprep.mubr.bf16.mxu0 %v5661_v3  ;;  %v4642_v4 = vpop.permute.xlu0 %4641  ;;  %v4644_v35 = vpop.permute.xlu1 %4643 }
 0x19a   : > { %v1806_v51 = vpop.f32.mrf.mxu1  ;;  %v1844_v52 = vpop.f32.mrf.mxu0  ;;  %5458 = vmatprep.subr.msk.bf16.mxu0 %vm302_vm0, %v4651_v50  ;;  %v4655_v26 = vsel %vm4649_vm10, %v4640_v44, %v4642_v4  ;;  %v4656_v48 = vsel %vm4649_vm10, %v4642_v4, %v4644_v35 }
 0x19b   : > { %v6762_v34 = vadd.f32 %v1844_v52, %v6695_v58  ;;  %v4681_v8 = vsel %vm302_vm0, %v4656_v48, 0 }
 0x19c   : > { %v1846_v53 = vpop.f32.mrf.mxu0  ;;  %v1883_v55 = vpop.f32.mrf.mxu1  ;;  %5453 = vmatmul.mubr.msk.bf16.vlgmr.msra.gmra.mxu1 %vm298_vm1, %v6731_v28 }
 0x19d   : > { %v6769_v54 = vadd.f32 %v1883_v55, %v6702_v20  ;;  %5606 = vmatpush3.bf16.msra.mxu1 %v4412_v14  ;;  %5607 = vmatprep.mubr.msk.bf16.mxu1 %vm5664_vm2, %v5663_v36  ;;  %v4646_v19 = vpop.permute.xlu0 %4645  ;;  %v4648_v13 = vpop.permute.xlu1 %4647 }
 0x19e   : > { %v5549_v58 = vpop.f32.mrf.mxu1  ;;  %v1847_v47 = vpop.f32.mrf.mxu0  ;;  %5460 = vmatprep.subr.msk.bf16.mxu1 %vm302_vm0, %v4653_v40  ;;  %v4657_v21 = vsel %vm4649_vm10, %v4644_v35, %v4646_v19  ;;  %v4658_v39 = vsel %vm4649_vm10, %v4646_v19, %v4648_v13 }
 0x1a0   : > { %v1886_v61 = vpop.f32.mrf.mxu1  ;;  %v1991_v62 = vpop.f32.mrf.mxu0  ;;  %5455 = vmatmul.mubr.msk.bf16.vlgmr.msra.gmra.mxu0 %vm298_vm1, %v6731_v28 }
 0x1a1   : > { %v6780_v20 = vadd.f32 %v1991_v62, %v6713_v1  ;;  %4704 = vmatpush1.bf16.msra.mxu0 %v4663_v42  ;;  %4721 = vmatprep.mubr.bf16.mxu0 %v5661_v3  ;;  %v4905_v49 = vpop.permute.xlu0 %4904  ;;  %v4907_v15 = vpop.permute.xlu1 %4906 }
 0x1a2   : > { %v5550_v0 = vpop.f32.mrf.mxu1  ;;  %v1993_v16 = vpop.f32.mrf.mxu0  ;;  %5462 = vmatprep.subr.msk.bf16.mxu0 %vm302_vm0, %v4655_v26  ;;  %v4924_v2 = vsel %vm4649_vm10, %v4905_v49, %v4907_v15  ;;  %v5467_v49 = vld [vmem:[%s6967_s3 + $0x10] sm:$0x3] }
 0x1a3   : > { %v6786_v9 = vadd.f32 %v1993_v16, %v6719_v56  ;;  %v4937_v14 = vsel %vm302_vm0, %v4924_v2, 0 }
 0x1a4   : > { %v1995_v1 = vpop.f32.mrf.mxu0  ;;  %v2032_v30 = vpop.f32.mrf.mxu1  ;;  %5608 = vmatmul.mubr.msk.bf16.vlgmr.msra.gmra.mxu1 %vm298_vm1, %v6731_v28 }
 0x1a5   : > { %v6793_v63 = vadd.f32 %v2032_v30, %v6726_v57  ;;  %4745 = vmatpush1.bf16.msra.mxu1 %v4669_v27  ;;  %4762 = vmatprep.mubr.bf16.mxu1 %v5661_v3  ;;  %v4909_v43 = vpop.permute.xlu0 %4908  ;;  %v4911_v57 = vpop.permute.xlu1 %4910 }
 0x1a6   : > { %v2034_v56 = vpop.f32.mrf.mxu1  ;;  %v1996_v25 = vpop.f32.mrf.mxu0  ;;  %5464 = vmatprep.subr.msk.bf16.mxu1 %vm302_vm0, %v4657_v21  ;;  %v4925_v41 = vsel %vm4649_vm10, %v4907_v15, %v4909_v43 }
 0x1a7   : > { %v6804_v24 = vadd.f32 %v2034_v56, %v6737_v31 }
 0x1a8   : > { %v2036_v28 = vpop.f32.mrf.mxu1  ;;  %v2073_v5 = vpop.f32.mrf.mxu0  ;;  %5459 = vmatmul.mubr.msk.bf16.vlgmr.msra.gmra.mxu0 %vm298_vm1, %v6798_v37 }
 0x1a9   : > { %v6810_v6 = vadd.f32 %v2073_v5, %v6743_v17  ;;  %4786 = vmatpush1.bf16.msra.mxu0 %v4675_v11  ;;  %4803 = vmatprep.mubr.bf16.mxu0 %v5661_v3  ;;  %v4913_v29 = vpop.permute.xlu0 %4912  ;;  %v4915_v38 = vpop.permute.xlu1 %4914 }
 0x1aa   : > { %v2037_v12 = vpop.f32.mrf.mxu1  ;;  %v2075_v31 = vpop.f32.mrf.mxu0  ;;  %5611 = vmatprep.subr.bf16.mxu0 %v5663_v36  ;;  %v4927_v7 = vsel %vm4649_vm10, %v4911_v57, %v4913_v29  ;;  %v4928_v59 = vsel %vm4649_vm10, %v4913_v29, %v4915_v38 }
 0x1ab   : > { %v6816_v18 = vadd.f32 %v2075_v31, %v6749_v45  ;;  %v4687_v45 = vsel %vm302_vm0, %v4658_v39, 0  ;;  %v4949_v0 = vsel %vm302_vm0, %v4928_v59, 0 }
 0x1ac   : > { %v2077_v22 = vpop.f32.mrf.mxu0  ;;  %v2114_v17 = vpop.f32.mrf.mxu1  ;;  %5461 = vmatmul.mubr.msk.bf16.vlgmr.msra.gmra.mxu1 %vm298_vm1, %v6798_v37 }
 0x1ad   : > { %v6823_v44 = vadd.f32 %v2114_v17, %v6756_v33  ;;  %4827 = vmatpush1.bf16.msra.mxu1 %v4681_v8  ;;  %4844 = vmatprep.mubr.bf16.mxu1 %v5661_v3  ;;  %v4917_v23 = vpop.permute.xlu0 %4916  ;;  %v4919_v53 = vpop.permute.xlu1 %4918 }
 0x1ae   : > { %v2116_v32 = vpop.f32.mrf.mxu1  ;;  %v2078_v46 = vpop.f32.mrf.mxu0  ;;  %5468 = vmatprep.subr.msk.bf16.mxu1 %vm302_vm0, %v4925_v41  ;;  %v4929_v60 = vsel %vm4649_vm10, %v4915_v38, %v4917_v23 }
 0x1af   : > { %v6829_v50 = vadd.f32 %v2116_v32, %v6762_v34  ;;  %v4926_v34 = vsel %vm4649_vm10, %v4909_v43, %v4911_v57 }
 0x1b0   : > { %v2118_v33 = vpop.f32.mrf.mxu1  ;;  %v2155_v4 = vpop.f32.mrf.mxu0  ;;  %5463 = vmatmul.mubr.msk.bf16.vlgmr.msra.gmra.mxu0 %vm298_vm1, %v6798_v37  ;;  %v4943_v58 = vsel %vm302_vm0, %v4926_v34, 0 }
 0x1b1   : > { %v6836_v35 = vadd.f32 %v2155_v4, %v6769_v54  ;;  %5612 = vmatpush3.bf16.msra.mxu0 %v4687_v45  ;;  %5613 = vmatprep.mubr.msk.bf16.mxu0 %vm5664_vm2, %v5663_v36  ;;  %v4921_v40 = vpop.permute.xlu0 %4920  ;;  %v4923_v10 = vpop.permute.xlu1 %4922 }
 0x1b2   : > { %v2119_v51 = vpop.f32.mrf.mxu1  ;;  %v5555_v52 = vpop.f32.mrf.mxu0  ;;  %5470 = vmatprep.subr.msk.bf16.mxu0 %vm302_vm0, %v4927_v7  ;;  %v4931_v26 = vsel %vm4649_vm10, %v4919_v53, %v4921_v40  ;;  %v4932_v11 = vsel %vm4649_vm10, %v4921_v40, %v4923_v10 }
 0x1b3   : > { %v4961_v28 = vsel %vm302_vm0, %v4932_v11, 0 }
 0x1b4   : > { %v2158_v55 = vpop.f32.mrf.mxu0  ;;  %v2262_v19 = vpop.f32.mrf.mxu1  ;;  %5465 = vmatmul.mubr.msk.bf16.vlgmr.msra.gmra.mxu1 %vm298_vm1, %v6798_v37 }
 0x1b5   : > { %v2432_v54 = vadd.f32 %v2262_v19, %v6780_v20  ;;  %4978 = vmatpush1.bf16.msra.mxu1 %v4937_v14  ;;  %4995 = vmatprep.mubr.bf16.mxu1 %v5661_v3 }
 0x1b6   : > { %v2264_v13 = vpop.f32.mrf.mxu1  ;;  %v5556_v42 = vpop.f32.mrf.mxu0  ;;  %5472 = vmatprep.subr.msk.bf16.mxu1 %vm302_vm0, %v4929_v60 }
 0x1b7   : > { %v2433_v47 = vadd.f32 %v2264_v13, %v6786_v9  ;;  %v4930_v9 = vsel %vm4649_vm10, %v4917_v23, %v4919_v53 }
 0x1b8   : > { %v2266_v61 = vpop.f32.mrf.mxu1  ;;  %v2303_v62 = vpop.f32.mrf.mxu0  ;;  %5614 = vmatmul.mubr.msk.bf16.vlgmr.msra.gmra.mxu0 %vm298_vm1, %v6798_v37  ;;  %v4955_v37 = vsel %vm302_vm0, %v4930_v9, 0 }
 0x1b9   : > { %v2434_v20 = vadd.f32 %v2303_v62, %v6793_v63  ;;  %5019 = vmatpush1.bf16.msra.mxu0 %v4943_v58  ;;  %5036 = vmatprep.mubr.bf16.mxu0 %v5661_v3 }
 0x1ba   : > { %v2267_v15 = vpop.f32.mrf.mxu1  ;;  %v2305_v27 = vpop.f32.mrf.mxu0  ;;  %5474 = vmatprep.subr.msk.bf16.mxu0 %vm302_vm0, %v4931_v26 }
 0x1bb   : > { %v2435_v16 = vadd.f32 %v2305_v27, %v6804_v24 }
 0x1bc   : > { %v2307_v21 = vpop.f32.mrf.mxu0  ;;  %v2344_v1 = vpop.f32.mrf.mxu1  ;;  %5469 = vmatmul.mubr.msk.bf16.vlgmr.msra.gmra.mxu1 %vm298_vm1, %v5467_v49 }
 0x1bd   : > { %v2436_v30 = vadd.f32 %v2344_v1, %v6810_v6  ;;  %5060 = vmatpush1.bf16.msra.mxu1 %v4949_v0  ;;  %5077 = vmatprep.mubr.bf16.mxu1 %v5661_v3 }
 0x1be   : > { %v2346_v63 = vpop.f32.mrf.mxu1  ;;  %v2308_v43 = vpop.f32.mrf.mxu0  ;;  %5617 = vmatprep.subr.bf16.mxu1 %v5663_v36 }
 0x1bf   : > { %v2437_v56 = vadd.f32 %v2346_v63, %v6816_v18 }
 0x1c0   : > { %v2348_v25 = vpop.f32.mrf.mxu1  ;;  %v2385_v24 = vpop.f32.mrf.mxu0  ;;  %5471 = vmatmul.mubr.msk.bf16.vlgmr.msra.gmra.mxu0 %vm298_vm1, %v5467_v49 }
 0x1c1   : > { %v2438_v48 = vadd.f32 %v2385_v24, %v6823_v44  ;;  %5101 = vmatpush1.bf16.msra.mxu0 %v4955_v37  ;;  %5118 = vmatprep.mubr.bf16.mxu0 %v5661_v3 }
 0x1c2   : > { %v2349_v57 = vpop.f32.mrf.mxu1  ;;  %v2387_v5 = vpop.f32.mrf.mxu0 }
 0x1c3   : > { %v2439_v6 = vadd.f32 %v2387_v5, %v6829_v50 }
 0x1c4   : > { %v2389_v29 = vpop.f32.mrf.mxu0  ;;  %v2426_v12 = vpop.f32.mrf.mxu1  ;;  %5473 = vmatmul.mubr.msk.bf16.vlgmr.msra.gmra.mxu1 %vm298_vm1, %v5467_v49 }
 0x1c5   : > { %v2440_v8 = vadd.f32 %v2426_v12, %v6836_v35  ;;  %5618 = vmatpush3.bf16.msra.mxu1 %v4961_v28  ;;  %5619 = vmatprep.mubr.msk.bf16.mxu1 %vm5664_vm2, %v5663_v36 }
 0x1c6   : > { %v2390_v31 = vpop.f32.mrf.mxu0  ;;  %v5561_v18 = vpop.f32.mrf.mxu1 }
 0x1c8   : > { %v2429_v39 = vpop.f32.mrf.mxu1  ;;  %v2534_v3 = vpop.f32.mrf.mxu0  ;;  %5475 = vmatmul.mubr.msk.bf16.vlgmr.msra.gmra.mxu0 %vm298_vm1, %v5467_v49 }
 0x1c9   : > { %v2704_v41 = vadd.f32 %v2534_v3, %v2432_v54 }
 0x1ca   : > { %v5562_v22 = vpop.f32.mrf.mxu1  ;;  %v2536_v17 = vpop.f32.mrf.mxu0 }
 0x1cb   : > { %v2705_v44 = vadd.f32 %v2536_v17, %v2433_v47 }
 0x1cc   : > { %v2538_v23 = vpop.f32.mrf.mxu0  ;;  %v2575_v38 = vpop.f32.mrf.mxu1  ;;  %5620 = vmatmul.mubr.msk.bf16.vlgmr.msra.gmra.mxu1 %vm298_vm1, %v5467_v49 }
 0x1cd   : > { %v2706_v32 = vadd.f32 %v2575_v38, %v2434_v20 }
 0x1ce   : > { %v2539_v45 = vpop.f32.mrf.mxu0  ;;  %v2577_v46 = vpop.f32.mrf.mxu1 }
 0x1cf   : > { %v2707_v50 = vadd.f32 %v2577_v46, %v2435_v16 }
 0x1d0   : > { %v2579_v2 = vpop.f32.mrf.mxu1  ;;  %v2616_v36 = vpop.f32.mrf.mxu0 }
 0x1d1   : > { %v2708_v7 = vadd.f32 %v2616_v36, %v2436_v30 }
 0x1d2   : > { %v2580_v33 = vpop.f32.mrf.mxu1  ;;  %v2618_v4 = vpop.f32.mrf.mxu0 }
 0x1d3   : > { %v2709_v35 = vadd.f32 %v2618_v4, %v2437_v56 }
 0x1d4   : > { %v2620_v51 = vpop.f32.mrf.mxu0  ;;  %v2657_v14 = vpop.f32.mrf.mxu1 }
 0x1d5   : > { %v2710_v52 = vadd.f32 %v2657_v14, %v2438_v48 }
 0x1d6   : > { %v2621_v34 = vpop.f32.mrf.mxu0  ;;  %v2659_v60 = vpop.f32.mrf.mxu1 }
 0x1d7   : > { %v2711_v40 = vadd.f32 %v2659_v60, %v2439_v6 }
 0x1d8   : > { %v2661_v53 = vpop.f32.mrf.mxu1  ;;  %v2698_v55 = vpop.f32.mrf.mxu0 }
 0x1d9   : > { %v2712_v19 = vadd.f32 %v2698_v55, %v2440_v8 }
 0x1da   : > { %v2662_v54 = vpop.f32.mrf.mxu1  ;;  %v5567_v13 = vpop.f32.mrf.mxu0 }
 0x1dc   : > { %v2701_v58 = vpop.f32.mrf.mxu0  ;;  %v2805_v42 = vpop.f32.mrf.mxu1 }
 0x1dd   : > { %v2975_v47 = vadd.f32 %v2805_v42, %v2704_v41 }
 0x1de   : > { %v5568_v59 = vpop.f32.mrf.mxu0  ;;  %v2807_v26 = vpop.f32.mrf.mxu1 }
 0x1df   : > { %v2976_v61 = vadd.f32 %v2807_v26, %v2705_v44 }
 0x1e0   : > { %v2809_v62 = vpop.f32.mrf.mxu1  ;;  %v2846_v20 = vpop.f32.mrf.mxu0 }
 0x1e1   : > { %v2977_v49 = vadd.f32 %v2846_v20, %v2706_v32 }
 0x1e2   : > { %v2810_v15 = vpop.f32.mrf.mxu1  ;;  %v2848_v0 = vpop.f32.mrf.mxu0 }
 0x1e3   : > { %v2978_v27 = vadd.f32 %v2848_v0, %v2707_v50 }
 0x1e4   : > { %v2850_v16 = vpop.f32.mrf.mxu0  ;;  %v2887_v9 = vpop.f32.mrf.mxu1 }
 0x1e5   : > { %v2979_v10 = vadd.f32 %v2887_v9, %v2708_v7 }
 0x1e6   : > { %v2851_v21 = vpop.f32.mrf.mxu0  ;;  %v2889_v1 = vpop.f32.mrf.mxu1 }
 0x1e7   : > { %v2980_v30 = vadd.f32 %v2889_v1, %v2709_v35 }
 0x1e8   : > { %v2891_v63 = vpop.f32.mrf.mxu1  ;;  %v2928_v37 = vpop.f32.mrf.mxu0 }
 0x1e9   : > { %v2981_v43 = vadd.f32 %v2928_v37, %v2710_v52 }
 0x1ea   : > { %v2892_v56 = vpop.f32.mrf.mxu1  ;;  %v2930_v11 = vpop.f32.mrf.mxu0 }
 0x1eb   : > { %v2982_v25 = vadd.f32 %v2930_v11, %v2711_v40 }
 0x1ec   : > { %v2932_v24 = vpop.f32.mrf.mxu0  ;;  %v2969_v48 = vpop.f32.mrf.mxu1 }
 0x1ed   : > { %v2983_v57 = vadd.f32 %v2969_v48, %v2712_v19 }
 0x1ee   : > { %v2933_v28 = vpop.f32.mrf.mxu0  ;;  %v5573_v5 = vpop.f32.mrf.mxu1 }
 0x1f0   : > { %v2972_v6 = vpop.f32.mrf.mxu1  ;;  %v3077_v29 = vpop.f32.mrf.mxu0 }
 0x1f1   : > { %v3247_v12 = vadd.f32 %v3077_v29, %v2975_v47 }
 0x1f2   : > { %v5574_v8 = vpop.f32.mrf.mxu1  ;;  %v3079_v31 = vpop.f32.mrf.mxu0 }
 0x1f3   : > { %v3248_v18 = vadd.f32 %v3079_v31, %v2976_v61 }
 0x1f4   : > { %v3081_v39 = vpop.f32.mrf.mxu0  ;;  %v3118_v3 = vpop.f32.mrf.mxu1 }
 0x1f5   : > { %v3249_v41 = vadd.f32 %v3118_v3, %v2977_v49 }
 0x1f6   : > { %v3082_v22 = vpop.f32.mrf.mxu0  ;;  %v3120_v17 = vpop.f32.mrf.mxu1 }
 0x1f7   : > { %v3250_v44 = vadd.f32 %v3120_v17, %v2978_v27 }
 0x1f8   : > { %v3122_v23 = vpop.f32.mrf.mxu1  ;;  %v3159_v38 = vpop.f32.mrf.mxu0 }
 0x1f9   : > { %v3251_v32 = vadd.f32 %v3159_v38, %v2979_v10 }
 0x1fa   : > { %v3123_v45 = vpop.f32.mrf.mxu1  ;;  %v3161_v46 = vpop.f32.mrf.mxu0 }
 0x1fb   : > { %v3252_v50 = vadd.f32 %v3161_v46, %v2980_v30 }
 0x1fc   : > { %v3163_v2 = vpop.f32.mrf.mxu0  ;;  %v3200_v36 = vpop.f32.mrf.mxu1 }
 0x1fd   : > { %v3253_v7 = vadd.f32 %v3200_v36, %v2981_v43 }
 0x1fe   : > { %v3164_v33 = vpop.f32.mrf.mxu0  ;;  %v3202_v4 = vpop.f32.mrf.mxu1 }
 0x1ff   : > { %v3254_v35 = vadd.f32 %v3202_v4, %v2982_v25 }
 0x200   : > { %v3204_v51 = vpop.f32.mrf.mxu1  ;;  %v3241_v14 = vpop.f32.mrf.mxu0 }
 0x201   : > { %v3255_v52 = vadd.f32 %v3241_v14, %v2983_v57 }
 0x202   : > { %v3205_v34 = vpop.f32.mrf.mxu1  ;;  %v5579_v60 = vpop.f32.mrf.mxu0 }
 0x204   : > { %v3244_v40 = vpop.f32.mrf.mxu0  ;;  %v3348_v53 = vpop.f32.mrf.mxu1 }
 0x205   : > { %v3518_v55 = vadd.f32 %v3348_v53, %v3247_v12 }
 0x206   : > { %v5580_v19 = vpop.f32.mrf.mxu0  ;;  %v3350_v54 = vpop.f32.mrf.mxu1 }
 0x207   : > { %v3519_v13 = vadd.f32 %v3350_v54, %v3248_v18 }
 0x208   : > { %v3352_v58 = vpop.f32.mrf.mxu1  ;;  %v3389_v42 = vpop.f32.mrf.mxu0 }
 0x209   : > { %v3520_v47 = vadd.f32 %v3389_v42, %v3249_v41 }
 0x20a   : > { %v3353_v59 = vpop.f32.mrf.mxu1  ;;  %v3391_v26 = vpop.f32.mrf.mxu0 }
 0x20b   : > { %v3521_v61 = vadd.f32 %v3391_v26, %v3250_v44 }
 0x20c   : > { %v3393_v62 = vpop.f32.mrf.mxu0  ;;  %v3430_v20 = vpop.f32.mrf.mxu1 }
 0x20d   : > { %v3522_v49 = vadd.f32 %v3430_v20, %v3251_v32 }
 0x20e   : > { %v3394_v15 = vpop.f32.mrf.mxu0  ;;  %v3432_v0 = vpop.f32.mrf.mxu1 }
 0x20f   : > { %v3523_v27 = vadd.f32 %v3432_v0, %v3252_v50 }
 0x210   : > { %v3434_v16 = vpop.f32.mrf.mxu1  ;;  %v3471_v9 = vpop.f32.mrf.mxu0 }
 0x211   : > { %v3524_v10 = vadd.f32 %v3471_v9, %v3253_v7 }
 0x212   : > { %v3435_v21 = vpop.f32.mrf.mxu1  ;;  %v3473_v1 = vpop.f32.mrf.mxu0 }
 0x213   : > { %v3525_v30 = vadd.f32 %v3473_v1, %v3254_v35 }
 0x214   : > { %v3475_v63 = vpop.f32.mrf.mxu0  ;;  %v3512_v37 = vpop.f32.mrf.mxu1 }
 0x215   : > { %v3526_v43 = vadd.f32 %v3512_v37, %v3255_v52 }
 0x216   : > { %v3476_v56 = vpop.f32.mrf.mxu0  ;;  %v5585_v11 = vpop.f32.mrf.mxu1 }
 0x218   : > { %v3515_v25 = vpop.f32.mrf.mxu1  ;;  %v3624_v24 = vpop.f32.mrf.mxu0 }
 0x219   : > { %v3794_v48 = vadd.f32 %v3624_v24, %v3518_v55 }
 0x21a   : > { %v5586_v57 = vpop.f32.mrf.mxu1  ;;  %v3626_v28 = vpop.f32.mrf.mxu0 }
 0x21b   : > { %v3795_v5 = vadd.f32 %v3626_v28, %v3519_v13 }
 0x21c   : > { %v3628_v6 = vpop.f32.mrf.mxu0  ;;  %v3665_v29 = vpop.f32.mrf.mxu1 }
 0x21d   : > { %v3796_v12 = vadd.f32 %v3665_v29, %v3520_v47 }
 0x21e   : > { %v3629_v8 = vpop.f32.mrf.mxu0  ;;  %v3667_v31 = vpop.f32.mrf.mxu1 }
 0x21f   : > { %v3797_v18 = vadd.f32 %v3667_v31, %v3521_v61 }
 0x220   : > { %v3669_v39 = vpop.f32.mrf.mxu1  ;;  %v3706_v3 = vpop.f32.mrf.mxu0 }
 0x221   : > { %v3798_v41 = vadd.f32 %v3706_v3, %v3522_v49 }
 0x222   : > { %v3670_v22 = vpop.f32.mrf.mxu1  ;;  %v3708_v17 = vpop.f32.mrf.mxu0 }
 0x223   : > { %v3799_v44 = vadd.f32 %v3708_v17, %v3523_v27 }
 0x224   : > { %v3710_v23 = vpop.f32.mrf.mxu0  ;;  %v3747_v38 = vpop.f32.mrf.mxu1 }
 0x225   : > { %v3800_v32 = vadd.f32 %v3747_v38, %v3524_v10 }
 0x226   : > { %v3711_v45 = vpop.f32.mrf.mxu0  ;;  %v3749_v46 = vpop.f32.mrf.mxu1 }
 0x227   : > { %v3801_v50 = vadd.f32 %v3749_v46, %v3525_v30 }
 0x228   : > { %v3751_v2 = vpop.f32.mrf.mxu1  ;;  %v3788_v36 = vpop.f32.mrf.mxu0 }
 0x229   : > { %v3802_v7 = vadd.f32 %v3788_v36, %v3526_v43 }
 0x22a   : > { %v3752_v33 = vpop.f32.mrf.mxu1  ;;  %v5591_v4 = vpop.f32.mrf.mxu0 }
 0x22c   : > { %v3791_v35 = vpop.f32.mrf.mxu0  ;;  %v3899_v51 = vpop.f32.mrf.mxu1 }
 0x22d   : > { %v6882_v14 = vadd.f32 %v3899_v51, %v3794_v48 }
 0x22e   : > { %v5592_v52 = vpop.f32.mrf.mxu0  ;;  %v3901_v34 = vpop.f32.mrf.mxu1 }
 0x22f   : > { %v6884_v60 = vadd.f32 %v3901_v34, %v3795_v5 }
 0x230   : > { %v3903_v40 = vpop.f32.mrf.mxu1  ;;  %v3940_v53 = vpop.f32.mrf.mxu0 }
 0x231   : > { %v6886_v55 = vadd.f32 %v3940_v53, %v3796_v12 }
 0x232   : > { %v3904_v19 = vpop.f32.mrf.mxu1  ;;  %v3942_v54 = vpop.f32.mrf.mxu0 }
 0x233   : > { %v6888_v13 = vadd.f32 %v3942_v54, %v3797_v18 }
 0x234   : > { %v3944_v58 = vpop.f32.mrf.mxu0  ;;  %v3981_v42 = vpop.f32.mrf.mxu1 }
 0x235   : > { %v6890_v47 = vadd.f32 %v3981_v42, %v3798_v41 }
 0x236   : > { %v3945_v59 = vpop.f32.mrf.mxu0  ;;  %v3983_v26 = vpop.f32.mrf.mxu1 }
 0x237   : > { %v6892_v61 = vadd.f32 %v3983_v26, %v3799_v44 }
 0x238   : > { %v3985_v62 = vpop.f32.mrf.mxu1  ;;  %v4022_v20 = vpop.f32.mrf.mxu0 }
 0x239   : > { %v6894_v49 = vadd.f32 %v4022_v20, %v3800_v32 }
 0x23a   : > { %v3986_v15 = vpop.f32.mrf.mxu1  ;;  %v4024_v0 = vpop.f32.mrf.mxu0 }
 0x23b   : > { %v6896_v27 = vadd.f32 %v4024_v0, %v3801_v50 }
 0x23c   : > { %v4026_v16 = vpop.f32.mrf.mxu0  ;;  %v4063_v9 = vpop.f32.mrf.mxu1 }
 0x23d   : > { %v6898_v10 = vadd.f32 %v4063_v9, %v3802_v7 }
 0x23e   : > { %v4027_v21 = vpop.f32.mrf.mxu0  ;;  %v5597_v1 = vpop.f32.mrf.mxu1 }
 0x240   : > { %v4066_v30 = vpop.f32.mrf.mxu1  ;;  %v4174_v63 = vpop.f32.mrf.mxu0 }
 0x242   : > { %v5598_v37 = vpop.f32.mrf.mxu1  ;;  %v4176_v43 = vpop.f32.mrf.mxu0 }
 0x243   : > { %v4344_v37 = vadd.f32 %v4174_v63, %v6882_v14 }
 0x244   : > { %v4178_v56 = vpop.f32.mrf.mxu0  ;;  %v4215_v11 = vpop.f32.mrf.mxu1 }
 0x246   : > { %v4179_v25 = vpop.f32.mrf.mxu0  ;;  %v4217_v24 = vpop.f32.mrf.mxu1 }
 0x248   : > { %v4219_v48 = vpop.f32.mrf.mxu1  ;;  %v6900_v57 = vpop.f32.mrf.mxu0 }
 0x249   : > { %v4345_v48 = vadd.f32 %v4176_v43, %v6884_v60  ;;  %v4348_v60 = vadd.f32 %v6900_v57, %v6890_v47 }
 0x24a   : > { %v4220_v28 = vpop.f32.mrf.mxu1  ;;  %v6902_v5 = vpop.f32.mrf.mxu0 }
 0x24c   : > { %v4260_v6 = vpop.f32.mrf.mxu0  ;;  %v6904_v29 = vpop.f32.mrf.mxu1 }
 0x24d   : > { %v4350_v47 = vadd.f32 %v6904_v29, %v6894_v49 }
 0x24e   : > { %v4261_v12 = vpop.f32.mrf.mxu0  ;;  %v6906_v8 = vpop.f32.mrf.mxu1 }
 0x250   : > { %v4301_v31 = vpop.f32.mrf.mxu1  ;;  %v6908_v18 = vpop.f32.mrf.mxu0 }
 0x251   : > { %v4346_v31 = vadd.f32 %v4215_v11, %v6886_v55 }
 0x252   : > { %v4302_v39 = vpop.f32.mrf.mxu1  ;;  %v5603_v3 = vpop.f32.mrf.mxu0 }
 0x254   : > { %v4341_v41 = vpop.f32.mrf.mxu0  ;;  %v4448_v22 = vpop.f32.mrf.mxu1 }
 0x255   : > { %v4618_v28 = vadd.f32 %v4448_v22, %v4344_v37  ;;  %v6923_v41 = vpop.permute.xlu0 %5179 }
 0x256   : > { %v5604_v17 = vpop.f32.mrf.mxu0  ;;  %v4450_v44 = vpop.f32.mrf.mxu1 }
 0x257   : > { %v4619_v39 = vadd.f32 %v4450_v44, %v4345_v48  ;;  %v4349_v44 = vadd.f32 %v6902_v5, %v6892_v61  ;;  %v4351_v5 = vadd.f32 %v6906_v8, %v6896_v27 }
 0x258   : > { %v4452_v23 = vpop.f32.mrf.mxu1  ;;  %v4489_v38 = vpop.f32.mrf.mxu0 }
 0x259   : > { %v4620_v14 = vadd.f32 %v4489_v38, %v4346_v31 }
 0x25a   : > { %v4453_v32 = vpop.f32.mrf.mxu1  ;;  %v4491_v45 = vpop.f32.mrf.mxu0 }
 0x25b   : > { %v4347_v32 = vadd.f32 %v4217_v24, %v6888_v13 }
 0x25c   : > { %v4493_v46 = vpop.f32.mrf.mxu0  ;;  %v4530_v50 = vpop.f32.mrf.mxu1 }
 0x25e   : > { %v4494_v2 = vpop.f32.mrf.mxu0  ;;  %v4532_v36 = vpop.f32.mrf.mxu1 }
 0x25f   : > { %v4621_v2 = vadd.f32 %v4491_v45, %v4347_v32  ;;  %v4623_v57 = vadd.f32 %v4532_v36, %v4349_v44 }
 0x260   : > { %v4534_v7 = vpop.f32.mrf.mxu1  ;;  %v6910_v33 = vpop.f32.mrf.mxu0 }
 0x262   : > { %v4535_v4 = vpop.f32.mrf.mxu1  ;;  %v6912_v35 = vpop.f32.mrf.mxu0 }
 0x263   : > { %v4622_v4 = vadd.f32 %v4530_v50, %v4348_v60  ;;  %v4624_v50 = vadd.f32 %v6910_v33, %v4350_v47  ;;  %v4625_v27 = vadd.f32 %v6912_v35, %v4351_v5 }
 0x264   : > { %v4575_v51 = vpop.f32.mrf.mxu0  ;;  %v6914_v52 = vpop.f32.mrf.mxu1 }
 0x266   : > { %v4576_v34 = vpop.f32.mrf.mxu0  ;;  %v5609_v40 = vpop.f32.mrf.mxu1 }
 0x268   : > { %v4615_v53 = vpop.f32.mrf.mxu1  ;;  %v4723_v19 = vpop.f32.mrf.mxu0 }
 0x269   : > { %v4893_v3 = vadd.f32 %v4723_v19, %v4618_v28 }
 0x26a   : > { %v5610_v54 = vpop.f32.mrf.mxu1  ;;  %v4725_v58 = vpop.f32.mrf.mxu0 }
 0x26b   : > { %v4894_v63 = vadd.f32 %v4725_v58, %v4619_v39 }
 0x26c   : > { %v4727_v42 = vpop.f32.mrf.mxu0  ;;  %v4764_v59 = vpop.f32.mrf.mxu1 }
 0x26d   : > { %v4895_v7 = vadd.f32 %v4764_v59, %v4620_v14 }
 0x26e   : > { %v4728_v26 = vpop.f32.mrf.mxu0  ;;  %v4766_v62 = vpop.f32.mrf.mxu1 }
 0x26f   : > { %v4896_v24 = vadd.f32 %v4766_v62, %v4621_v2  ;;  %v4352_v62 = vadd.f32 %v6908_v18, %v6898_v10 }
 0x270   : > { %v4768_v20 = vpop.f32.mrf.mxu1  ;;  %v4805_v15 = vpop.f32.mrf.mxu0 }
 0x271   : > { %v4897_v45 = vadd.f32 %v4805_v15, %v4622_v4 }
 0x272   : > { %v4769_v0 = vpop.f32.mrf.mxu1  ;;  %v4807_v16 = vpop.f32.mrf.mxu0 }
 0x273   : > { %v4898_v36 = vadd.f32 %v4807_v16, %v4623_v57  ;;  %v4626_v16 = vadd.f32 %v6914_v52, %v4352_v62 }
 0x274   : > { %v4809_v9 = vpop.f32.mrf.mxu0  ;;  %v4846_v21 = vpop.f32.mrf.mxu1 }
 0x275   : > { %v4899_v8 = vadd.f32 %v4846_v21, %v4624_v50 }
 0x276   : > { %v4810_v1 = vpop.f32.mrf.mxu0  ;;  %v6916_v30 = vpop.f32.mrf.mxu1 }
 0x277   : > { %v4900_v48 = vadd.f32 %v6916_v30, %v4625_v27 }
 0x278   : > { %v4850_v56 = vpop.f32.mrf.mxu1  ;;  %v6919_v25 = vpop.f32.mrf.mxu0 }
 0x279   : > { %v4901_v35 = vadd.f32 %v6919_v25, %v4626_v16 }
 0x27a   : > { %v4851_v6 = vpop.f32.mrf.mxu1  ;;  %v5615_v12 = vpop.f32.mrf.mxu0 }
 0x27c   : > { %v4890_v17 = vpop.f32.mrf.mxu0  ;;  %v4997_v23 = vpop.f32.mrf.mxu1 }
 0x27d   : > { %v5167_v46 = vadd.f32 %v4997_v23, %v4893_v3 }
 0x27e   : > { %v5616_v43 = vpop.f32.mrf.mxu0  ;;  %v4999_v22 = vpop.f32.mrf.mxu1 }
 0x27f   : > { %v5168_v55 = vadd.f32 %v4999_v22, %v4894_v63  ;;  %v5182_v11 = vadd.f32 %v6923_v41, %v5167_v46 }
 0x280   : > { %v5001_v51 = vpop.f32.mrf.mxu1  ;;  %v5038_v13 = vpop.f32.mrf.mxu0 }
 0x281   : > { %v5183_v38 = vadd.f32 %v6923_v41, %v5168_v55  ;;  %v5169_v34 = vadd.f32 %v5038_v13, %v4895_v7  ;;  %v5191_v19 = vmax.f32 %v5182_v11, 0.0 }
 0x282   : > { %v5002_v40 = vpop.f32.mrf.mxu1  ;;  %v5040_v53 = vpop.f32.mrf.mxu0 }
 0x283   : > { %v5192_v54 = vmax.f32 %v5183_v38, 0.0  ;;  %v5184_v58 = vadd.f32 %v6923_v41, %v5169_v34  ;;  %v5170_v61 = vadd.f32 %v5040_v53, %v4896_v24 }
 0x284   : > { %v5042_v49 = vpop.f32.mrf.mxu0  ;;  %v5079_v29 = vpop.f32.mrf.mxu1 }
 0x285   : > { %v5208_v42 = vcombine.low %v5191_v19, %v5192_v54  ;;  %v5185_v59 = vadd.f32 %v6923_v41, %v5170_v61  ;;  %v5171_v26 = vadd.f32 %v5079_v29, %v4897_v45  ;;  %v5193_v15 = vmax.f32 %v5184_v58, 0.0 }
 0x286   : > { %v5043_v33 = vpop.f32.mrf.mxu0  ;;  %v5081_v20 = vpop.f32.mrf.mxu1 }
 0x287   : > { %5216 = vst [vmem:[%s6942_s6] sm:$0xff] %v5208_v42  ;;  %v5194_v0 = vmax.f32 %v5185_v59, 0.0  ;;  %v5186_v9 = vadd.f32 %v6923_v41, %v5171_v26  ;;  %v5172_v1 = vadd.f32 %v5081_v20, %v4898_v36 }
 0x288   : > { %v5083_v37 = vpop.f32.mrf.mxu1  ;;  %v5120_v56 = vpop.f32.mrf.mxu0 }
 0x289   : > { %v5209_v28 = vcombine.low %v5193_v15, %v5194_v0  ;;  %v5187_v10 = vadd.f32 %v6923_v41, %v5172_v1  ;;  %v5173_v18 = vadd.f32 %v5120_v56, %v4899_v8  ;;  %v5195_v12 = vmax.f32 %v5186_v9, 0.0 }
 0x28a   : > { %v5084_v21 = vpop.f32.mrf.mxu1  ;;  %v5122_v6 = vpop.f32.mrf.mxu0 }
 0x28b   : > { %5217 = vst [vmem:[%s6942_s6 + $0x8] sm:$0xff] %v5209_v28  ;;  %v5196_v31 = vmax.f32 %v5187_v10, 0.0  ;;  %v5188_v39 = vadd.f32 %v6923_v41, %v5173_v18  ;;  %v5174_v3 = vadd.f32 %v5122_v6, %v4900_v48 }
 0x28c   : > { %v5124_v52 = vpop.f32.mrf.mxu0  ;;  %v5161_v17 = vpop.f32.mrf.mxu1 }
 0x28d   : > { %v5210_v30 = vcombine.low %v5195_v12, %v5196_v31  ;;  %v5189_v23 = vadd.f32 %v6923_v41, %v5174_v3  ;;  %v5175_v32 = vadd.f32 %v5161_v17, %v4901_v35  ;;  %v5197_v25 = vmax.f32 %v5188_v39, 0.0 }
 0x28e   : > { %v5125_v14 = vpop.f32.mrf.mxu0  ;;  %v5621_v63 = vpop.f32.mrf.mxu1 }
 0x28f   : > { %5218 = vst [vmem:[%s6942_s6 + $0x10] sm:$0xff] %v5210_v30  ;;  %v5198_v46 = vmax.f32 %v5189_v23, 0.0  ;;  %v5190_v60 = vadd.f32 %v6923_v41, %v5175_v32 }
 0x290   : > { %v5164_v43 = vpop.f32.mrf.mxu1 }
 0x291   : > { %v5211_v22 = vcombine.low %v5197_v25, %v5198_v46  ;;  %v5199_v2 = vmax.f32 %v5190_v60, 0.0 }
 0x292   : > { %v5622_v7 = vpop.f32.mrf.mxu1 }
 0x293   : > { %5219 = vst [vmem:[%s6942_s6 + $0x18] sm:$0xff] %v5211_v22  ;;  %5221 = vst.msk [vmem:[%s6942_s6 + $0x20] sm:$0xf] %vm5220_vm11, %v5199_v2 }
 0x294 PF: > { %s15_s18 = sadd.s32 1, %s5658_s18  }
 0x295   : > { %p12_p4 = scmp.ge.s32.totalorder %s15_s18, 4  }
 0x297   :  { %14 = sbr.rel (!%p12_p4) target bundleno = 1 (0x1), region = 89 }

// kernel: unet_up_forward.5
= control target key start
LH: loop header
LB: loop body
LE: loop exit
PB: predicated region body
PF: predicated region fallthrough
CT: control target
= control target key end

     0   :  { %s2971_s12 = smov 0   ;;  %s3489_s0 = inlined_call_operand.vmem [shape: bf16[2,4,1190], index: 0, kind: input, shape index: {}]   ;;  %s3490_s1 = inlined_call_operand.vmem [shape: bf16[9,4,4], index: 1, kind: input, shape index: {}]   ;;  %s3491_s2 = inlined_call_operand.vmem [shape: f32[4,1], index: 2, kind: input, shape index: {}]   ;;  %s3492_s3 = inlined_call_operand.vmem [shape: f32[2,4,1088], index: 3, kind: output, shape index: {}]  }
   0x1 LB: > { %s2734_s13 = sadd.s32 4294967295, %s2937_s12   ;;  %p2738_p0 = scmp.ge.s32.totalorder %s2937_s12, 1  ;;  %s2937_s12 = sphi %s2971_s12, %s13_s12  }
   0x2   : > { %p137_p1 = scmp.lt.s32.totalorder %s2937_s12, 3 }
   0x4   : > { %p138_p2 = pnand %p2738_p0, %p137_p1 }
   0x5   : > { %p161_p3 = scmp.lt.s32.totalorder (!%p138_p2), %s2734_s13, 1  ;;  %s2941_s18 = smov (!%p138_p2), 127  }
   0x6   : > { %141 = sbr.rel (%p138_p2) target bundleno = 520 (0x208), region = 32  ;;  %s2942_s19 = smov (!%p138_p2), 126  }
   0x7   : > { %s2943_s20 = smov (!%p138_p2), 94   ;;  %s2944_s21 = smov (!%p138_p2), 93  }
   0x8   : > { %s2945_s22 = smov (!%p138_p2), 92   ;;  %s2946_s23 = smov (!%p138_p2), 60  }
   0x9   : > { %s2947_s24 = smov (!%p138_p2), 59   ;;  %s2949_s27 = smov (!%p138_p2), 58  }
   0xb   : > { %v185_v0 = vlaneseq  ;;  %v2939_v1 = vmov 1983009808   ;;  %s3494_s13 = smov (!%p161_p3, %s2734_s13), 1  ;;  %v2940_v6 = vmov 0   ;;  %vm240_vm0 = vcmask 1039360  }
   0xc   : > { %v183_v2 = vunpack.c.l.s4 %v2939_v1  ;;  %s2905_s14 = smul.u32 20, %s3494_s13  ;;  %313 = vmatprep.mubr.bf16.mxu0 %v2940_v6  ;;  %354 = vmatprep.mubr.bf16.mxu1 %v2940_v6  ;;  %vm253_vm1 = vcmask 1041408   ;;  %v2741_v28 = vld [vmem:[%s3490_s1 + $0x2] sm:$0x3]  ;;  %vm249_vm2 = vcmask 31744   ;;  %v2948_v41 = vmov 0.0  }
   0xd   : > { %v186_v3 = vshrl.u32 %v185_v0, 7  ;;  %2927 = vset.pattern.permute.xlu1 %v2940_v6  ;;  %2928 = vset.pattern.permute.xlu0 %v2940_v6  ;;  %vm2950_vm3 = vmmov 0   ;;  %v175_v52 = vld [vmem:[%s3490_s1] sm:$0x3]  ;;  %vm739_vm4 = vcmask 1031168   ;;  %vm1011_vm5 = vcmask 769024  }
   0xe   : > { %v184_v4 = vunpack.c.0.s8 %v183_v2  ;;  %s165_s17 = scalar_lea.vmem %s3489_s0, %s2905_s14  ;;  %vm1283_vm6 = vcmask 760832   ;;  %vm1555_vm7 = vcmask 752640   ;;  %vm1830_vm8 = vcmask 490496  }
   0xf   : > { %v172_v7 = vld [vmem:[%s165_s17] sm:$0xff]  ;;  %v173_v10 = vld [vmem:[%s165_s17 + $0x8] sm:$0xff]  ;;  %v3020_v19 = vld.sshfl [vmem:[%s165_s17 + $0x10] sm:$0x33 pattern:$0x76325410] }
  0x10   : > { %v187_v5 = vsub.s32 %v184_v4, %v186_v3  ;;  %v181_v9 = vcombine.high %v172_v7, %v172_v7  ;;  %v198_v15 = vcombine.high %v173_v10, %v173_v10  ;;  %v3070_v20 = vcombine.high %v3020_v19, %v3020_v19 }
  0x11   : > { %v513_v60 = vsel %vm253_vm1, %v3020_v19, 0  ;;  %vm2105_vm9 = vcmask 482304   ;;  %vm2380_vm10 = vcmask 474112   ;;  %vm2677_vm11 = vcmask 519168  }
  0x12   : > { %v2989_v8 = vrot.slane %v172_v7, %v187_v5  ;;  %v2992_v11 = vrot.slane %v181_v9, %v187_v5  ;;  %v3003_v14 = vrot.slane %v173_v10, %v187_v5  ;;  %v3011_v17 = vrot.slane %v198_v15, %v187_v5 }
  0x14   : > { %222 = vrot.lane.b32.xlu0 %v2989_v8, %s2941_s18  ;;  %v2996_v12 = vcombine.high %v2989_v8, %v2989_v8  ;;  %226 = vrot.lane.b32.xlu1 %v2992_v11, %s2941_s18  ;;  %v3001_v13 = vcombine.high %v2992_v11, %v2992_v11  ;;  %v3009_v16 = vcombine.high %v3003_v14, %v3003_v14  ;;  %v489_v46 = vsel %vm253_vm1, %v2989_v8, 0 }
  0x15   : > { %v3017_v18 = vcombine.high %v3011_v17, %v3011_v17  ;;  %v495_v49 = vsel %vm253_vm1, %v2992_v11, 0  ;;  %v501_v53 = vsel %vm253_vm1, %v3003_v14, 0  ;;  %v507_v56 = vsel %vm253_vm1, %v3011_v17, 0 }
  0x18   : > { %224 = vrot.lane.b32.xlu0 %v2996_v12, %s2941_s18  ;;  %228 = vrot.lane.b32.xlu1 %v3001_v13, %s2941_s18 }
  0x1c   : > { %230 = vrot.lane.b32.xlu0 %v3003_v14, %s2941_s18  ;;  %232 = vrot.lane.b32.xlu1 %v3009_v16, %s2941_s18 }
  0x20   : > { %234 = vrot.lane.b32.xlu0 %v3011_v17, %s2941_s18  ;;  %236 = vrot.lane.b32.xlu1 %v3017_v18, %s2941_s18 }
  0x24   : > { %238 = vrot.lane.b32.xlu0 %v3020_v19, %s2941_s18  ;;  %721 = vrot.lane.b32.xlu1 %v2989_v8, %s2942_s19 }
  0x28   : > { %723 = vrot.lane.b32.xlu0 %v2996_v12, %s2942_s19  ;;  %725 = vrot.lane.b32.xlu1 %v2992_v11, %s2942_s19 }
  0x2c   : > { %727 = vrot.lane.b32.xlu0 %v3001_v13, %s2942_s19  ;;  %729 = vrot.lane.b32.xlu1 %v3003_v14, %s2942_s19 }
  0x30   : > { %731 = vrot.lane.b32.xlu0 %v3009_v16, %s2942_s19  ;;  %733 = vrot.lane.b32.xlu1 %v3011_v17, %s2942_s19 }
  0x34   : > { %735 = vrot.lane.b32.xlu0 %v3017_v18, %s2942_s19  ;;  %737 = vrot.lane.b32.xlu1 %v3020_v19, %s2942_s19 }
  0x38   : > { %993 = vrot.lane.b32.xlu0 %v2989_v8, %s2943_s20  ;;  %995 = vrot.lane.b32.xlu1 %v2996_v12, %s2943_s20 }
  0x3c   : > { %997 = vrot.lane.b32.xlu0 %v2992_v11, %s2943_s20  ;;  %999 = vrot.lane.b32.xlu1 %v3001_v13, %s2943_s20 }
  0x40   : > { %1001 = vrot.lane.b32.xlu0 %v3003_v14, %s2943_s20  ;;  %1003 = vrot.lane.b32.xlu1 %v3009_v16, %s2943_s20 }
  0x44   : > { %1005 = vrot.lane.b32.xlu0 %v3011_v17, %s2943_s20  ;;  %1007 = vrot.lane.b32.xlu1 %v3017_v18, %s2943_s20 }
  0x48   : > { %1009 = vrot.lane.b32.xlu0 %v3020_v19, %s2943_s20  ;;  %1265 = vrot.lane.b32.xlu1 %v2989_v8, %s2944_s21 }
  0x4c   : > { %1267 = vrot.lane.b32.xlu0 %v2996_v12, %s2944_s21  ;;  %1269 = vrot.lane.b32.xlu1 %v2992_v11, %s2944_s21 }
  0x50   : > { %1271 = vrot.lane.b32.xlu0 %v3001_v13, %s2944_s21  ;;  %1273 = vrot.lane.b32.xlu1 %v3003_v14, %s2944_s21 }
  0x54   : > { %1275 = vrot.lane.b32.xlu0 %v3009_v16, %s2944_s21  ;;  %1277 = vrot.lane.b32.xlu1 %v3011_v17, %s2944_s21 }
  0x58   : > { %1279 = vrot.lane.b32.xlu0 %v3017_v18, %s2944_s21  ;;  %1281 = vrot.lane.b32.xlu1 %v3020_v19, %s2944_s21  ;;  %s2906_s21 = smul.u32 36, %s3494_s13 }
  0x5c   : > { %1537 = vrot.lane.b32.xlu0 %v2989_v8, %s2945_s22  ;;  %1539 = vrot.lane.b32.xlu1 %v2996_v12, %s2945_s22 }
  0x60   : > { %1541 = vrot.lane.b32.xlu0 %v2992_v11, %s2945_s22  ;;  %1543 = vrot.lane.b32.xlu1 %v3001_v13, %s2945_s22 }
  0x64   : > { %1545 = vrot.lane.b32.xlu0 %v3003_v14, %s2945_s22  ;;  %1547 = vrot.lane.b32.xlu1 %v3009_v16, %s2945_s22 }
  0x68   : > { %1549 = vrot.lane.b32.xlu0 %v3011_v17, %s2945_s22  ;;  %1551 = vrot.lane.b32.xlu1 %v3017_v18, %s2945_s22 }
  0x6c   : > { %1553 = vrot.lane.b32.xlu0 %v3020_v19, %s2945_s22  ;;  %1810 = vrot.lane.b32.xlu1 %v2989_v8, %s2946_s23 }
  0x70   : > { %1812 = vrot.lane.b32.xlu0 %v2996_v12, %s2946_s23  ;;  %1814 = vrot.lane.b32.xlu1 %v2992_v11, %s2946_s23 }
  0x74   : > { %1816 = vrot.lane.b32.xlu0 %v3001_v13, %s2946_s23  ;;  %1818 = vrot.lane.b32.xlu1 %v3003_v14, %s2946_s23 }
  0x78   : > { %1820 = vrot.lane.b32.xlu0 %v3009_v16, %s2946_s23  ;;  %1822 = vrot.lane.b32.xlu1 %v3011_v17, %s2946_s23 }
  0x7c   : > { %1824 = vrot.lane.b32.xlu0 %v3017_v18, %s2946_s23  ;;  %1826 = vrot.lane.b32.xlu1 %v3020_v19, %s2946_s23 }
  0x80   : > { %1828 = vrot.lane.b32.xlu0 %v3070_v20, %s2946_s23  ;;  %2085 = vrot.lane.b32.xlu1 %v2989_v8, %s2947_s24  ;;  %s3467_s23 = scalar_lea.vmem %s3492_s3, %s2906_s21 }
  0x84   : > { %2087 = vrot.lane.b32.xlu0 %v2996_v12, %s2947_s24  ;;  %2089 = vrot.lane.b32.xlu1 %v2992_v11, %s2947_s24 }
  0x86   : > { %v223_v21 = vpop.permute.xlu0 %222  ;;  %v227_v22 = vpop.permute.xlu1 %226 }
  0x88   : > { %2091 = vrot.lane.b32.xlu0 %v3001_v13, %s2947_s24  ;;  %2093 = vrot.lane.b32.xlu1 %v3003_v14, %s2947_s24 }
  0x8a   : > { %v225_v23 = vpop.permute.xlu0 %224  ;;  %v229_v26 = vpop.permute.xlu1 %228 }
  0x8b   : > { %v242_v24 = vsel %vm240_vm0, %v225_v23, %v227_v22  ;;  %v241_v25 = vsel %vm240_vm0, %v223_v21, %v225_v23  ;;  %v243_v29 = vsel %vm240_vm0, %v227_v22, %v229_v26 }
  0x8c   : > { %2743 = vmatprep.subr.msk.bf16.mxu0 %vm253_vm1, %v242_v24  ;;  %v255_v27 = vsel %vm253_vm1, %v241_v25, 0  ;;  %2095 = vrot.lane.b32.xlu0 %v3009_v16, %s2947_s24  ;;  %v261_v33 = vsel %vm253_vm1, %v243_v29, 0 }
  0x8d   : > { %296 = vmatpush1.bf16.msra.mxu0 %v255_v27  ;;  %2097 = vrot.lane.b32.xlu1 %v3011_v17, %s2947_s24 }
  0x8e   : > { %v231_v30 = vpop.permute.xlu0 %230  ;;  %v233_v32 = vpop.permute.xlu1 %232 }
  0x8f   : > { %v244_v31 = vsel %vm240_vm0, %v229_v26, %v231_v30  ;;  %v245_v34 = vsel %vm240_vm0, %v231_v30, %v233_v32 }
  0x90   : > { %2744 = vmatmul.mubr.msk.bf16.vlgmr.msra.gmra.mxu0 %vm249_vm2, %v2741_v28  ;;  %2745 = vmatprep.subr.msk.bf16.mxu1 %vm253_vm1, %v244_v31  ;;  %v267_v37 = vsel %vm253_vm1, %v245_v34, 0 }
  0x91   : > { %337 = vmatpush1.bf16.msra.mxu1 %v261_v33  ;;  %395 = vmatprep.mubr.bf16.mxu0 %v2940_v6 }
  0x92   : > { %v235_v35 = vpop.permute.xlu0 %234  ;;  %2099 = vrot.lane.b32.xlu0 %v3017_v18, %s2947_s24  ;;  %2101 = vrot.lane.b32.xlu1 %v3020_v19, %s2947_s24  ;;  %v237_v38 = vpop.permute.xlu1 %236 }
  0x93   : > { %v246_v36 = vsel %vm240_vm0, %v233_v32, %v235_v35  ;;  %v247_v39 = vsel %vm240_vm0, %v235_v35, %v237_v38 }
  0x94   : > { %2746 = vmatmul.mubr.msk.bf16.vlgmr.msra.gmra.mxu1 %vm249_vm2, %v2741_v28  ;;  %2747 = vmatprep.subr.msk.bf16.mxu0 %vm253_vm1, %v246_v36  ;;  %v273_v44 = vsel %vm253_vm1, %v247_v39, 0  ;;  %v2771_v36 = vld [vmem:[%s3490_s1 + $0x6] sm:$0x3] }
  0x95   : > { %378 = vmatpush1.bf16.msra.mxu0 %v267_v37  ;;  %436 = vmatprep.mubr.bf16.mxu1 %v2940_v6 }
  0x96   : > { %v239_v40 = vpop.permute.xlu0 %238  ;;  %2851 = vmatprep.subr.bf16.mxu0 %v2948_v41  ;;  %2103 = vrot.lane.b32.xlu0 %v3070_v20, %s2947_s24  ;;  %v722_v45 = vpop.permute.xlu1 %721 }
  0x97   : > { %v248_v42 = vsel %vm240_vm0, %v237_v38, %v239_v40  ;;  %v279_v43 = vsel %vm253_vm1, %v239_v40, 0  ;;  %2360 = vrot.lane.b32.xlu1 %v2989_v8, %s2949_s27 }
  0x98   : > { %2748 = vmatmul.mubr.msk.bf16.vlgmr.msra.gmra.mxu0 %vm249_vm2, %v2741_v28  ;;  %2749 = vmatprep.subr.msk.bf16.mxu1 %vm253_vm1, %v248_v42 }
  0x99   : > { %419 = vmatpush1.bf16.msra.mxu1 %v273_v44  ;;  %2852 = vmatpush3.bf16.msra.mxu0 %v279_v43 }
  0x9a   : > { %2853 = vmatprep.mubr.msk.bf16.mxu0 %vm2950_vm3, %v2948_v41  ;;  %2752 = vmatprep.subr.msk.bf16.mxu1 %vm253_vm1, %v2996_v12  ;;  %v724_v47 = vpop.permute.xlu0 %723  ;;  %v726_v48 = vpop.permute.xlu1 %725 }
  0x9b   : > { %2754 = vmatprep.subr.msk.bf16.mxu0 %vm253_vm1, %v3001_v13  ;;  %2362 = vrot.lane.b32.xlu0 %v2996_v12, %s2949_s27  ;;  %v741_v58 = vsel %vm739_vm4, %v724_v47, %v726_v48  ;;  %v740_v62 = vsel %vm739_vm4, %v722_v45, %v724_v47  ;;  %v2761_v12 = vld [vmem:[%s3490_s1 + $0x4] sm:$0x3] }
  0x9c   : > { %2750 = vmatmul.mubr.msk.bf16.vlgmr.msra.gmra.mxu1 %vm249_vm2, %v2741_v28  ;;  %2364 = vrot.lane.b32.xlu1 %v2992_v11, %s2949_s27  ;;  %v752_v1 = vsel %vm253_vm1, %v740_v62, 0 }
  0x9d   : > { %530 = vmatpush1.bf16.msra.mxu1 %v489_v46  ;;  %547 = vmatprep.mubr.bf16.mxu1 %v2940_v6 }
  0x9e   : > { %2756 = vmatprep.subr.msk.bf16.mxu1 %vm253_vm1, %v3009_v16  ;;  %v728_v50 = vpop.permute.xlu0 %727  ;;  %v730_v51 = vpop.permute.xlu1 %729 }
  0x9f   : > { %2366 = vrot.lane.b32.xlu0 %v3001_v13, %s2949_s27  ;;  %v743_v63 = vsel %vm739_vm4, %v728_v50, %v730_v51  ;;  %v742_v3 = vsel %vm739_vm4, %v726_v48, %v728_v50 }
  0xa0   : > { %2854 = vmatmul.mubr.msk.bf16.vlgmr.msra.gmra.mxu0 %vm249_vm2, %v2741_v28  ;;  %2368 = vrot.lane.b32.xlu1 %v3003_v14, %s2949_s27  ;;  %v758_v7 = vsel %vm253_vm1, %v742_v3, 0 }
  0xa1   : > { %571 = vmatpush1.bf16.msra.mxu0 %v495_v49  ;;  %588 = vmatprep.mubr.bf16.mxu0 %v2940_v6 }
  0xa2   : > { %2758 = vmatprep.subr.msk.bf16.mxu0 %vm253_vm1, %v3017_v18  ;;  %v732_v54 = vpop.permute.xlu0 %731  ;;  %v734_v55 = vpop.permute.xlu1 %733 }
  0xa3   : > { %2370 = vrot.lane.b32.xlu0 %v3009_v16, %s2949_s27  ;;  %v745_v4 = vsel %vm739_vm4, %v732_v54, %v734_v55  ;;  %v744_v9 = vsel %vm739_vm4, %v730_v51, %v732_v54 }
  0xa4   : > { %2753 = vmatmul.mubr.msk.bf16.vlgmr.msra.gmra.mxu1 %vm249_vm2, %v175_v52  ;;  %2372 = vrot.lane.b32.xlu1 %v3011_v17, %s2949_s27  ;;  %v764_v13 = vsel %vm253_vm1, %v744_v9, 0 }
  0xa5   : > { %612 = vmatpush1.bf16.msra.mxu1 %v501_v53  ;;  %629 = vmatprep.mubr.bf16.mxu1 %v2940_v6 }
  0xa6   : > { %2857 = vmatprep.subr.bf16.mxu1 %v2948_v41  ;;  %v736_v57 = vpop.permute.xlu0 %735  ;;  %v738_v59 = vpop.permute.xlu1 %737 }
  0xa7   : > { %2374 = vrot.lane.b32.xlu0 %v3017_v18, %s2949_s27  ;;  %v747_v10 = vsel %vm739_vm4, %v736_v57, %v738_v59  ;;  %v746_v15 = vsel %vm739_vm4, %v734_v55, %v736_v57  ;;  %v776_v21 = vsel %vm253_vm1, %v738_v59, 0 }
  0xa8   : > { %2755 = vmatmul.mubr.msk.bf16.vlgmr.msra.gmra.mxu0 %vm249_vm2, %v175_v52  ;;  %2376 = vrot.lane.b32.xlu1 %v3020_v19, %s2949_s27  ;;  %v770_v17 = vsel %vm253_vm1, %v746_v15, 0 }
  0xa9   : > { %653 = vmatpush1.bf16.msra.mxu0 %v507_v56  ;;  %670 = vmatprep.mubr.bf16.mxu0 %v2940_v6 }
  0xaa   : > { %2762 = vmatprep.subr.msk.bf16.mxu0 %vm253_vm1, %v741_v58  ;;  %v994_v61 = vpop.permute.xlu0 %993  ;;  %v996_v0 = vpop.permute.xlu1 %995 }
  0xab   : > { %2378 = vrot.lane.b32.xlu0 %v3070_v20, %s2949_s27  ;;  %v1012_v23 = vsel %vm1011_vm5, %v994_v61, %v996_v0  ;;  %v2781_v61 = vld [vmem:[%s3490_s1 + $0x8] sm:$0x3] }
  0xac   : > { %2757 = vmatmul.mubr.msk.bf16.vlgmr.msra.gmra.mxu1 %vm249_vm2, %v175_v52  ;;  %v1024_v26 = vsel %vm253_vm1, %v1012_v23, 0 }
  0xad   : > { %2858 = vmatpush3.bf16.msra.mxu1 %v513_v60  ;;  %2859 = vmatprep.mubr.msk.bf16.mxu1 %vm2950_vm3, %v2948_v41 }
  0xae   : > { %2764 = vmatprep.subr.msk.bf16.mxu1 %vm253_vm1, %v743_v63  ;;  %v998_v2 = vpop.permute.xlu0 %997  ;;  %v1000_v5 = vpop.permute.xlu1 %999 }
  0xaf   : > { %v1013_v19 = vsel %vm1011_vm5, %v996_v0, %v998_v2  ;;  %v1014_v28 = vsel %vm1011_vm5, %v998_v2, %v1000_v5 }
  0xb0   : > { %2759 = vmatmul.mubr.msk.bf16.vlgmr.msra.gmra.mxu0 %vm249_vm2, %v175_v52  ;;  %v1030_v31 = vsel %vm253_vm1, %v1014_v28, 0  ;;  %v2633_v28 = vld [vmem:[%s3491_s2] sm:$0xf] }
  0xb1   : > { %793 = vmatpush1.bf16.msra.mxu0 %v752_v1  ;;  %810 = vmatprep.mubr.bf16.mxu0 %v2940_v6 }
  0xb2   : > { %2766 = vmatprep.subr.msk.bf16.mxu0 %vm253_vm1, %v745_v4  ;;  %v1002_v8 = vpop.permute.xlu0 %1001  ;;  %v1004_v11 = vpop.permute.xlu1 %1003  ;;  %2636 = vperm.xlu1 %2927, %v2633_v28  }
  0xb3   : > { %v1015_v24 = vsel %vm1011_vm5, %v1000_v5, %v1002_v8  ;;  %v1016_v33 = vsel %vm1011_vm5, %v1002_v8, %v1004_v11 }
  0xb4   : > { %2860 = vmatmul.mubr.msk.bf16.vlgmr.msra.gmra.mxu1 %vm249_vm2, %v175_v52  ;;  %v1036_v37 = vsel %vm253_vm1, %v1016_v33, 0 }
  0xb5   : > { %834 = vmatpush1.bf16.msra.mxu1 %v758_v7  ;;  %851 = vmatprep.mubr.bf16.mxu1 %v2940_v6 }
  0xb6   : > { %2768 = vmatprep.subr.msk.bf16.mxu1 %vm253_vm1, %v747_v10  ;;  %v1006_v14 = vpop.permute.xlu0 %1005  ;;  %v1008_v16 = vpop.permute.xlu1 %1007 }
  0xb7   : > { %v1017_v29 = vsel %vm1011_vm5, %v1004_v11, %v1006_v14  ;;  %v1018_v39 = vsel %vm1011_vm5, %v1006_v14, %v1008_v16 }
  0xb8   : > { %2763 = vmatmul.mubr.msk.bf16.vlgmr.msra.gmra.mxu0 %vm249_vm2, %v2761_v12  ;;  %v1042_v42 = vsel %vm253_vm1, %v1018_v39, 0 }
  0xb9   : > { %875 = vmatpush1.bf16.msra.mxu0 %v764_v13  ;;  %892 = vmatprep.mubr.bf16.mxu0 %v2940_v6 }
  0xba   : > { %2863 = vmatprep.subr.bf16.mxu0 %v2948_v41  ;;  %v1010_v18 = vpop.permute.xlu0 %1009  ;;  %v1266_v20 = vpop.permute.xlu1 %1265 }
  0xbb   : > { %v1019_v34 = vsel %vm1011_vm5, %v1008_v16, %v1010_v18  ;;  %v1048_v46 = vsel %vm253_vm1, %v1010_v18, 0 }
  0xbc   : > { %2765 = vmatmul.mubr.msk.bf16.vlgmr.msra.gmra.mxu1 %vm249_vm2, %v2761_v12 }
  0xbd   : > { %916 = vmatpush1.bf16.msra.mxu1 %v770_v17  ;;  %933 = vmatprep.mubr.bf16.mxu1 %v2940_v6 }
  0xbe   : > { %2772 = vmatprep.subr.msk.bf16.mxu1 %vm253_vm1, %v1013_v19  ;;  %v1268_v22 = vpop.permute.xlu0 %1267  ;;  %v1270_v25 = vpop.permute.xlu1 %1269 }
  0xbf   : > { %v1285_v44 = vsel %vm1283_vm6, %v1268_v22, %v1270_v25  ;;  %v1284_v48 = vsel %vm1283_vm6, %v1266_v20, %v1268_v22  ;;  %v2791_v22 = vld [vmem:[%s3490_s1 + $0xa] sm:$0x3] }
  0xc0   : > { %2767 = vmatmul.mubr.msk.bf16.vlgmr.msra.gmra.mxu0 %vm249_vm2, %v2761_v12  ;;  %v1296_v51 = vsel %vm253_vm1, %v1284_v48, 0 }
  0xc1   : > { %2864 = vmatpush3.bf16.msra.mxu0 %v776_v21  ;;  %2865 = vmatprep.mubr.msk.bf16.mxu0 %vm2950_vm3, %v2948_v41 }
  0xc2   : > { %2774 = vmatprep.subr.msk.bf16.mxu0 %vm253_vm1, %v1015_v24  ;;  %v1272_v27 = vpop.permute.xlu0 %1271  ;;  %v1274_v30 = vpop.permute.xlu1 %1273 }
  0xc3   : > { %v1287_v49 = vsel %vm1283_vm6, %v1272_v27, %v1274_v30  ;;  %v1286_v53 = vsel %vm1283_vm6, %v1270_v25, %v1272_v27 }
  0xc4   : > { %2769 = vmatmul.mubr.msk.bf16.vlgmr.msra.gmra.mxu1 %vm249_vm2, %v2761_v12  ;;  %v1302_v56 = vsel %vm253_vm1, %v1286_v53, 0 }
  0xc5   : > { %1065 = vmatpush1.bf16.msra.mxu1 %v1024_v26  ;;  %1082 = vmatprep.mubr.bf16.mxu1 %v2940_v6 }
  0xc6   : > { %2776 = vmatprep.subr.msk.bf16.mxu1 %vm253_vm1, %v1017_v29  ;;  %v1276_v32 = vpop.permute.xlu0 %1275  ;;  %v1278_v35 = vpop.permute.xlu1 %1277 }
  0xc7   : > { %v1289_v54 = vsel %vm1283_vm6, %v1276_v32, %v1278_v35  ;;  %v1288_v58 = vsel %vm1283_vm6, %v1274_v30, %v1276_v32 }
  0xc8   : > { %2866 = vmatmul.mubr.msk.bf16.vlgmr.msra.gmra.mxu0 %vm249_vm2, %v2761_v12  ;;  %v1308_v62 = vsel %vm253_vm1, %v1288_v58, 0 }
  0xc9   : > { %1106 = vmatpush1.bf16.msra.mxu0 %v1030_v31  ;;  %1123 = vmatprep.mubr.bf16.mxu0 %v2940_v6 }
  0xca   : > { %2778 = vmatprep.subr.msk.bf16.mxu0 %vm253_vm1, %v1019_v34  ;;  %v1280_v38 = vpop.permute.xlu0 %1279  ;;  %v1282_v40 = vpop.permute.xlu1 %1281 }
  0xcb   : > { %v1291_v59 = vsel %vm1283_vm6, %v1280_v38, %v1282_v40  ;;  %v1290_v0 = vsel %vm1283_vm6, %v1278_v35, %v1280_v38  ;;  %v1320_v7 = vsel %vm253_vm1, %v1282_v40, 0 }
  0xcc   : > { %2773 = vmatmul.mubr.msk.bf16.vlgmr.msra.gmra.mxu1 %vm249_vm2, %v2771_v36  ;;  %v1314_v2 = vsel %vm253_vm1, %v1290_v0, 0 }
  0xcd   : > { %1147 = vmatpush1.bf16.msra.mxu1 %v1036_v37  ;;  %1164 = vmatprep.mubr.bf16.mxu1 %v2940_v6 }
  0xce   : > { %2869 = vmatprep.subr.bf16.mxu1 %v2948_v41  ;;  %v1538_v43 = vpop.permute.xlu0 %1537  ;;  %v1540_v45 = vpop.permute.xlu1 %1539 }
  0xcf   : > { %v1556_v9 = vsel %vm1555_vm7, %v1538_v43, %v1540_v45 }
  0xd0   : > { %2775 = vmatmul.mubr.msk.bf16.vlgmr.msra.gmra.mxu0 %vm249_vm2, %v2771_v36  ;;  %v1568_v12 = vsel %vm253_vm1, %v1556_v9, 0 }
  0xd1   : > { %1188 = vmatpush1.bf16.msra.mxu0 %v1042_v42  ;;  %1205 = vmatprep.mubr.bf16.mxu0 %v2940_v6 }
  0xd2   : > { %2782 = vmatprep.subr.msk.bf16.mxu0 %vm253_vm1, %v1285_v44  ;;  %v1542_v47 = vpop.permute.xlu0 %1541  ;;  %v1544_v50 = vpop.permute.xlu1 %1543 }
  0xd3   : > { %v1557_v4 = vsel %vm1555_vm7, %v1540_v45, %v1542_v47  ;;  %v1558_v14 = vsel %vm1555_vm7, %v1542_v47, %v1544_v50 }
  0xd4   : > { %2777 = vmatmul.mubr.msk.bf16.vlgmr.msra.gmra.mxu1 %vm249_vm2, %v2771_v36  ;;  %v1574_v17 = vsel %vm253_vm1, %v1558_v14, 0 }
  0xd5   : > { %2870 = vmatpush3.bf16.msra.mxu1 %v1048_v46  ;;  %2871 = vmatprep.mubr.msk.bf16.mxu1 %vm2950_vm3, %v2948_v41  ;;  %v2801_v46 = vld [vmem:[%s3490_s1 + $0xc] sm:$0x3] }
  0xd6   : > { %2784 = vmatprep.subr.msk.bf16.mxu1 %vm253_vm1, %v1287_v49  ;;  %v1546_v52 = vpop.permute.xlu0 %1545  ;;  %v1548_v55 = vpop.permute.xlu1 %1547 }
  0xd7   : > { %v1559_v10 = vsel %vm1555_vm7, %v1544_v50, %v1546_v52  ;;  %v1560_v19 = vsel %vm1555_vm7, %v1546_v52, %v1548_v55 }
  0xd8   : > { %2779 = vmatmul.mubr.msk.bf16.vlgmr.msra.gmra.mxu0 %vm249_vm2, %v2771_v36  ;;  %v1580_v23 = vsel %vm253_vm1, %v1560_v19, 0 }
  0xd9   : > { %1337 = vmatpush1.bf16.msra.mxu0 %v1296_v51  ;;  %1354 = vmatprep.mubr.bf16.mxu0 %v2940_v6 }
  0xda   : > { %2786 = vmatprep.subr.msk.bf16.mxu0 %vm253_vm1, %v1289_v54  ;;  %v1550_v57 = vpop.permute.xlu0 %1549  ;;  %v1552_v60 = vpop.permute.xlu1 %1551 }
  0xdb   : > { %v1561_v15 = vsel %vm1555_vm7, %v1548_v55, %v1550_v57  ;;  %v1562_v25 = vsel %vm1555_vm7, %v1550_v57, %v1552_v60 }
  0xdc   : > { %2872 = vmatmul.mubr.msk.bf16.vlgmr.msra.gmra.mxu1 %vm249_vm2, %v2771_v36  ;;  %v1586_v27 = vsel %vm253_vm1, %v1562_v25, 0  ;;  %v2821_v25 = vld [vmem:[%s3490_s1 + $0x10] sm:$0x3] }
  0xdd   : > { %1378 = vmatpush1.bf16.msra.mxu1 %v1302_v56  ;;  %1395 = vmatprep.mubr.bf16.mxu1 %v2940_v6 }
  0xde   : > { %2788 = vmatprep.subr.msk.bf16.mxu1 %vm253_vm1, %v1291_v59  ;;  %v1554_v63 = vpop.permute.xlu0 %1553  ;;  %v1811_v1 = vpop.permute.xlu1 %1810 }
  0xdf   : > { %v1563_v20 = vsel %vm1555_vm7, %v1552_v60, %v1554_v63  ;;  %v1592_v32 = vsel %vm253_vm1, %v1554_v63, 0 }
  0xe0   : > { %2783 = vmatmul.mubr.msk.bf16.vlgmr.msra.gmra.mxu0 %vm249_vm2, %v2781_v61 }
  0xe1   : > { %1419 = vmatpush1.bf16.msra.mxu0 %v1308_v62  ;;  %1436 = vmatprep.mubr.bf16.mxu0 %v2940_v6 }
  0xe2   : > { %2875 = vmatprep.subr.bf16.mxu0 %v2948_v41  ;;  %v1813_v3 = vpop.permute.xlu0 %1812  ;;  %v1815_v5 = vpop.permute.xlu1 %1814 }
  0xe3   : > { %v1832_v29 = vsel %vm1830_vm8, %v1813_v3, %v1815_v5  ;;  %v1831_v33 = vsel %vm1830_vm8, %v1811_v1, %v1813_v3  ;;  %v2811_v3 = vld [vmem:[%s3490_s1 + $0xe] sm:$0x3] }
  0xe4   : > { %2785 = vmatmul.mubr.msk.bf16.vlgmr.msra.gmra.mxu1 %vm249_vm2, %v2781_v61  ;;  %v1844_v35 = vsel %vm253_vm1, %v1831_v33, 0 }
  0xe5   : > { %1460 = vmatpush1.bf16.msra.mxu1 %v1314_v2  ;;  %1477 = vmatprep.mubr.bf16.mxu1 %v2940_v6 }
  0xe6   : > { %2792 = vmatprep.subr.msk.bf16.mxu1 %vm253_vm1, %v1557_v4  ;;  %v1817_v8 = vpop.permute.xlu0 %1816  ;;  %v1819_v11 = vpop.permute.xlu1 %1818 }
  0xe7   : > { %v1834_v34 = vsel %vm1830_vm8, %v1817_v8, %v1819_v11  ;;  %v1833_v38 = vsel %vm1830_vm8, %v1815_v5, %v1817_v8 }
  0xe8   : > { %2787 = vmatmul.mubr.msk.bf16.vlgmr.msra.gmra.mxu0 %vm249_vm2, %v2781_v61  ;;  %v1850_v40 = vsel %vm253_vm1, %v1833_v38, 0 }
  0xe9   : > { %2876 = vmatpush3.bf16.msra.mxu0 %v1320_v7  ;;  %2877 = vmatprep.mubr.msk.bf16.mxu0 %vm2950_vm3, %v2948_v41 }
  0xea   : > { %2794 = vmatprep.subr.msk.bf16.mxu0 %vm253_vm1, %v1559_v10  ;;  %v1821_v13 = vpop.permute.xlu0 %1820  ;;  %v1823_v16 = vpop.permute.xlu1 %1822 }
  0xeb   : > { %v1836_v39 = vsel %vm1830_vm8, %v1821_v13, %v1823_v16  ;;  %v1835_v42 = vsel %vm1830_vm8, %v1819_v11, %v1821_v13 }
  0xec   : > { %2789 = vmatmul.mubr.msk.bf16.vlgmr.msra.gmra.mxu1 %vm249_vm2, %v2781_v61  ;;  %v1856_v47 = vsel %vm253_vm1, %v1835_v42, 0 }
  0xed   : > { %1609 = vmatpush1.bf16.msra.mxu1 %v1568_v12  ;;  %1626 = vmatprep.mubr.bf16.mxu1 %v2940_v6 }
  0xee   : > { %2796 = vmatprep.subr.msk.bf16.mxu1 %vm253_vm1, %v1561_v15  ;;  %v1825_v18 = vpop.permute.xlu0 %1824  ;;  %v1827_v21 = vpop.permute.xlu1 %1826 }
  0xef   : > { %v1838_v43 = vsel %vm1830_vm8, %v1825_v18, %v1827_v21  ;;  %v1837_v48 = vsel %vm1830_vm8, %v1823_v16, %v1825_v18 }
  0xf0   : > { %2878 = vmatmul.mubr.msk.bf16.vlgmr.msra.gmra.mxu0 %vm249_vm2, %v2781_v61  ;;  %v1862_v49 = vsel %vm253_vm1, %v1837_v48, 0 }
  0xf1   : > { %1650 = vmatpush1.bf16.msra.mxu0 %v1574_v17  ;;  %1667 = vmatprep.mubr.bf16.mxu0 %v2940_v6 }
  0xf2   : > { %2798 = vmatprep.subr.msk.bf16.mxu0 %vm253_vm1, %v1563_v20  ;;  %v1829_v24 = vpop.permute.xlu0 %1828  ;;  %v2086_v26 = vpop.permute.xlu1 %2085 }
  0xf3   : > { %v1839_v52 = vsel %vm1830_vm8, %v1827_v21, %v1829_v24 }
  0xf4   : > { %2793 = vmatmul.mubr.msk.bf16.vlgmr.msra.gmra.mxu1 %vm249_vm2, %v2791_v22  ;;  %v1868_v54 = vsel %vm253_vm1, %v1839_v52, 0 }
  0xf5   : > { %1691 = vmatpush1.bf16.msra.mxu1 %v1580_v23  ;;  %1708 = vmatprep.mubr.bf16.mxu1 %v2940_v6 }
  0xf6   : > { %2881 = vmatprep.subr.bf16.mxu1 %v2948_v41  ;;  %v2088_v30 = vpop.permute.xlu0 %2087  ;;  %v2090_v31 = vpop.permute.xlu1 %2089 }
  0xf7   : > { %v2107_v53 = vsel %vm2105_vm9, %v2088_v30, %v2090_v31  ;;  %v2106_v55 = vsel %vm2105_vm9, %v2086_v26, %v2088_v30 }
  0xf8   : > { %2795 = vmatmul.mubr.msk.bf16.vlgmr.msra.gmra.mxu0 %vm249_vm2, %v2791_v22  ;;  %v2119_v59 = vsel %vm253_vm1, %v2106_v55, 0 }
  0xf9   : > { %1732 = vmatpush1.bf16.msra.mxu0 %v1586_v27  ;;  %1749 = vmatprep.mubr.bf16.mxu0 %v2940_v6 }
  0xfa   : > { %2802 = vmatprep.subr.msk.bf16.mxu0 %vm253_vm1, %v1832_v29  ;;  %v2092_v36 = vpop.permute.xlu0 %2091  ;;  %v2094_v37 = vpop.permute.xlu1 %2093 }
  0xfb   : > { %v2109_v56 = vsel %vm2105_vm9, %v2092_v36, %v2094_v37  ;;  %v2108_v60 = vsel %vm2105_vm9, %v2090_v31, %v2092_v36 }
  0xfc   : > { %2797 = vmatmul.mubr.msk.bf16.vlgmr.msra.gmra.mxu1 %vm249_vm2, %v2791_v22  ;;  %v2125_v62 = vsel %vm253_vm1, %v2108_v60, 0 }
  0xfd   : > { %2882 = vmatpush3.bf16.msra.mxu1 %v1592_v32  ;;  %2883 = vmatprep.mubr.msk.bf16.mxu1 %vm2950_vm3, %v2948_v41 }
  0xfe   : > { %2804 = vmatprep.subr.msk.bf16.mxu1 %vm253_vm1, %v1834_v34  ;;  %v2096_v44 = vpop.permute.xlu0 %2095 }
  0xff   : > { %v2098_v45 = vpop.permute.xlu1 %2097  ;;  %v2110_v1 = vsel %vm2105_vm9, %v2094_v37, %v2096_v44 }
 0x100   : > { %2799 = vmatmul.mubr.msk.bf16.vlgmr.msra.gmra.mxu0 %vm249_vm2, %v2791_v22  ;;  %v2111_v61 = vsel %vm2105_vm9, %v2096_v44, %v2098_v45  ;;  %v2131_v4 = vsel %vm253_vm1, %v2110_v1, 0 }
 0x101   : > { %1885 = vmatpush1.bf16.msra.mxu0 %v1844_v35  ;;  %1902 = vmatprep.mubr.bf16.mxu0 %v2940_v6 }
 0x102   : > { %2806 = vmatprep.subr.msk.bf16.mxu0 %vm253_vm1, %v1836_v39 }
 0x104   : > { %2884 = vmatmul.mubr.msk.bf16.vlgmr.msra.gmra.mxu1 %vm249_vm2, %v2791_v22  ;;  %v2100_v50 = vpop.permute.xlu0 %2099  ;;  %v2102_v51 = vpop.permute.xlu1 %2101 }
 0x105   : > { %1926 = vmatpush1.bf16.msra.mxu1 %v1850_v40  ;;  %1943 = vmatprep.mubr.bf16.mxu1 %v2940_v6  ;;  %v2113_v2 = vsel %vm2105_vm9, %v2100_v50, %v2102_v51  ;;  %v2112_v5 = vsel %vm2105_vm9, %v2098_v45, %v2100_v50 }
 0x106   : > { %2808 = vmatprep.subr.msk.bf16.mxu1 %vm253_vm1, %v1838_v43  ;;  %v2137_v9 = vsel %vm253_vm1, %v2112_v5, 0 }
 0x108   : > { %2803 = vmatmul.mubr.msk.bf16.vlgmr.msra.gmra.mxu0 %vm249_vm2, %v2801_v46  ;;  %v2104_v57 = vpop.permute.xlu0 %2103 }
 0x109   : > { %1967 = vmatpush1.bf16.msra.mxu0 %v1856_v47  ;;  %1984 = vmatprep.mubr.bf16.mxu0 %v2940_v6  ;;  %v2361_v58 = vpop.permute.xlu1 %2360  ;;  %v2114_v10 = vsel %vm2105_vm9, %v2102_v51, %v2104_v57 }
 0x10a   : > { %2887 = vmatprep.subr.bf16.mxu0 %v2948_v41  ;;  %v2143_v12 = vsel %vm253_vm1, %v2114_v10, 0 }
 0x10c   : > { %2805 = vmatmul.mubr.msk.bf16.vlgmr.msra.gmra.mxu1 %vm249_vm2, %v2801_v46 }
 0x10d   : > { %2008 = vmatpush1.bf16.msra.mxu1 %v1862_v49  ;;  %2025 = vmatprep.mubr.bf16.mxu1 %v2940_v6  ;;  %v2363_v63 = vpop.permute.xlu0 %2362 }
 0x10e   : > { %2812 = vmatprep.subr.msk.bf16.mxu1 %vm253_vm1, %v2107_v53  ;;  %v2365_v0 = vpop.permute.xlu1 %2364  ;;  %v2381_v15 = vsel %vm2380_vm10, %v2361_v58, %v2363_v63 }
 0x10f   : > { %v2382_v11 = vsel %vm2380_vm10, %v2363_v63, %v2365_v0  ;;  %v2394_v17 = vsel %vm253_vm1, %v2381_v15, 0 }
 0x110   : > { %2807 = vmatmul.mubr.msk.bf16.vlgmr.msra.gmra.mxu0 %vm249_vm2, %v2801_v46 }
 0x111   : > { %2888 = vmatpush3.bf16.msra.mxu0 %v1868_v54  ;;  %2889 = vmatprep.mubr.msk.bf16.mxu0 %vm2950_vm3, %v2948_v41  ;;  %v2367_v7 = vpop.permute.xlu0 %2366 }
 0x112   : > { %2814 = vmatprep.subr.msk.bf16.mxu0 %vm253_vm1, %v2109_v56  ;;  %v2369_v8 = vpop.permute.xlu1 %2368  ;;  %v2383_v18 = vsel %vm2380_vm10, %v2365_v0, %v2367_v7 }
 0x113   : > { %v2384_v16 = vsel %vm2380_vm10, %v2367_v7, %v2369_v8  ;;  %v2400_v22 = vsel %vm253_vm1, %v2383_v18, 0 }
 0x114   : > { %2809 = vmatmul.mubr.msk.bf16.vlgmr.msra.gmra.mxu1 %vm249_vm2, %v2801_v46 }
 0x115   : > { %2160 = vmatpush1.bf16.msra.mxu1 %v2119_v59  ;;  %2177 = vmatprep.mubr.bf16.mxu1 %v2940_v6  ;;  %v2371_v13 = vpop.permute.xlu0 %2370 }
 0x116   : > { %2816 = vmatprep.subr.msk.bf16.mxu1 %vm253_vm1, %v2111_v61  ;;  %v2373_v14 = vpop.permute.xlu1 %2372  ;;  %v2385_v23 = vsel %vm2380_vm10, %v2369_v8, %v2371_v13 }
 0x117   : > { %v2386_v19 = vsel %vm2380_vm10, %v2371_v13, %v2373_v14  ;;  %v2406_v26 = vsel %vm253_vm1, %v2385_v23, 0 }
 0x118   : > { %2890 = vmatmul.mubr.msk.bf16.vlgmr.msra.gmra.mxu0 %vm249_vm2, %v2801_v46 }
 0x119   : > { %2201 = vmatpush1.bf16.msra.mxu0 %v2125_v62  ;;  %2218 = vmatprep.mubr.bf16.mxu0 %v2940_v6  ;;  %v2375_v20 = vpop.permute.xlu0 %2374 }
 0x11a   : > { %2818 = vmatprep.subr.msk.bf16.mxu0 %vm253_vm1, %v2113_v2  ;;  %v2377_v21 = vpop.permute.xlu1 %2376  ;;  %v2387_v27 = vsel %vm2380_vm10, %v2373_v14, %v2375_v20 }
 0x11b   : > { %v2388_v24 = vsel %vm2380_vm10, %v2375_v20, %v2377_v21  ;;  %v2412_v29 = vsel %vm253_vm1, %v2387_v27, 0 }
 0x11c   : > { %2813 = vmatmul.mubr.msk.bf16.vlgmr.msra.gmra.mxu1 %vm249_vm2, %v2811_v3 }
 0x11d   : > { %2242 = vmatpush1.bf16.msra.mxu1 %v2131_v4  ;;  %2259 = vmatprep.mubr.bf16.mxu1 %v2940_v6  ;;  %v2379_v28 = vpop.permute.xlu0 %2378 }
 0x11e   : > { %2893 = vmatprep.subr.bf16.mxu1 %v2948_v41  ;;  %v2389_v30 = vsel %vm2380_vm10, %v2377_v21, %v2379_v28 }
 0x11f   : > { %v2418_v31 = vsel %vm253_vm1, %v2389_v30, 0 }
 0x120   : > { %2815 = vmatmul.mubr.msk.bf16.vlgmr.msra.gmra.mxu0 %vm249_vm2, %v2811_v3 }
 0x121   : > { %2283 = vmatpush1.bf16.msra.mxu0 %v2137_v9  ;;  %2300 = vmatprep.mubr.bf16.mxu0 %v2940_v6 }
 0x122   : > { %2822 = vmatprep.subr.msk.bf16.mxu0 %vm253_vm1, %v2382_v11 }
 0x124   : > { %2817 = vmatmul.mubr.msk.bf16.vlgmr.msra.gmra.mxu1 %vm249_vm2, %v2811_v3 }
 0x125   : > { %2894 = vmatpush3.bf16.msra.mxu1 %v2143_v12  ;;  %2895 = vmatprep.mubr.msk.bf16.mxu1 %vm2950_vm3, %v2948_v41 }
 0x126   : > { %2824 = vmatprep.subr.msk.bf16.mxu1 %vm253_vm1, %v2384_v16 }
 0x128   : > { %2819 = vmatmul.mubr.msk.bf16.vlgmr.msra.gmra.mxu0 %vm249_vm2, %v2811_v3 }
 0x129   : > { %2435 = vmatpush1.bf16.msra.mxu0 %v2394_v17  ;;  %2452 = vmatprep.mubr.bf16.mxu0 %v2940_v6 }
 0x12a   : > { %2826 = vmatprep.subr.msk.bf16.mxu0 %vm253_vm1, %v2386_v19 }
 0x12c   : > { %2896 = vmatmul.mubr.msk.bf16.vlgmr.msra.gmra.mxu1 %vm249_vm2, %v2811_v3 }
 0x12d   : > { %2476 = vmatpush1.bf16.msra.mxu1 %v2400_v22  ;;  %2493 = vmatprep.mubr.bf16.mxu1 %v2940_v6 }
 0x12e   : > { %2828 = vmatprep.subr.msk.bf16.mxu1 %vm253_vm1, %v2388_v24 }
 0x130   : > { %2823 = vmatmul.mubr.msk.bf16.vlgmr.msra.gmra.mxu0 %vm249_vm2, %v2821_v25 }
 0x131   : > { %2517 = vmatpush1.bf16.msra.mxu0 %v2406_v26  ;;  %2534 = vmatprep.mubr.bf16.mxu0 %v2940_v6 }
 0x132   : > { %2899 = vmatprep.subr.bf16.mxu0 %v2948_v41 }
 0x134   : > { %2825 = vmatmul.mubr.msk.bf16.vlgmr.msra.gmra.mxu1 %vm249_vm2, %v2821_v25 }
 0x135   : > { %2558 = vmatpush1.bf16.msra.mxu1 %v2412_v29  ;;  %2575 = vmatprep.mubr.bf16.mxu1 %v2940_v6 }
 0x138   : > { %2827 = vmatmul.mubr.msk.bf16.vlgmr.msra.gmra.mxu0 %vm249_vm2, %v2821_v25 }
 0x139   : > { %2900 = vmatpush3.bf16.msra.mxu0 %v2418_v31  ;;  %2901 = vmatprep.mubr.msk.bf16.mxu0 %vm2950_vm3, %v2948_v41 }
 0x13c   : > { %2829 = vmatmul.mubr.msk.bf16.vlgmr.msra.gmra.mxu1 %vm249_vm2, %v2821_v25 }
 0x140   : > { %2902 = vmatmul.mubr.msk.bf16.vlgmr.msra.gmra.mxu0 %vm249_vm2, %v2821_v25 }
 0x150   : > { %v315_v32 = vpop.f32.mrf.mxu0 }
 0x152   : > { %v317_v33 = vpop.f32.mrf.mxu0 }
 0x154   : > { %v319_v34 = vpop.f32.mrf.mxu0  ;;  %v356_v35 = vpop.f32.mrf.mxu1 }
 0x156   : > { %v320_v36 = vpop.f32.mrf.mxu0  ;;  %v358_v37 = vpop.f32.mrf.mxu1 }
 0x158   : > { %v360_v38 = vpop.f32.mrf.mxu1  ;;  %v397_v6 = vpop.f32.mrf.mxu0 }
 0x15a   : > { %v361_v39 = vpop.f32.mrf.mxu1  ;;  %v399_v40 = vpop.f32.mrf.mxu0 }
 0x15c   : > { %v401_v42 = vpop.f32.mrf.mxu0  ;;  %v438_v43 = vpop.f32.mrf.mxu1 }
 0x15e   : > { %v402_v44 = vpop.f32.mrf.mxu0  ;;  %v440_v45 = vpop.f32.mrf.mxu1 }
 0x160   : > { %v442_v46 = vpop.f32.mrf.mxu1  ;;  %v479_v41 = vpop.f32.mrf.mxu0 }
 0x162   : > { %v443_v47 = vpop.f32.mrf.mxu1  ;;  %v2855_v48 = vpop.f32.mrf.mxu0 }
 0x164   : > { %v482_v49 = vpop.f32.mrf.mxu0  ;;  %v549_v50 = vpop.f32.mrf.mxu1 }
 0x165   : > { %v550_v51 = vadd.f32 %v549_v50, %v315_v32 }
 0x166   : > { %v2856_v52 = vpop.f32.mrf.mxu0  ;;  %v551_v53 = vpop.f32.mrf.mxu1 }
 0x167   : > { %v552_v54 = vadd.f32 %v551_v53, %v317_v33 }
 0x168   : > { %v553_v55 = vpop.f32.mrf.mxu1  ;;  %v590_v56 = vpop.f32.mrf.mxu0 }
 0x169   : > { %v591_v57 = vadd.f32 %v590_v56, %v356_v35 }
 0x16a   : > { %v554_v58 = vpop.f32.mrf.mxu1  ;;  %v592_v59 = vpop.f32.mrf.mxu0 }
 0x16b   : > { %v593_v60 = vadd.f32 %v592_v59, %v358_v37 }
 0x16c   : > { %v594_v61 = vpop.f32.mrf.mxu0  ;;  %v631_v62 = vpop.f32.mrf.mxu1 }
 0x16d   : > { %v632_v63 = vadd.f32 %v631_v62, %v397_v6 }
 0x16e   : > { %v595_v0 = vpop.f32.mrf.mxu0  ;;  %v633_v1 = vpop.f32.mrf.mxu1 }
 0x16f   : > { %v634_v2 = vadd.f32 %v633_v1, %v399_v40 }
 0x170   : > { %v635_v3 = vpop.f32.mrf.mxu1  ;;  %v672_v4 = vpop.f32.mrf.mxu0 }
 0x171   : > { %v673_v5 = vadd.f32 %v672_v4, %v438_v43 }
 0x172   : > { %v636_v7 = vpop.f32.mrf.mxu1  ;;  %v674_v8 = vpop.f32.mrf.mxu0 }
 0x173   : > { %v675_v9 = vadd.f32 %v674_v8, %v440_v45 }
 0x174   : > { %v676_v10 = vpop.f32.mrf.mxu0  ;;  %v713_v11 = vpop.f32.mrf.mxu1 }
 0x175   : > { %v714_v12 = vadd.f32 %v713_v11, %v479_v41 }
 0x176   : > { %v677_v13 = vpop.f32.mrf.mxu0  ;;  %v2861_v14 = vpop.f32.mrf.mxu1 }
 0x178   : > { %v716_v15 = vpop.f32.mrf.mxu1  ;;  %v812_v16 = vpop.f32.mrf.mxu0 }
 0x179   : > { %v982_v17 = vadd.f32 %v812_v16, %v550_v51 }
 0x17a   : > { %v2862_v18 = vpop.f32.mrf.mxu1  ;;  %v814_v19 = vpop.f32.mrf.mxu0 }
 0x17b   : > { %v983_v20 = vadd.f32 %v814_v19, %v552_v54 }
 0x17c   : > { %v816_v21 = vpop.f32.mrf.mxu0  ;;  %v853_v22 = vpop.f32.mrf.mxu1 }
 0x17d   : > { %v984_v23 = vadd.f32 %v853_v22, %v591_v57 }
 0x17e   : > { %v817_v24 = vpop.f32.mrf.mxu0  ;;  %v855_v25 = vpop.f32.mrf.mxu1 }
 0x17f   : > { %v985_v26 = vadd.f32 %v855_v25, %v593_v60 }
 0x180   : > { %v857_v27 = vpop.f32.mrf.mxu1  ;;  %v894_v28 = vpop.f32.mrf.mxu0 }
 0x181   : > { %v986_v29 = vadd.f32 %v894_v28, %v632_v63 }
 0x182   : > { %v858_v30 = vpop.f32.mrf.mxu1  ;;  %v896_v31 = vpop.f32.mrf.mxu0 }
 0x183   : > { %v987_v32 = vadd.f32 %v896_v31, %v634_v2 }
 0x184   : > { %v898_v33 = vpop.f32.mrf.mxu0  ;;  %v935_v34 = vpop.f32.mrf.mxu1 }
 0x185   : > { %v988_v35 = vadd.f32 %v935_v34, %v673_v5 }
 0x186   : > { %v899_v36 = vpop.f32.mrf.mxu0  ;;  %v937_v37 = vpop.f32.mrf.mxu1 }
 0x187   : > { %v989_v38 = vadd.f32 %v937_v37, %v675_v9 }
 0x188   : > { %v939_v6 = vpop.f32.mrf.mxu1  ;;  %v976_v39 = vpop.f32.mrf.mxu0 }
 0x189   : > { %v990_v40 = vadd.f32 %v976_v39, %v714_v12 }
 0x18a   : > { %v940_v42 = vpop.f32.mrf.mxu1  ;;  %v2867_v43 = vpop.f32.mrf.mxu0 }
 0x18c   : > { %v979_v44 = vpop.f32.mrf.mxu0  ;;  %v1084_v45 = vpop.f32.mrf.mxu1 }
 0x18d   : > { %v1254_v46 = vadd.f32 %v1084_v45, %v982_v17 }
 0x18e   : > { %v2868_v41 = vpop.f32.mrf.mxu0  ;;  %v1086_v47 = vpop.f32.mrf.mxu1 }
 0x18f   : > { %v1255_v48 = vadd.f32 %v1086_v47, %v983_v20 }
 0x190   : > { %v1088_v49 = vpop.f32.mrf.mxu1  ;;  %v1125_v50 = vpop.f32.mrf.mxu0 }
 0x191   : > { %v1256_v51 = vadd.f32 %v1125_v50, %v984_v23 }
 0x192   : > { %v1089_v52 = vpop.f32.mrf.mxu1  ;;  %v1127_v53 = vpop.f32.mrf.mxu0 }
 0x193   : > { %v1257_v54 = vadd.f32 %v1127_v53, %v985_v26 }
 0x194   : > { %v1129_v55 = vpop.f32.mrf.mxu0  ;;  %v1166_v56 = vpop.f32.mrf.mxu1 }
 0x195   : > { %v1258_v57 = vadd.f32 %v1166_v56, %v986_v29 }
 0x196   : > { %v1130_v58 = vpop.f32.mrf.mxu0  ;;  %v1168_v59 = vpop.f32.mrf.mxu1 }
 0x197   : > { %v1259_v60 = vadd.f32 %v1168_v59, %v987_v32 }
 0x198   : > { %v1170_v61 = vpop.f32.mrf.mxu1  ;;  %v1207_v62 = vpop.f32.mrf.mxu0 }
 0x199   : > { %v1260_v63 = vadd.f32 %v1207_v62, %v988_v35 }
 0x19a   : > { %v1171_v0 = vpop.f32.mrf.mxu1  ;;  %v1209_v1 = vpop.f32.mrf.mxu0 }
 0x19b   : > { %v1261_v2 = vadd.f32 %v1209_v1, %v989_v38 }
 0x19c   : > { %v1211_v3 = vpop.f32.mrf.mxu0  ;;  %v1248_v4 = vpop.f32.mrf.mxu1 }
 0x19d   : > { %v1262_v5 = vadd.f32 %v1248_v4, %v990_v40 }
 0x19e   : > { %v1212_v7 = vpop.f32.mrf.mxu0  ;;  %v2873_v8 = vpop.f32.mrf.mxu1 }
 0x1a0   : > { %v1251_v9 = vpop.f32.mrf.mxu1  ;;  %v1356_v10 = vpop.f32.mrf.mxu0 }
 0x1a1   : > { %v3407_v11 = vadd.f32 %v1356_v10, %v1254_v46 }
 0x1a2   : > { %v2874_v12 = vpop.f32.mrf.mxu1  ;;  %v1358_v13 = vpop.f32.mrf.mxu0 }
 0x1a3   : > { %v3409_v14 = vadd.f32 %v1358_v13, %v1255_v48 }
 0x1a4   : > { %v1360_v15 = vpop.f32.mrf.mxu0  ;;  %v1397_v16 = vpop.f32.mrf.mxu1 }
 0x1a5   : > { %v3411_v17 = vadd.f32 %v1397_v16, %v1256_v51 }
 0x1a6   : > { %v1361_v18 = vpop.f32.mrf.mxu0  ;;  %v1399_v19 = vpop.f32.mrf.mxu1 }
 0x1a7   : > { %v3413_v20 = vadd.f32 %v1399_v19, %v1257_v54 }
 0x1a8   : > { %v1401_v21 = vpop.f32.mrf.mxu1  ;;  %v1438_v22 = vpop.f32.mrf.mxu0 }
 0x1a9   : > { %v3415_v23 = vadd.f32 %v1438_v22, %v1258_v57 }
 0x1aa   : > { %v1402_v24 = vpop.f32.mrf.mxu1  ;;  %v1440_v25 = vpop.f32.mrf.mxu0 }
 0x1ab   : > { %v3417_v26 = vadd.f32 %v1440_v25, %v1259_v60 }
 0x1ac   : > { %v1442_v27 = vpop.f32.mrf.mxu0  ;;  %v1479_v28 = vpop.f32.mrf.mxu1 }
 0x1ad   : > { %v3419_v29 = vadd.f32 %v1479_v28, %v1260_v63 }
 0x1ae   : > { %v1443_v30 = vpop.f32.mrf.mxu0  ;;  %v1481_v31 = vpop.f32.mrf.mxu1 }
 0x1af   : > { %v3421_v32 = vadd.f32 %v1481_v31, %v1261_v2 }
 0x1b0   : > { %v1483_v33 = vpop.f32.mrf.mxu1  ;;  %v1520_v34 = vpop.f32.mrf.mxu0 }
 0x1b1   : > { %v3423_v35 = vadd.f32 %v1520_v34, %v1262_v5 }
 0x1b2   : > { %v1484_v36 = vpop.f32.mrf.mxu1  ;;  %v2879_v37 = vpop.f32.mrf.mxu0 }
 0x1b4   : > { %v1523_v38 = vpop.f32.mrf.mxu0  ;;  %v1628_v6 = vpop.f32.mrf.mxu1 }
 0x1b6   : > { %v2880_v39 = vpop.f32.mrf.mxu0  ;;  %v1630_v40 = vpop.f32.mrf.mxu1 }
 0x1b7   : > { %v1798_v39 = vadd.f32 %v1628_v6, %v3407_v11 }
 0x1b8   : > { %v1632_v42 = vpop.f32.mrf.mxu1  ;;  %v1669_v43 = vpop.f32.mrf.mxu0 }
 0x1ba   : > { %v1633_v44 = vpop.f32.mrf.mxu1  ;;  %v1671_v45 = vpop.f32.mrf.mxu0 }
 0x1bc   : > { %v1673_v46 = vpop.f32.mrf.mxu0  ;;  %v3425_v41 = vpop.f32.mrf.mxu1 }
 0x1bd   : > { %v1799_v46 = vadd.f32 %v1630_v40, %v3409_v14  ;;  %v1802_v14 = vadd.f32 %v3425_v41, %v3415_v23 }
 0x1be   : > { %v1674_v47 = vpop.f32.mrf.mxu0  ;;  %v3427_v48 = vpop.f32.mrf.mxu1 }
 0x1c0   : > { %v1714_v49 = vpop.f32.mrf.mxu1  ;;  %v3429_v50 = vpop.f32.mrf.mxu0 }
 0x1c1   : > { %v1804_v23 = vadd.f32 %v3429_v50, %v3419_v29 }
 0x1c2   : > { %v1715_v51 = vpop.f32.mrf.mxu1  ;;  %v3431_v52 = vpop.f32.mrf.mxu0 }
 0x1c4   : > { %v1755_v53 = vpop.f32.mrf.mxu0  ;;  %v3433_v54 = vpop.f32.mrf.mxu1 }
 0x1c5   : > { %v1800_v53 = vadd.f32 %v1669_v43, %v3411_v17 }
 0x1c6   : > { %v1756_v55 = vpop.f32.mrf.mxu0  ;;  %v2885_v56 = vpop.f32.mrf.mxu1 }
 0x1c8   : > { %v1795_v57 = vpop.f32.mrf.mxu1  ;;  %v1904_v58 = vpop.f32.mrf.mxu0 }
 0x1c9   : > { %v2074_v47 = vadd.f32 %v1904_v58, %v1798_v39  ;;  %v3448_v57 = vpop.permute.xlu1 %2636 }
 0x1ca   : > { %v2886_v59 = vpop.f32.mrf.mxu1  ;;  %v1906_v60 = vpop.f32.mrf.mxu0 }
 0x1cb   : > { %v2075_v55 = vadd.f32 %v1906_v60, %v1799_v46  ;;  %v1803_v60 = vadd.f32 %v3427_v48, %v3417_v26  ;;  %v1805_v48 = vadd.f32 %v3431_v52, %v3421_v32 }
 0x1cc   : > { %v1908_v61 = vpop.f32.mrf.mxu0  ;;  %v1945_v62 = vpop.f32.mrf.mxu1 }
 0x1cd   : > { %v2076_v11 = vadd.f32 %v1945_v62, %v1800_v53 }
 0x1ce   : > { %v1909_v63 = vpop.f32.mrf.mxu0  ;;  %v1947_v0 = vpop.f32.mrf.mxu1 }
 0x1cf   : > { %v1801_v63 = vadd.f32 %v1671_v45, %v3413_v20 }
 0x1d0   : > { %v1949_v1 = vpop.f32.mrf.mxu1  ;;  %v1986_v2 = vpop.f32.mrf.mxu0 }
 0x1d2   : > { %v1950_v3 = vpop.f32.mrf.mxu1  ;;  %v1988_v4 = vpop.f32.mrf.mxu0 }
 0x1d3   : > { %v2077_v3 = vadd.f32 %v1947_v0, %v1801_v63  ;;  %v2079_v41 = vadd.f32 %v1988_v4, %v1803_v60 }
 0x1d4   : > { %v1990_v5 = vpop.f32.mrf.mxu0  ;;  %v3435_v7 = vpop.f32.mrf.mxu1 }
 0x1d6   : > { %v1991_v8 = vpop.f32.mrf.mxu0  ;;  %v3437_v9 = vpop.f32.mrf.mxu1 }
 0x1d7   : > { %v2078_v8 = vadd.f32 %v1986_v2, %v1802_v14  ;;  %v2080_v2 = vadd.f32 %v3435_v7, %v1804_v23  ;;  %v2081_v32 = vadd.f32 %v3437_v9, %v1805_v48 }
 0x1d8   : > { %v2031_v10 = vpop.f32.mrf.mxu1  ;;  %v3439_v12 = vpop.f32.mrf.mxu0 }
 0x1da   : > { %v2032_v13 = vpop.f32.mrf.mxu1  ;;  %v2891_v15 = vpop.f32.mrf.mxu0 }
 0x1dc   : > { %v2071_v16 = vpop.f32.mrf.mxu0  ;;  %v2179_v18 = vpop.f32.mrf.mxu1 }
 0x1dd   : > { %v2349_v56 = vadd.f32 %v2179_v18, %v2074_v47 }
 0x1de   : > { %v2892_v19 = vpop.f32.mrf.mxu0  ;;  %v2181_v21 = vpop.f32.mrf.mxu1 }
 0x1df   : > { %v2350_v6 = vadd.f32 %v2181_v21, %v2075_v55 }
 0x1e0   : > { %v2183_v22 = vpop.f32.mrf.mxu1  ;;  %v2220_v24 = vpop.f32.mrf.mxu0 }
 0x1e1   : > { %v2351_v5 = vadd.f32 %v2220_v24, %v2076_v11 }
 0x1e2   : > { %v2184_v25 = vpop.f32.mrf.mxu1  ;;  %v2222_v27 = vpop.f32.mrf.mxu0 }
 0x1e3   : > { %v2352_v20 = vadd.f32 %v2222_v27, %v2077_v3  ;;  %v1806_v27 = vadd.f32 %v3433_v54, %v3423_v35 }
 0x1e4   : > { %v2224_v28 = vpop.f32.mrf.mxu0  ;;  %v2261_v30 = vpop.f32.mrf.mxu1 }
 0x1e5   : > { %v2353_v0 = vadd.f32 %v2261_v30, %v2078_v8 }
 0x1e6   : > { %v2225_v31 = vpop.f32.mrf.mxu0  ;;  %v2263_v33 = vpop.f32.mrf.mxu1 }
 0x1e7   : > { %v2354_v4 = vadd.f32 %v2263_v33, %v2079_v41  ;;  %v2082_v33 = vadd.f32 %v3439_v12, %v1806_v27 }
 0x1e8   : > { %v2265_v34 = vpop.f32.mrf.mxu1  ;;  %v2302_v36 = vpop.f32.mrf.mxu0 }
 0x1e9   : > { %v2355_v52 = vadd.f32 %v2302_v36, %v2080_v2 }
 0x1ea   : > { %v2266_v37 = vpop.f32.mrf.mxu1  ;;  %v3441_v38 = vpop.f32.mrf.mxu0 }
 0x1eb   : > { %v2356_v46 = vadd.f32 %v3441_v38, %v2081_v32 }
 0x1ec   : > { %v2306_v42 = vpop.f32.mrf.mxu0  ;;  %v3444_v44 = vpop.f32.mrf.mxu1 }
 0x1ed   : > { %v2357_v9 = vadd.f32 %v3444_v44, %v2082_v33 }
 0x1ee   : > { %v2307_v49 = vpop.f32.mrf.mxu0  ;;  %v2897_v51 = vpop.f32.mrf.mxu1 }
 0x1f0   : > { %v2346_v59 = vpop.f32.mrf.mxu1  ;;  %v2454_v61 = vpop.f32.mrf.mxu0 }
 0x1f1   : > { %v2624_v1 = vadd.f32 %v2454_v61, %v2349_v56 }
 0x1f2   : > { %v2898_v40 = vpop.f32.mrf.mxu1  ;;  %v2456_v58 = vpop.f32.mrf.mxu0 }
 0x1f3   : > { %v2625_v17 = vadd.f32 %v2456_v58, %v2350_v6  ;;  %v2639_v43 = vadd.f32 %v3448_v57, %v2624_v1 }
 0x1f4   : > { %v2458_v10 = vpop.f32.mrf.mxu0  ;;  %v2495_v13 = vpop.f32.mrf.mxu1 }
 0x1f5   : > { %v2640_v45 = vadd.f32 %v3448_v57, %v2625_v17  ;;  %v2626_v62 = vadd.f32 %v2495_v13, %v2351_v5  ;;  %v2648_v18 = vmax.f32 %v2639_v43, 0.0 }
 0x1f6   : > { %v2459_v15 = vpop.f32.mrf.mxu0  ;;  %v2497_v16 = vpop.f32.mrf.mxu1 }
 0x1f7   : > { %v2649_v19 = vmax.f32 %v2640_v45, 0.0  ;;  %v2641_v21 = vadd.f32 %v3448_v57, %v2626_v62  ;;  %v2627_v26 = vadd.f32 %v2497_v16, %v2352_v20 }
 0x1f8   : > { %v2499_v29 = vpop.f32.mrf.mxu1  ;;  %v2536_v50 = vpop.f32.mrf.mxu0 }
 0x1f9   : > { %v2642_v22 = vadd.f32 %v3448_v57, %v2627_v26  ;;  %v2665_v24 = vcombine.low %v2648_v18, %v2649_v19  ;;  %v2628_v25 = vadd.f32 %v2536_v50, %v2353_v0  ;;  %v2650_v30 = vmax.f32 %v2641_v21, 0.0 }
 0x1fa   : > { %v2500_v7 = vpop.f32.mrf.mxu1  ;;  %v2538_v28 = vpop.f32.mrf.mxu0 }
 0x1fb   : > { %v2651_v31 = vmax.f32 %v2642_v22, 0.0  ;;  %2673 = vst [vmem:[%s3467_s23] sm:$0xff] %v2665_v24  ;;  %v2643_v34 = vadd.f32 %v3448_v57, %v2628_v25  ;;  %v2629_v37 = vadd.f32 %v2538_v28, %v2354_v4 }
 0x1fc   : > { %v2540_v39 = vpop.f32.mrf.mxu0  ;;  %v2577_v42 = vpop.f32.mrf.mxu1 }
 0x1fd   : > { %v2666_v47 = vcombine.low %v2650_v30, %v2651_v31  ;;  %v2644_v35 = vadd.f32 %v3448_v57, %v2629_v37  ;;  %v2630_v54 = vadd.f32 %v2577_v42, %v2355_v52  ;;  %v2652_v51 = vmax.f32 %v2643_v34, 0.0 }
 0x1fe   : > { %v2541_v36 = vpop.f32.mrf.mxu0  ;;  %v2579_v49 = vpop.f32.mrf.mxu1 }
 0x1ff   : > { %2674 = vst [vmem:[%s3467_s23 + $0x8] sm:$0xff] %v2666_v47  ;;  %v2653_v53 = vmax.f32 %v2644_v35, 0.0  ;;  %v2645_v55 = vadd.f32 %v3448_v57, %v2630_v54  ;;  %v2631_v56 = vadd.f32 %v2579_v49, %v2356_v46 }
 0x200   : > { %v2581_v12 = vpop.f32.mrf.mxu1  ;;  %v2618_v59 = vpop.f32.mrf.mxu0 }
 0x201   : > { %v2667_v38 = vcombine.low %v2652_v51, %v2653_v53  ;;  %v2646_v61 = vadd.f32 %v3448_v57, %v2631_v56  ;;  %v2632_v63 = vadd.f32 %v2618_v59, %v2357_v9  ;;  %v2654_v44 = vmax.f32 %v2645_v55, 0.0 }
 0x202   : > { %v2582_v11 = vpop.f32.mrf.mxu1  ;;  %v2903_v6 = vpop.f32.mrf.mxu0 }
 0x203   : > { %2675 = vst [vmem:[%s3467_s23 + $0x10] sm:$0xff] %v2667_v38  ;;  %v2655_v1 = vmax.f32 %v2646_v61, 0.0  ;;  %v2647_v14 = vadd.f32 %v3448_v57, %v2632_v63 }
 0x204   : > { %v2621_v40 = vpop.f32.mrf.mxu0 }
 0x205   : > { %v2668_v58 = vcombine.low %v2654_v44, %v2655_v1  ;;  %v2656_v3 = vmax.f32 %v2647_v14, 0.0 }
 0x206   : > { %v2904_v5 = vpop.f32.mrf.mxu0 }
 0x207   : > { %2676 = vst [vmem:[%s3467_s23 + $0x18] sm:$0xff] %v2668_v58  ;;  %2678 = vst.msk [vmem:[%s3467_s23 + $0x20] sm:$0xf] %vm2677_vm11, %v2656_v3 }
 0x208 PF: > { %s13_s12 = sadd.s32 1, %s2937_s12  }
 0x209   : > { %p10_p4 = scmp.ge.s32.totalorder %s13_s12, 4  }
 0x20b   :  { %12 = sbr.rel (!%p10_p4) target bundleno = 1 (0x1), region = 70 }

</bundles_post_ra>
